<compile_context>
chip_gen: v7x
topology: tpu7x:2x2x1
jax: 0.10.0
libtpu: 0.0.40
codegen_flags: <defaults>
</compile_context>

<pallas_src>
import jax
import jax.numpy as jnp
from jax.experimental import pallas as pl
from jax.experimental.pallas import tpu as pltpu

_BN_EPS = 1e-5


def _fold_bn(p):
    s = p["gamma"] * jax.lax.rsqrt(p["var"] + _BN_EPS)
    t = p["beta"] - p["mean"] * s
    return s, t


_VMEM_LIMIT_CACHE = []


def _vmem_limit_bytes():
    """3/4 of physical VMEM per core (v6e: 96 MiB, v7x: 48 MiB); 48 MiB fallback."""
    if not _VMEM_LIMIT_CACHE:
        limit = 48 * 1024 * 1024
        try:
            cap = getattr(pltpu.get_tpu_info(), "vmem_capacity_bytes", None)
            if cap:
                limit = min(int(cap) * 3 // 4, 96 * 1024 * 1024)
        except Exception:
            pass
        _VMEM_LIMIT_CACHE.append(limit)
    return _VMEM_LIMIT_CACHE[0]


def _choose_row_tile(H, bytes_per_row, budget=8 * 1024 * 1024):
    """Largest divisor of H whose (double-buffered) block footprint fits `budget`."""
    best = 1
    for th in range(1, H + 1):
        if H % th == 0 and th * bytes_per_row <= budget:
            best = th
    return best


# ----------------------------------------------------------------------------
# Kernel 1: ConvTranspose2d(k=2, s=2, bias=False) + folded BN + ReLU
#           One matmul per block: (TH*Wh, Cin) x (Cin, 4*Cout), columns = [dy, dx, co].
# ----------------------------------------------------------------------------
def _deconv2x2_bn_relu_kernel(x_ref, w_ref, s_ref, t_ref, o_ref):
    # x_ref: (TH, Wh, Cin) bf16; w_ref: (Cin, 4*Cout) bf16; s/t: (1, 4*Cout) f32
    # o_ref: (TH, 2, Wh, 2*Cout) bf16  (last dim = [dx, cout])
    TH, Wh, Cin = x_ref.shape
    C4 = w_ref.shape[1]
    C2 = C4 // 2
    x2d = x_ref[...].reshape(TH * Wh, Cin)
    acc = jnp.dot(x2d, w_ref[...], preferred_element_type=jnp.float32)
    y = jnp.maximum(acc * s_ref[...] + t_ref[...], 0.0).astype(o_ref.dtype)
    o_ref[:, 0, :, :] = y[:, :C2].reshape(TH, Wh, C2)   # dy = 0
    o_ref[:, 1, :, :] = y[:, C2:].reshape(TH, Wh, C2)   # dy = 1


def deconv2x2_bn_relu(x, ps):
    """x: (G, B, Hh, Wh, Cin) bf16; ps: list of G branch params. -> (G, B, 2Hh, 2Wh, Cout) bf16."""
    G, B, Hh, Wh, Cin = x.shape
    Cout = ps[0]["w"].shape[1]
    ws, ss, ts = [], [], []
    for p in ps:
        # (Cin, Cout, ky, kx) -> (Cin, dy, dx, Cout) -> (Cin, 4*Cout), col = dy*2C + dx*C + co
        ws.append(jnp.transpose(p["w"], (0, 2, 3, 1)).reshape(Cin, 4 * Cout).astype(jnp.bfloat16))
        s, t = _fold_bn(p)
        ss.append(jnp.tile(s, (4,)).reshape(1, 4 * Cout))
        ts.append(jnp.tile(t, (4,)).reshape(1, 4 * Cout))
    w2 = jnp.stack(ws, 0)            # (G, Cin, 4*Cout) bf16
    s2 = jnp.stack(ss, 0)            # (G, 1, 4*Cout) f32
    t2 = jnp.stack(ts, 0)

    xf = x.reshape(G * B, Hh, Wh, Cin)
    bytes_per_row = (Wh * Cin + 2 * Wh * 2 * Cout) * 2 * 2   # in + out rows, bf16, 2x buffered
    TH = _choose_row_tile(Hh, bytes_per_row)

    flops = 2 * G * B * Hh * Wh * Cin * 4 * Cout
    bytes_accessed = (xf.size * 2 + w2.size * 2 + (s2.size + t2.size) * 4
                      + G * B * Hh * Wh * 4 * Cout * 2)

    out = pl.pallas_call(
        _deconv2x2_bn_relu_kernel,
        out_shape=jax.ShapeDtypeStruct((G * B, Hh, 2, Wh, 2 * Cout), jnp.bfloat16),
        grid=(G, B, Hh // TH),
        in_specs=[
            pl.BlockSpec((None, TH, Wh, Cin), lambda g, b, r: (g * B + b, r, 0, 0)),
            pl.BlockSpec((None, Cin, 4 * Cout), lambda g, b, r: (g, 0, 0)),
            pl.BlockSpec((None, 1, 4 * Cout), lambda g, b, r: (g, 0, 0)),
            pl.BlockSpec((None, 1, 4 * Cout), lambda g, b, r: (g, 0, 0)),
        ],
        out_specs=pl.BlockSpec((None, TH, 2, Wh, 2 * Cout),
                               lambda g, b, r: (g * B + b, r, 0, 0, 0)),
        compiler_params=pltpu.CompilerParams(
            dimension_semantics=("parallel", "parallel", "parallel"),
            vmem_limit_bytes=_vmem_limit_bytes()),
        cost_estimate=pl.CostEstimate(flops=flops, transcendentals=0,
                                      bytes_accessed=bytes_accessed),
    )(xf, w2, s2, t2)
    # (GB, Hh, 2, Wh, [dx, Cout]) row-major flatten == (GB, 2Hh, 2Wh, Cout): free reshape.
    return out.reshape(G, B, 2 * Hh, 2 * Wh, Cout)


# ----------------------------------------------------------------------------
# Kernel 2: 3x3 conv (pad=1, stride=1) over one or more inputs (fused channel concat)
#           + folded BN + ReLU.  Halo is built in-register; the 3 dx taps and the fused
#           inputs are packed into K, so only 3 matmuls of K = 3*sum(Cin) per block.
# ----------------------------------------------------------------------------
def _make_conv3x3_kernel(n_in):
    def kernel(*refs):
        x_refs = refs[:n_in]
        w_ref, s_ref, t_ref, o_ref = refs[n_in:n_in + 4]
        H, W, TC = o_ref.shape
        # Zero-halo padding in-register (no HBM pad round-trip), bf16 throughout.
        xps = []
        for x_ref in x_refs:
            xv = x_ref[...]                                    # (H, W, ci) bf16
            ci = xv.shape[-1]
            zc = jnp.zeros((H, 1, ci), xv.dtype)
            xw = jnp.concatenate([zc, xv, zc], axis=1)         # (H, W+2, ci)
            zr = jnp.zeros((1, W + 2, ci), xv.dtype)
            xps.append(jnp.concatenate([zr, xw, zr], axis=0))  # (H+2, W+2, ci)
        acc = jnp.zeros((H * W, TC), jnp.float32)
        for dy in range(3):
            parts = []
            for xp in xps:
                rows = xp[dy:dy + H, :, :]                     # (H, W+2, ci)
                parts += [rows[:, dx:dx + W, :] for dx in range(3)]
            xcat = jnp.concatenate(parts, axis=-1)             # (H, W, 3*sum(ci))
            acc = acc + jnp.dot(xcat.reshape(H * W, -1), w_ref[dy],
                                preferred_element_type=jnp.float32)
        y = jnp.maximum(acc * s_ref[...] + t_ref[...], 0.0)
        o_ref[...] = y.reshape(H, W, TC).astype(o_ref.dtype)
    return kernel


def conv3x3_bn_relu(xs, ps):
    """CBR3X3 over the channel-concat of `xs` (list of (G,B,H,W,ci) bf16), per-branch params `ps`."""
    G, B, H, W, _ = xs[0].shape
    cins = [x.shape[-1] for x in xs]
    Cin_total = sum(cins)
    Cout = ps[0]["w"].shape[0]
    assert ps[0]["w"].shape[1] == Cin_total

    wbs, sbs, tbs = [], [], []
    for p in ps:
        w_full = jnp.transpose(p["w"], (2, 3, 1, 0))           # (3, 3, Cin_total, Cout)
        rows, off = [], 0
        for ci in cins:                                        # row order matches in-kernel xcat:
            for dx in range(3):                                #   [i0_dx0, i0_dx1, i0_dx2, i1_dx0, ...]
                rows.append(w_full[:, dx, off:off + ci, :])    # (3, ci, Cout)
            off += ci
        wbs.append(jnp.concatenate(rows, axis=1))              # (3, 3*Cin_total, Cout)
        s, t = _fold_bn(p)
        sbs.append(s.reshape(1, Cout))
        tbs.append(t.reshape(1, Cout))
    wp = jnp.stack(wbs, 0).astype(jnp.bfloat16)                # (G, 3, 3*Cin_total, Cout)
    sp = jnp.stack(sbs, 0)                                     # (G, 1, Cout) f32
    tp = jnp.stack(tbs, 0)

    xfs = [x.reshape(G * B, H, W, x.shape[-1]) for x in xs]
    TC = 128 if Cout % 128 == 0 else Cout                      # lane-dense Cout tiles when possible
    nC = Cout // TC
    n_in = len(xs)

    in_specs = (
        [pl.BlockSpec((None, H, W, ci), lambda g, b, c: (g * B + b, 0, 0, 0)) for ci in cins]
        + [pl.BlockSpec((None, 3, 3 * Cin_total, TC), lambda g, b, c: (g, 0, 0, c)),
           pl.BlockSpec((None, 1, TC), lambda g, b, c: (g, 0, c)),
           pl.BlockSpec((None, 1, TC), lambda g, b, c: (g, 0, c))]
    )

    flops = 2 * G * B * H * W * 9 * Cin_total * Cout
    bytes_accessed = (sum(x.size for x in xfs) * 2 + wp.size * 2
                      + (sp.size + tp.size) * 4 + G * B * H * W * Cout * 2)

    out = pl.pallas_call(
        _make_conv3x3_kernel(n_in),
        out_shape=jax.ShapeDtypeStruct((G * B, H, W, Cout), jnp.bfloat16),
        grid=(G, B, nC),
        in_specs=in_specs,
        out_specs=pl.BlockSpec((None, H, W, TC), lambda g, b, c: (g * B + b, 0, 0, c)),
        compiler_params=pltpu.CompilerParams(
            dimension_semantics=("parallel", "parallel", "parallel"),
            vmem_limit_bytes=_vmem_limit_bytes()),
        cost_estimate=pl.CostEstimate(flops=flops, transcendentals=0,
                                      bytes_accessed=bytes_accessed),
    )(*xfs, wp, sp, tp)
    return out.reshape(G, B, H, W, Cout)


# ----------------------------------------------------------------------------
# Parameter init (deterministic, synthetic) and the Ubone forward pass
# ----------------------------------------------------------------------------
def _init_bn(keys, c):
    return {
        "gamma": 1.0 + 0.1 * jax.random.normal(keys[0], (c,), jnp.float32),
        "beta": 0.1 * jax.random.normal(keys[1], (c,), jnp.float32),
        "mean": 0.1 * jax.random.normal(keys[2], (c,), jnp.float32),
        "var": 0.5 + 0.5 * jnp.abs(jax.random.normal(keys[3], (c,), jnp.float32)),
    }


def init_cbr3x3(key, cin, cout):
    ks = jax.random.split(key, 5)
    p = {"w": 0.1 * jax.random.normal(ks[0], (cout, cin, 3, 3), jnp.float32)}
    p.update(_init_bn(ks[1:5], cout))
    return p


def init_deconv(key, cin, cout):
    ks = jax.random.split(key, 5)
    p = {"w": 0.1 * jax.random.normal(ks[0], (cin, cout, 2, 2), jnp.float32)}
    p.update(_init_bn(ks[1:5], cout))
    return p


def init_ubone_params(key, inchannel, channel):
    ks = jax.random.split(key, 6)
    return {
        "deconv": init_deconv(ks[0], inchannel, channel),
        "deconv_e": init_deconv(ks[1], inchannel, channel),
        "convs0": init_cbr3x3(ks[2], 2 * channel, channel),
        "convs1": init_cbr3x3(ks[3], channel, channel),
        "convs_e0": init_cbr3x3(ks[4], 2 * channel, channel),
        "convs_e1": init_cbr3x3(ks[5], channel, channel),
    }


def ubone_forward(x, x_lat, e, e_lat, params):
    """Ubone.forward; all tensors NCHW (PyTorch convention). Returns (x_cur, e_cur) f32."""
    to_nhwc = lambda a: jnp.transpose(a, (0, 2, 3, 1)).astype(jnp.bfloat16)
    skip = jnp.stack([to_nhwc(x), to_nhwc(e)], axis=0)        # (2, B, H, W, C)
    lat = jnp.stack([to_nhwc(x_lat), to_nhwc(e_lat)], axis=0)  # (2, B, H/2, W/2, inC)

    # Both branches fused into each pallas_call via a leading "branch" grid axis.
    up = deconv2x2_bn_relu(lat, [params["deconv"], params["deconv_e"]])       # (2,B,H,W,C)
    cur = conv3x3_bn_relu([skip, up], [params["convs0"], params["convs_e0"]])  # concat fused in-kernel
    cur = conv3x3_bn_relu([cur], [params["convs1"], params["convs_e1"]])

    x_cur = jnp.transpose(cur[0], (0, 3, 1, 2)).astype(jnp.float32)
    e_cur = jnp.transpose(cur[1], (0, 3, 1, 2)).astype(jnp.float32)
    return x_cur, e_cur


# ----------------------------------------------------------------------------
# Pure-JAX f32 reference (for a loose-tolerance correctness check)
# ----------------------------------------------------------------------------
def _ref_deconv(x, p):
    B, Hh, Wh, Cin = x.shape
    Cout = p["w"].shape[1]
    y = jnp.einsum("bhwc,coij->bhiwjo", x, p["w"]).reshape(B, 2 * Hh, 2 * Wh, Cout)
    s, t = _fold_bn(p)
    return jnp.maximum(y * s + t, 0.0)


def _ref_conv(x, p):
    w = jnp.transpose(p["w"], (2, 3, 1, 0))
    y = jax.lax.conv_general_dilated(x, w, (1, 1), "SAME",
                                     dimension_numbers=("NHWC", "HWIO", "NHWC"))
    s, t = _fold_bn(p)
    return jnp.maximum(y * s + t, 0.0)


def _ref_forward(x, x_lat, e, e_lat, params):
    to_nhwc = lambda a: jnp.transpose(a, (0, 2, 3, 1)).astype(jnp.float32)
    xh, eh, xlh, elh = to_nhwc(x), to_nhwc(e), to_nhwc(x_lat), to_nhwc(e_lat)
    x_cur = _ref_conv(jnp.concatenate([xh, _ref_deconv(xlh, params["deconv"])], -1),
                      params["convs0"])
    x_cur = _ref_conv(x_cur, params["convs1"])
    e_cur = _ref_conv(jnp.concatenate([eh, _ref_deconv(elh, params["deconv_e"])], -1),
                      params["convs_e0"])
    e_cur = _ref_conv(e_cur, params["convs_e1"])
    return (jnp.transpose(x_cur, (0, 3, 1, 2)), jnp.transpose(e_cur, (0, 3, 1, 2)))


if __name__ == "__main__":
    key = jax.random.PRNGKey(0)
    k1, k2, k3, k4, kp = jax.random.split(key, 5)
    B, inC, C, H, W = 2, 8, 4, 16, 16
    x = jax.random.normal(k1, (B, C, H, W), jnp.float32)
    e = jax.random.normal(k2, (B, C, H, W), jnp.float32)
    x_lat = jax.random.normal(k3, (B, inC, H // 2, W // 2), jnp.float32)
    e_lat = jax.random.normal(k4, (B, inC, H // 2, W // 2), jnp.float32)
    params = init_ubone_params(kp, inC, C)

    fwd = jax.jit(lambda a, b, c, d: ubone_forward(a, b, c, d, params))
    x_cur, e_cur = fwd(x, x_lat, e, e_lat)
    jax.block_until_ready((x_cur, e_cur))

    assert x_cur.shape == (B, C, H, W) and e_cur.shape == (B, C, H, W)
    assert bool(jnp.all(jnp.isfinite(x_cur))) and bool(jnp.all(jnp.isfinite(e_cur)))

    # Loose-tolerance check vs. the f32 reference (kernel uses bf16 activations/weights).
    xr, er = _ref_forward(x, x_lat, e, e_lat, params)
    rel = lambda a, b: float(jnp.max(jnp.abs(a - b)) / (jnp.max(jnp.abs(b)) + 1e-6))
    assert rel(x_cur, xr) < 0.1, f"x_cur mismatch: rel err {rel(x_cur, xr)}"
    assert rel(e_cur, er) < 0.1, f"e_cur mismatch: rel err {rel(e_cur, er)}"

    print("KERNEL_OK")
</pallas_src>

<mosaic_0001>
module attributes {stable_mosaic.version = 11 : i64} {
  func.func @_deconv2x2_bn_relu_kernel(%arg0: i32, %arg1: i32, %arg2: i32, %arg3: memref<1x8x8x8xbf16, #tpu.memory_space<vmem>>, %arg4: memref<1x8x16xbf16, #tpu.memory_space<vmem>>, %arg5: memref<1x1x16xf32, #tpu.memory_space<vmem>>, %arg6: memref<1x1x16xf32, #tpu.memory_space<vmem>>, %arg7: memref<1x8x2x8x8xbf16, #tpu.memory_space<vmem>>) attributes {dimension_semantics = [#tpu.dimension_semantics<parallel>, #tpu.dimension_semantics<parallel>, #tpu.dimension_semantics<parallel>], iteration_bounds = array<i64: 2, 2, 1>, scalar_prefetch = 0 : i64, scratch_operands = 0 : i64, tpu.core_type = #tpu.core_type<tc>, window_params = [{transform_indices = @transform_0, window_bounds = array<i64: 1, 8, 8, 8>}, {transform_indices = @transform_1, window_bounds = array<i64: 1, 8, 16>}, {transform_indices = @transform_2, window_bounds = array<i64: 1, 1, 16>}, {transform_indices = @transform_3, window_bounds = array<i64: 1, 1, 16>}, {transform_indices = @transform_4, window_bounds = array<i64: 1, 8, 2, 8, 8>}]} {
    %c0 = arith.constant 0 : index
    %c0_0 = arith.constant 0 : index
    %c0_1 = arith.constant 0 : index
    %c0_2 = arith.constant 0 : index
    %0 = vector.load %arg3[%c0, %c0_0, %c0_1, %c0_2] : memref<1x8x8x8xbf16, #tpu.memory_space<vmem>>, vector<1x8x8x8xbf16>
    %1 = vector.shape_cast %0 : vector<1x8x8x8xbf16> to vector<8x8x8xbf16>
    %2 = vector.shape_cast %1 : vector<8x8x8xbf16> to vector<64x8xbf16>
    %c0_3 = arith.constant 0 : index
    %c0_4 = arith.constant 0 : index
    %c0_5 = arith.constant 0 : index
    %3 = vector.load %arg4[%c0_3, %c0_4, %c0_5] : memref<1x8x16xbf16, #tpu.memory_space<vmem>>, vector<1x8x16xbf16>
    %4 = vector.shape_cast %3 : vector<1x8x16xbf16> to vector<8x16xbf16>
    %cst = arith.constant dense<0.000000e+00> : vector<64x16xf32>
    %5 = tpu.matmul %2, %4, %cst {dimension_numbers = #tpu.dot_dimension_numbers<[1], [0], [0], [1], [0, 0, 1, 1], [], []>} : vector<64x8xbf16>, vector<8x16xbf16>, vector<64x16xf32> -> vector<64x16xf32>
    %c0_6 = arith.constant 0 : index
    %c0_7 = arith.constant 0 : index
    %c0_8 = arith.constant 0 : index
    %6 = vector.load %arg5[%c0_6, %c0_7, %c0_8] : memref<1x1x16xf32, #tpu.memory_space<vmem>>, vector<1x1x16xf32>
    %7 = vector.shape_cast %6 : vector<1x1x16xf32> to vector<1x16xf32>
    %8 = vector.broadcast %7 : vector<1x16xf32> to vector<64x16xf32>
    %9 = arith.mulf %5, %8 : vector<64x16xf32>
    %c0_9 = arith.constant 0 : index
    %c0_10 = arith.constant 0 : index
    %c0_11 = arith.constant 0 : index
    %10 = vector.load %arg6[%c0_9, %c0_10, %c0_11] : memref<1x1x16xf32, #tpu.memory_space<vmem>>, vector<1x1x16xf32>
    %11 = vector.shape_cast %10 : vector<1x1x16xf32> to vector<1x16xf32>
    %12 = vector.broadcast %11 : vector<1x16xf32> to vector<64x16xf32>
    %13 = arith.addf %9, %12 : vector<64x16xf32>
    %cst_12 = arith.constant 0.000000e+00 : f32
    %14 = vector.broadcast %cst_12 : f32 to vector<64x16xf32>
    %15 = arith.maximumf %13, %14 : vector<64x16xf32>
    %16 = arith.truncf %15 : vector<64x16xf32> to vector<64x16xbf16>
    %17 = vector.extract_strided_slice %16 {offsets = [0, 0], sizes = [64, 8], strides = [1, 1]} : vector<64x16xbf16> to vector<64x8xbf16>
    %18 = vector.shape_cast %17 : vector<64x8xbf16> to vector<8x8x8xbf16>
    %c0_13 = arith.constant 0 : index
    %c0_14 = arith.constant 0 : index
    %c0_15 = arith.constant 0 : index
    %c0_16 = arith.constant 0 : index
    %c0_17 = arith.constant 0 : index
    %19 = vector.load %arg7[%c0_13, %c0_14, %c0_15, %c0_16, %c0_17] : memref<1x8x2x8x8xbf16, #tpu.memory_space<vmem>>, vector<1x8x1x8x8xbf16>
    %20 = vector.shape_cast %19 : vector<1x8x1x8x8xbf16> to vector<8x8x8xbf16>
    %21 = vector.shape_cast %18 : vector<8x8x8xbf16> to vector<1x8x1x8x8xbf16>
    tpu.vector_store %arg7[%c0_13, %c0_14, %c0_15, %c0_16, %c0_17], %21 {strides = array<i32>} : memref<1x8x2x8x8xbf16, #tpu.memory_space<vmem>>, vector<1x8x1x8x8xbf16>,
    %22 = vector.extract_strided_slice %16 {offsets = [0, 8], sizes = [64, 8], strides = [1, 1]} : vector<64x16xbf16> to vector<64x8xbf16>
    %23 = vector.shape_cast %22 : vector<64x8xbf16> to vector<8x8x8xbf16>
    %c0_18 = arith.constant 0 : index
    %c0_19 = arith.constant 0 : index
    %c1 = arith.constant 1 : index
    %c0_20 = arith.constant 0 : index
    %c0_21 = arith.constant 0 : index
    %24 = vector.load %arg7[%c0_18, %c0_19, %c1, %c0_20, %c0_21] : memref<1x8x2x8x8xbf16, #tpu.memory_space<vmem>>, vector<1x8x1x8x8xbf16>
    %25 = vector.shape_cast %24 : vector<1x8x1x8x8xbf16> to vector<8x8x8xbf16>
    %26 = vector.shape_cast %23 : vector<8x8x8xbf16> to vector<1x8x1x8x8xbf16>
    tpu.vector_store %arg7[%c0_18, %c0_19, %c1, %c0_20, %c0_21], %26 {strides = array<i32>} : memref<1x8x2x8x8xbf16, #tpu.memory_space<vmem>>, vector<1x8x1x8x8xbf16>,
    return
  }
  func.func @transform_0(%arg0: i32, %arg1: i32, %arg2: i32) -> (i32, i32, i32, i32) {
    %c2_i32 = arith.constant 2 : i32
    %0 = arith.muli %arg0, %c2_i32 : i32
    %1 = arith.addi %0, %arg1 : i32
    %c0_i32 = arith.constant 0 : i32
    %c0_i32_0 = arith.constant 0 : i32
    %c0_i32_1 = arith.constant 0 : i32
    return %1, %arg2, %c0_i32, %c0_i32_0 : i32, i32, i32, i32
  }
  func.func @transform_1(%arg0: i32, %arg1: i32, %arg2: i32) -> (i32, i32, i32) {
    %c0_i32 = arith.constant 0 : i32
    %c0_i32_0 = arith.constant 0 : i32
    %c0_i32_1 = arith.constant 0 : i32
    return %arg0, %c0_i32, %c0_i32_0 : i32, i32, i32
  }
  func.func @transform_2(%arg0: i32, %arg1: i32, %arg2: i32) -> (i32, i32, i32) {
    %c0_i32 = arith.constant 0 : i32
    %c0_i32_0 = arith.constant 0 : i32
    %c0_i32_1 = arith.constant 0 : i32
    return %arg0, %c0_i32, %c0_i32_0 : i32, i32, i32
  }
  func.func @transform_3(%arg0: i32, %arg1: i32, %arg2: i32) -> (i32, i32, i32) {
    %c0_i32 = arith.constant 0 : i32
    %c0_i32_0 = arith.constant 0 : i32
    %c0_i32_1 = arith.constant 0 : i32
    return %arg0, %c0_i32, %c0_i32_0 : i32, i32, i32
  }
  func.func @transform_4(%arg0: i32, %arg1: i32, %arg2: i32) -> (i32, i32, i32, i32, i32) {
    %c2_i32 = arith.constant 2 : i32
    %0 = arith.muli %arg0, %c2_i32 : i32
    %1 = arith.addi %0, %arg1 : i32
    %c0_i32 = arith.constant 0 : i32
    %c0_i32_0 = arith.constant 0 : i32
    %c0_i32_1 = arith.constant 0 : i32
    %c0_i32_2 = arith.constant 0 : i32
    return %1, %arg2, %c0_i32, %c0_i32_0, %c0_i32_1 : i32, i32, i32, i32, i32
  }
}

module attributes {stable_mosaic.version = 11 : i64} {
  func.func @kernel(%arg0: i32, %arg1: i32, %arg2: i32, %arg3: memref<1x16x16x4xbf16, #tpu.memory_space<vmem>>, %arg4: memref<1x16x16x4xbf16, #tpu.memory_space<vmem>>, %arg5: memref<1x3x24x4xbf16, #tpu.memory_space<vmem>>, %arg6: memref<1x1x4xf32, #tpu.memory_space<vmem>>, %arg7: memref<1x1x4xf32, #tpu.memory_space<vmem>>, %arg8: memref<1x16x16x4xbf16, #tpu.memory_space<vmem>>) attributes {dimension_semantics = [#tpu.dimension_semantics<parallel>, #tpu.dimension_semantics<parallel>, #tpu.dimension_semantics<parallel>], iteration_bounds = array<i64: 2, 2, 1>, scalar_prefetch = 0 : i64, scratch_operands = 0 : i64, tpu.core_type = #tpu.core_type<tc>, window_params = [{transform_indices = @transform_0, window_bounds = array<i64: 1, 16, 16, 4>}, {transform_indices = @transform_1, window_bounds = array<i64: 1, 16, 16, 4>}, {transform_indices = @transform_2, window_bounds = array<i64: 1, 3, 24, 4>}, {transform_indices = @transform_3, window_bounds = array<i64: 1, 1, 4>}, {transform_indices = @transform_4, window_bounds = array<i64: 1, 1, 4>}, {transform_indices = @transform_5, window_bounds = array<i64: 1, 16, 16, 4>}]} {
    %c0 = arith.constant 0 : index
    %c0_0 = arith.constant 0 : index
    %c0_1 = arith.constant 0 : index
    %c0_2 = arith.constant 0 : index
    %0 = vector.load %arg3[%c0, %c0_0, %c0_1, %c0_2] : memref<1x16x16x4xbf16, #tpu.memory_space<vmem>>, vector<1x16x16x4xbf16>
    %1 = vector.shape_cast %0 : vector<1x16x16x4xbf16> to vector<16x16x4xbf16>
    %cst = arith.constant 0.000000e+00 : bf16
    %2 = vector.broadcast %cst : bf16 to vector<16x1x4xbf16>
    %3 = tpu.concatenate %2, %1, %2 in 1 : vector<16x1x4xbf16>, vector<16x16x4xbf16>, vector<16x1x4xbf16> -> vector<16x18x4xbf16>
    %cst_3 = arith.constant 0.000000e+00 : bf16
    %4 = vector.broadcast %cst_3 : bf16 to vector<1x18x4xbf16>
    %5 = tpu.concatenate %4, %3, %4 in 0 : vector<1x18x4xbf16>, vector<16x18x4xbf16>, vector<1x18x4xbf16> -> vector<18x18x4xbf16>
    %c0_4 = arith.constant 0 : index
    %c0_5 = arith.constant 0 : index
    %c0_6 = arith.constant 0 : index
    %c0_7 = arith.constant 0 : index
    %6 = vector.load %arg4[%c0_4, %c0_5, %c0_6, %c0_7] : memref<1x16x16x4xbf16, #tpu.memory_space<vmem>>, vector<1x16x16x4xbf16>
    %7 = vector.shape_cast %6 : vector<1x16x16x4xbf16> to vector<16x16x4xbf16>
    %cst_8 = arith.constant 0.000000e+00 : bf16
    %8 = vector.broadcast %cst_8 : bf16 to vector<16x1x4xbf16>
    %9 = tpu.concatenate %8, %7, %8 in 1 : vector<16x1x4xbf16>, vector<16x16x4xbf16>, vector<16x1x4xbf16> -> vector<16x18x4xbf16>
    %cst_9 = arith.constant 0.000000e+00 : bf16
    %10 = vector.broadcast %cst_9 : bf16 to vector<1x18x4xbf16>
    %11 = tpu.concatenate %10, %9, %10 in 0 : vector<1x18x4xbf16>, vector<16x18x4xbf16>, vector<1x18x4xbf16> -> vector<18x18x4xbf16>
    %cst_10 = arith.constant 0.000000e+00 : f32
    %12 = vector.broadcast %cst_10 : f32 to vector<256x4xf32>
    %13 = vector.extract_strided_slice %5 {offsets = [0, 0, 0], sizes = [16, 18, 4], strides = [1, 1, 1]} : vector<18x18x4xbf16> to vector<16x18x4xbf16>
    %14 = vector.extract_strided_slice %13 {offsets = [0, 0, 0], sizes = [16, 16, 4], strides = [1, 1, 1]} : vector<16x18x4xbf16> to vector<16x16x4xbf16>
    %15 = vector.extract_strided_slice %13 {offsets = [0, 1, 0], sizes = [16, 16, 4], strides = [1, 1, 1]} : vector<16x18x4xbf16> to vector<16x16x4xbf16>
    %16 = vector.extract_strided_slice %13 {offsets = [0, 2, 0], sizes = [16, 16, 4], strides = [1, 1, 1]} : vector<16x18x4xbf16> to vector<16x16x4xbf16>
    %17 = vector.extract_strided_slice %11 {offsets = [0, 0, 0], sizes = [16, 18, 4], strides = [1, 1, 1]} : vector<18x18x4xbf16> to vector<16x18x4xbf16>
    %18 = vector.extract_strided_slice %17 {offsets = [0, 0, 0], sizes = [16, 16, 4], strides = [1, 1, 1]} : vector<16x18x4xbf16> to vector<16x16x4xbf16>
    %19 = vector.extract_strided_slice %17 {offsets = [0, 1, 0], sizes = [16, 16, 4], strides = [1, 1, 1]} : vector<16x18x4xbf16> to vector<16x16x4xbf16>
    %20 = vector.extract_strided_slice %17 {offsets = [0, 2, 0], sizes = [16, 16, 4], strides = [1, 1, 1]} : vector<16x18x4xbf16> to vector<16x16x4xbf16>
    %21 = tpu.concatenate %14, %15, %16, %18, %19, %20 in 2 : vector<16x16x4xbf16>, vector<16x16x4xbf16>, vector<16x16x4xbf16>, vector<16x16x4xbf16>, vector<16x16x4xbf16>, vector<16x16x4xbf16> -> vector<16x16x24xbf16>
    %22 = vector.shape_cast %21 : vector<16x16x24xbf16> to vector<256x24xbf16>
    %c0_11 = arith.constant 0 : index
    %c0_12 = arith.constant 0 : index
    %c0_13 = arith.constant 0 : index
    %c0_14 = arith.constant 0 : index
    %23 = vector.load %arg5[%c0_11, %c0_12, %c0_13, %c0_14] : memref<1x3x24x4xbf16, #tpu.memory_space<vmem>>, vector<1x1x24x4xbf16>
    %24 = vector.shape_cast %23 : vector<1x1x24x4xbf16> to vector<24x4xbf16>
    %cst_15 = arith.constant dense<0.000000e+00> : vector<256x4xf32>
    %25 = tpu.matmul %22, %24, %cst_15 {dimension_numbers = #tpu.dot_dimension_numbers<[1], [0], [0], [1], [0, 0, 1, 1], [], []>} : vector<256x24xbf16>, vector<24x4xbf16>, vector<256x4xf32> -> vector<256x4xf32>
    %26 = arith.addf %12, %25 : vector<256x4xf32>
    %27 = vector.extract_strided_slice %5 {offsets = [1, 0, 0], sizes = [16, 18, 4], strides = [1, 1, 1]} : vector<18x18x4xbf16> to vector<16x18x4xbf16>
    %28 = vector.extract_strided_slice %27 {offsets = [0, 0, 0], sizes = [16, 16, 4], strides = [1, 1, 1]} : vector<16x18x4xbf16> to vector<16x16x4xbf16>
    %29 = vector.extract_strided_slice %27 {offsets = [0, 1, 0], sizes = [16, 16, 4], strides = [1, 1, 1]} : vector<16x18x4xbf16> to vector<16x16x4xbf16>
    %30 = vector.extract_strided_slice %27 {offsets = [0, 2, 0], sizes = [16, 16, 4], strides = [1, 1, 1]} : vector<16x18x4xbf16> to vector<16x16x4xbf16>
    %31 = vector.extract_strided_slice %11 {offsets = [1, 0, 0], sizes = [16, 18, 4], strides = [1, 1, 1]} : vector<18x18x4xbf16> to vector<16x18x4xbf16>
    %32 = vector.extract_strided_slice %31 {offsets = [0, 0, 0], sizes = [16, 16, 4], strides = [1, 1, 1]} : vector<16x18x4xbf16> to vector<16x16x4xbf16>
    %33 = vector.extract_strided_slice %31 {offsets = [0, 1, 0], sizes = [16, 16, 4], strides = [1, 1, 1]} : vector<16x18x4xbf16> to vector<16x16x4xbf16>
    %34 = vector.extract_strided_slice %31 {offsets = [0, 2, 0], sizes = [16, 16, 4], strides = [1, 1, 1]} : vector<16x18x4xbf16> to vector<16x16x4xbf16>
    %35 = tpu.concatenate %28, %29, %30, %32, %33, %34 in 2 : vector<16x16x4xbf16>, vector<16x16x4xbf16>, vector<16x16x4xbf16>, vector<16x16x4xbf16>, vector<16x16x4xbf16>, vector<16x16x4xbf16> -> vector<16x16x24xbf16>
    %36 = vector.shape_cast %35 : vector<16x16x24xbf16> to vector<256x24xbf16>
    %c0_16 = arith.constant 0 : index
    %c1 = arith.constant 1 : index
    %c0_17 = arith.constant 0 : index
    %c0_18 = arith.constant 0 : index
    %37 = vector.load %arg5[%c0_16, %c1, %c0_17, %c0_18] : memref<1x3x24x4xbf16, #tpu.memory_space<vmem>>, vector<1x1x24x4xbf16>
    %38 = vector.shape_cast %37 : vector<1x1x24x4xbf16> to vector<24x4xbf16>
    %cst_19 = arith.constant dense<0.000000e+00> : vector<256x4xf32>
    %39 = tpu.matmul %36, %38, %cst_19 {dimension_numbers = #tpu.dot_dimension_numbers<[1], [0], [0], [1], [0, 0, 1, 1], [], []>} : vector<256x24xbf16>, vector<24x4xbf16>, vector<256x4xf32> -> vector<256x4xf32>
    %40 = arith.addf %26, %39 : vector<256x4xf32>
    %41 = vector.extract_strided_slice %5 {offsets = [2, 0, 0], sizes = [16, 18, 4], strides = [1, 1, 1]} : vector<18x18x4xbf16> to vector<16x18x4xbf16>
    %42 = vector.extract_strided_slice %41 {offsets = [0, 0, 0], sizes = [16, 16, 4], strides = [1, 1, 1]} : vector<16x18x4xbf16> to vector<16x16x4xbf16>
    %43 = vector.extract_strided_slice %41 {offsets = [0, 1, 0], sizes = [16, 16, 4], strides = [1, 1, 1]} : vector<16x18x4xbf16> to vector<16x16x4xbf16>
    %44 = vector.extract_strided_slice %41 {offsets = [0, 2, 0], sizes = [16, 16, 4], strides = [1, 1, 1]} : vector<16x18x4xbf16> to vector<16x16x4xbf16>
    %45 = vector.extract_strided_slice %11 {offsets = [2, 0, 0], sizes = [16, 18, 4], strides = [1, 1, 1]} : vector<18x18x4xbf16> to vector<16x18x4xbf16>
    %46 = vector.extract_strided_slice %45 {offsets = [0, 0, 0], sizes = [16, 16, 4], strides = [1, 1, 1]} : vector<16x18x4xbf16> to vector<16x16x4xbf16>
    %47 = vector.extract_strided_slice %45 {offsets = [0, 1, 0], sizes = [16, 16, 4], strides = [1, 1, 1]} : vector<16x18x4xbf16> to vector<16x16x4xbf16>
    %48 = vector.extract_strided_slice %45 {offsets = [0, 2, 0], sizes = [16, 16, 4], strides = [1, 1, 1]} : vector<16x18x4xbf16> to vector<16x16x4xbf16>
    %49 = tpu.concatenate %42, %43, %44, %46, %47, %48 in 2 : vector<16x16x4xbf16>, vector<16x16x4xbf16>, vector<16x16x4xbf16>, vector<16x16x4xbf16>, vector<16x16x4xbf16>, vector<16x16x4xbf16> -> vector<16x16x24xbf16>
    %50 = vector.shape_cast %49 : vector<16x16x24xbf16> to vector<256x24xbf16>
    %c0_20 = arith.constant 0 : index
    %c2 = arith.constant 2 : index
    %c0_21 = arith.constant 0 : index
    %c0_22 = arith.constant 0 : index
    %51 = vector.load %arg5[%c0_20, %c2, %c0_21, %c0_22] : memref<1x3x24x4xbf16, #tpu.memory_space<vmem>>, vector<1x1x24x4xbf16>
    %52 = vector.shape_cast %51 : vector<1x1x24x4xbf16> to vector<24x4xbf16>
    %cst_23 = arith.constant dense<0.000000e+00> : vector<256x4xf32>
    %53 = tpu.matmul %50, %52, %cst_23 {dimension_numbers = #tpu.dot_dimension_numbers<[1], [0], [0], [1], [0, 0, 1, 1], [], []>} : vector<256x24xbf16>, vector<24x4xbf16>, vector<256x4xf32> -> vector<256x4xf32>
    %54 = arith.addf %40, %53 : vector<256x4xf32>
    %c0_24 = arith.constant 0 : index
    %c0_25 = arith.constant 0 : index
    %c0_26 = arith.constant 0 : index
    %55 = vector.load %arg6[%c0_24, %c0_25, %c0_26] : memref<1x1x4xf32, #tpu.memory_space<vmem>>, vector<1x1x4xf32>
    %56 = vector.shape_cast %55 : vector<1x1x4xf32> to vector<1x4xf32>
    %57 = vector.broadcast %56 : vector<1x4xf32> to vector<256x4xf32>
    %58 = arith.mulf %54, %57 : vector<256x4xf32>
    %c0_27 = arith.constant 0 : index
    %c0_28 = arith.constant 0 : index
    %c0_29 = arith.constant 0 : index
    %59 = vector.load %arg7[%c0_27, %c0_28, %c0_29] : memref<1x1x4xf32, #tpu.memory_space<vmem>>, vector<1x1x4xf32>
    %60 = vector.shape_cast %59 : vector<1x1x4xf32> to vector<1x4xf32>
    %61 = vector.broadcast %60 : vector<1x4xf32> to vector<256x4xf32>
    %62 = arith.addf %58, %61 : vector<256x4xf32>
    %cst_30 = arith.constant 0.000000e+00 : f32
    %63 = vector.broadcast %cst_30 : f32 to vector<256x4xf32>
    %64 = arith.maximumf %62, %63 : vector<256x4xf32>
    %65 = vector.shape_cast %64 : vector<256x4xf32> to vector<16x16x4xf32>
    %66 = arith.truncf %65 : vector<16x16x4xf32> to vector<16x16x4xbf16>
    %c0_31 = arith.constant 0 : index
    %c0_32 = arith.constant 0 : index
    %c0_33 = arith.constant 0 : index
    %c0_34 = arith.constant 0 : index
    %67 = vector.load %arg8[%c0_31, %c0_32, %c0_33, %c0_34] : memref<1x16x16x4xbf16, #tpu.memory_space<vmem>>, vector<1x16x16x4xbf16>
    %68 = vector.shape_cast %67 : vector<1x16x16x4xbf16> to vector<16x16x4xbf16>
    %69 = vector.shape_cast %66 : vector<16x16x4xbf16> to vector<1x16x16x4xbf16>
    tpu.vector_store %arg8[%c0_31, %c0_32, %c0_33, %c0_34], %69 {strides = array<i32>} : memref<1x16x16x4xbf16, #tpu.memory_space<vmem>>, vector<1x16x16x4xbf16>,
    return
  }
  func.func @transform_0(%arg0: i32, %arg1: i32, %arg2: i32) -> (i32, i32, i32, i32) {
    %c2_i32 = arith.constant 2 : i32
    %0 = arith.muli %arg0, %c2_i32 : i32
    %1 = arith.addi %0, %arg1 : i32
    %c0_i32 = arith.constant 0 : i32
    %c0_i32_0 = arith.constant 0 : i32
    %c0_i32_1 = arith.constant 0 : i32
    %c0_i32_2 = arith.constant 0 : i32
    return %1, %c0_i32, %c0_i32_0, %c0_i32_1 : i32, i32, i32, i32
  }
  func.func @transform_1(%arg0: i32, %arg1: i32, %arg2: i32) -> (i32, i32, i32, i32) {
    %c2_i32 = arith.constant 2 : i32
    %0 = arith.muli %arg0, %c2_i32 : i32
    %1 = arith.addi %0, %arg1 : i32
    %c0_i32 = arith.constant 0 : i32
    %c0_i32_0 = arith.constant 0 : i32
    %c0_i32_1 = arith.constant 0 : i32
    %c0_i32_2 = arith.constant 0 : i32
    return %1, %c0_i32, %c0_i32_0, %c0_i32_1 : i32, i32, i32, i32
  }
  func.func @transform_2(%arg0: i32, %arg1: i32, %arg2: i32) -> (i32, i32, i32, i32) {
    %c0_i32 = arith.constant 0 : i32
    %c0_i32_0 = arith.constant 0 : i32
    %c0_i32_1 = arith.constant 0 : i32
    return %arg0, %c0_i32, %c0_i32_0, %arg2 : i32, i32, i32, i32
  }
  func.func @transform_3(%arg0: i32, %arg1: i32, %arg2: i32) -> (i32, i32, i32) {
    %c0_i32 = arith.constant 0 : i32
    %c0_i32_0 = arith.constant 0 : i32
    return %arg0, %c0_i32, %arg2 : i32, i32, i32
  }
  func.func @transform_4(%arg0: i32, %arg1: i32, %arg2: i32) -> (i32, i32, i32) {
    %c0_i32 = arith.constant 0 : i32
    %c0_i32_0 = arith.constant 0 : i32
    return %arg0, %c0_i32, %arg2 : i32, i32, i32
  }
  func.func @transform_5(%arg0: i32, %arg1: i32, %arg2: i32) -> (i32, i32, i32, i32) {
    %c2_i32 = arith.constant 2 : i32
    %0 = arith.muli %arg0, %c2_i32 : i32
    %1 = arith.addi %0, %arg1 : i32
    %c0_i32 = arith.constant 0 : i32
    %c0_i32_0 = arith.constant 0 : i32
    %c0_i32_1 = arith.constant 0 : i32
    return %1, %c0_i32, %c0_i32_0, %arg2 : i32, i32, i32, i32
  }
}

module attributes {stable_mosaic.version = 11 : i64} {
  func.func @kernel(%arg0: i32, %arg1: i32, %arg2: i32, %arg3: memref<1x16x16x4xbf16, #tpu.memory_space<vmem>>, %arg4: memref<1x3x12x4xbf16, #tpu.memory_space<vmem>>, %arg5: memref<1x1x4xf32, #tpu.memory_space<vmem>>, %arg6: memref<1x1x4xf32, #tpu.memory_space<vmem>>, %arg7: memref<1x16x16x4xbf16, #tpu.memory_space<vmem>>) attributes {dimension_semantics = [#tpu.dimension_semantics<parallel>, #tpu.dimension_semantics<parallel>, #tpu.dimension_semantics<parallel>], iteration_bounds = array<i64: 2, 2, 1>, scalar_prefetch = 0 : i64, scratch_operands = 0 : i64, tpu.core_type = #tpu.core_type<tc>, window_params = [{transform_indices = @transform_0, window_bounds = array<i64: 1, 16, 16, 4>}, {transform_indices = @transform_1, window_bounds = array<i64: 1, 3, 12, 4>}, {transform_indices = @transform_2, window_bounds = array<i64: 1, 1, 4>}, {transform_indices = @transform_3, window_bounds = array<i64: 1, 1, 4>}, {transform_indices = @transform_4, window_bounds = array<i64: 1, 16, 16, 4>}]} {
    %c0 = arith.constant 0 : index
    %c0_0 = arith.constant 0 : index
    %c0_1 = arith.constant 0 : index
    %c0_2 = arith.constant 0 : index
    %0 = vector.load %arg3[%c0, %c0_0, %c0_1, %c0_2] : memref<1x16x16x4xbf16, #tpu.memory_space<vmem>>, vector<1x16x16x4xbf16>
    %1 = vector.shape_cast %0 : vector<1x16x16x4xbf16> to vector<16x16x4xbf16>
    %cst = arith.constant 0.000000e+00 : bf16
    %2 = vector.broadcast %cst : bf16 to vector<16x1x4xbf16>
    %3 = tpu.concatenate %2, %1, %2 in 1 : vector<16x1x4xbf16>, vector<16x16x4xbf16>, vector<16x1x4xbf16> -> vector<16x18x4xbf16>
    %cst_3 = arith.constant 0.000000e+00 : bf16
    %4 = vector.broadcast %cst_3 : bf16 to vector<1x18x4xbf16>
    %5 = tpu.concatenate %4, %3, %4 in 0 : vector<1x18x4xbf16>, vector<16x18x4xbf16>, vector<1x18x4xbf16> -> vector<18x18x4xbf16>
    %cst_4 = arith.constant 0.000000e+00 : f32
    %6 = vector.broadcast %cst_4 : f32 to vector<256x4xf32>
    %7 = vector.extract_strided_slice %5 {offsets = [0, 0, 0], sizes = [16, 18, 4], strides = [1, 1, 1]} : vector<18x18x4xbf16> to vector<16x18x4xbf16>
    %8 = vector.extract_strided_slice %7 {offsets = [0, 0, 0], sizes = [16, 16, 4], strides = [1, 1, 1]} : vector<16x18x4xbf16> to vector<16x16x4xbf16>
    %9 = vector.extract_strided_slice %7 {offsets = [0, 1, 0], sizes = [16, 16, 4], strides = [1, 1, 1]} : vector<16x18x4xbf16> to vector<16x16x4xbf16>
    %10 = vector.extract_strided_slice %7 {offsets = [0, 2, 0], sizes = [16, 16, 4], strides = [1, 1, 1]} : vector<16x18x4xbf16> to vector<16x16x4xbf16>
    %11 = tpu.concatenate %8, %9, %10 in 2 : vector<16x16x4xbf16>, vector<16x16x4xbf16>, vector<16x16x4xbf16> -> vector<16x16x12xbf16>
    %12 = vector.shape_cast %11 : vector<16x16x12xbf16> to vector<256x12xbf16>
    %c0_5 = arith.constant 0 : index
    %c0_6 = arith.constant 0 : index
    %c0_7 = arith.constant 0 : index
    %c0_8 = arith.constant 0 : index
    %13 = vector.load %arg4[%c0_5, %c0_6, %c0_7, %c0_8] : memref<1x3x12x4xbf16, #tpu.memory_space<vmem>>, vector<1x1x12x4xbf16>
    %14 = vector.shape_cast %13 : vector<1x1x12x4xbf16> to vector<12x4xbf16>
    %cst_9 = arith.constant dense<0.000000e+00> : vector<256x4xf32>
    %15 = tpu.matmul %12, %14, %cst_9 {dimension_numbers = #tpu.dot_dimension_numbers<[1], [0], [0], [1], [0, 0, 1, 1], [], []>} : vector<256x12xbf16>, vector<12x4xbf16>, vector<256x4xf32> -> vector<256x4xf32>
    %16 = arith.addf %6, %15 : vector<256x4xf32>
    %17 = vector.extract_strided_slice %5 {offsets = [1, 0, 0], sizes = [16, 18, 4], strides = [1, 1, 1]} : vector<18x18x4xbf16> to vector<16x18x4xbf16>
    %18 = vector.extract_strided_slice %17 {offsets = [0, 0, 0], sizes = [16, 16, 4], strides = [1, 1, 1]} : vector<16x18x4xbf16> to vector<16x16x4xbf16>
    %19 = vector.extract_strided_slice %17 {offsets = [0, 1, 0], sizes = [16, 16, 4], strides = [1, 1, 1]} : vector<16x18x4xbf16> to vector<16x16x4xbf16>
    %20 = vector.extract_strided_slice %17 {offsets = [0, 2, 0], sizes = [16, 16, 4], strides = [1, 1, 1]} : vector<16x18x4xbf16> to vector<16x16x4xbf16>
    %21 = tpu.concatenate %18, %19, %20 in 2 : vector<16x16x4xbf16>, vector<16x16x4xbf16>, vector<16x16x4xbf16> -> vector<16x16x12xbf16>
    %22 = vector.shape_cast %21 : vector<16x16x12xbf16> to vector<256x12xbf16>
    %c0_10 = arith.constant 0 : index
    %c1 = arith.constant 1 : index
    %c0_11 = arith.constant 0 : index
    %c0_12 = arith.constant 0 : index
    %23 = vector.load %arg4[%c0_10, %c1, %c0_11, %c0_12] : memref<1x3x12x4xbf16, #tpu.memory_space<vmem>>, vector<1x1x12x4xbf16>
    %24 = vector.shape_cast %23 : vector<1x1x12x4xbf16> to vector<12x4xbf16>
    %cst_13 = arith.constant dense<0.000000e+00> : vector<256x4xf32>
    %25 = tpu.matmul %22, %24, %cst_13 {dimension_numbers = #tpu.dot_dimension_numbers<[1], [0], [0], [1], [0, 0, 1, 1], [], []>} : vector<256x12xbf16>, vector<12x4xbf16>, vector<256x4xf32> -> vector<256x4xf32>
    %26 = arith.addf %16, %25 : vector<256x4xf32>
    %27 = vector.extract_strided_slice %5 {offsets = [2, 0, 0], sizes = [16, 18, 4], strides = [1, 1, 1]} : vector<18x18x4xbf16> to vector<16x18x4xbf16>
    %28 = vector.extract_strided_slice %27 {offsets = [0, 0, 0], sizes = [16, 16, 4], strides = [1, 1, 1]} : vector<16x18x4xbf16> to vector<16x16x4xbf16>
    %29 = vector.extract_strided_slice %27 {offsets = [0, 1, 0], sizes = [16, 16, 4], strides = [1, 1, 1]} : vector<16x18x4xbf16> to vector<16x16x4xbf16>
    %30 = vector.extract_strided_slice %27 {offsets = [0, 2, 0], sizes = [16, 16, 4], strides = [1, 1, 1]} : vector<16x18x4xbf16> to vector<16x16x4xbf16>
    %31 = tpu.concatenate %28, %29, %30 in 2 : vector<16x16x4xbf16>, vector<16x16x4xbf16>, vector<16x16x4xbf16> -> vector<16x16x12xbf16>
    %32 = vector.shape_cast %31 : vector<16x16x12xbf16> to vector<256x12xbf16>
    %c0_14 = arith.constant 0 : index
    %c2 = arith.constant 2 : index
    %c0_15 = arith.constant 0 : index
    %c0_16 = arith.constant 0 : index
    %33 = vector.load %arg4[%c0_14, %c2, %c0_15, %c0_16] : memref<1x3x12x4xbf16, #tpu.memory_space<vmem>>, vector<1x1x12x4xbf16>
    %34 = vector.shape_cast %33 : vector<1x1x12x4xbf16> to vector<12x4xbf16>
    %cst_17 = arith.constant dense<0.000000e+00> : vector<256x4xf32>
    %35 = tpu.matmul %32, %34, %cst_17 {dimension_numbers = #tpu.dot_dimension_numbers<[1], [0], [0], [1], [0, 0, 1, 1], [], []>} : vector<256x12xbf16>, vector<12x4xbf16>, vector<256x4xf32> -> vector<256x4xf32>
    %36 = arith.addf %26, %35 : vector<256x4xf32>
    %c0_18 = arith.constant 0 : index
    %c0_19 = arith.constant 0 : index
    %c0_20 = arith.constant 0 : index
    %37 = vector.load %arg5[%c0_18, %c0_19, %c0_20] : memref<1x1x4xf32, #tpu.memory_space<vmem>>, vector<1x1x4xf32>
    %38 = vector.shape_cast %37 : vector<1x1x4xf32> to vector<1x4xf32>
    %39 = vector.broadcast %38 : vector<1x4xf32> to vector<256x4xf32>
    %40 = arith.mulf %36, %39 : vector<256x4xf32>
    %c0_21 = arith.constant 0 : index
    %c0_22 = arith.constant 0 : index
    %c0_23 = arith.constant 0 : index
    %41 = vector.load %arg6[%c0_21, %c0_22, %c0_23] : memref<1x1x4xf32, #tpu.memory_space<vmem>>, vector<1x1x4xf32>
    %42 = vector.shape_cast %41 : vector<1x1x4xf32> to vector<1x4xf32>
    %43 = vector.broadcast %42 : vector<1x4xf32> to vector<256x4xf32>
    %44 = arith.addf %40, %43 : vector<256x4xf32>
    %cst_24 = arith.constant 0.000000e+00 : f32
    %45 = vector.broadcast %cst_24 : f32 to vector<256x4xf32>
    %46 = arith.maximumf %44, %45 : vector<256x4xf32>
    %47 = vector.shape_cast %46 : vector<256x4xf32> to vector<16x16x4xf32>
    %48 = arith.truncf %47 : vector<16x16x4xf32> to vector<16x16x4xbf16>
    %c0_25 = arith.constant 0 : index
    %c0_26 = arith.constant 0 : index
    %c0_27 = arith.constant 0 : index
    %c0_28 = arith.constant 0 : index
    %49 = vector.load %arg7[%c0_25, %c0_26, %c0_27, %c0_28] : memref<1x16x16x4xbf16, #tpu.memory_space<vmem>>, vector<1x16x16x4xbf16>
    %50 = vector.shape_cast %49 : vector<1x16x16x4xbf16> to vector<16x16x4xbf16>
    %51 = vector.shape_cast %48 : vector<16x16x4xbf16> to vector<1x16x16x4xbf16>
    tpu.vector_store %arg7[%c0_25, %c0_26, %c0_27, %c0_28], %51 {strides = array<i32>} : memref<1x16x16x4xbf16, #tpu.memory_space<vmem>>, vector<1x16x16x4xbf16>,
    return
  }
  func.func @transform_0(%arg0: i32, %arg1: i32, %arg2: i32) -> (i32, i32, i32, i32) {
    %c2_i32 = arith.constant 2 : i32
    %0 = arith.muli %arg0, %c2_i32 : i32
    %1 = arith.addi %0, %arg1 : i32
    %c0_i32 = arith.constant 0 : i32
    %c0_i32_0 = arith.constant 0 : i32
    %c0_i32_1 = arith.constant 0 : i32
    %c0_i32_2 = arith.constant 0 : i32
    return %1, %c0_i32, %c0_i32_0, %c0_i32_1 : i32, i32, i32, i32
  }
  func.func @transform_1(%arg0: i32, %arg1: i32, %arg2: i32) -> (i32, i32, i32, i32) {
    %c0_i32 = arith.constant 0 : i32
    %c0_i32_0 = arith.constant 0 : i32
    %c0_i32_1 = arith.constant 0 : i32
    return %arg0, %c0_i32, %c0_i32_0, %arg2 : i32, i32, i32, i32
  }
  func.func @transform_2(%arg0: i32, %arg1: i32, %arg2: i32) -> (i32, i32, i32) {
    %c0_i32 = arith.constant 0 : i32
    %c0_i32_0 = arith.constant 0 : i32
    return %arg0, %c0_i32, %arg2 : i32, i32, i32
  }
  func.func @transform_3(%arg0: i32, %arg1: i32, %arg2: i32) -> (i32, i32, i32) {
    %c0_i32 = arith.constant 0 : i32
    %c0_i32_0 = arith.constant 0 : i32
    return %arg0, %c0_i32, %arg2 : i32, i32, i32
  }
  func.func @transform_4(%arg0: i32, %arg1: i32, %arg2: i32) -> (i32, i32, i32, i32) {
    %c2_i32 = arith.constant 2 : i32
    %0 = arith.muli %arg0, %c2_i32 : i32
    %1 = arith.addi %0, %arg1 : i32
    %c0_i32 = arith.constant 0 : i32
    %c0_i32_0 = arith.constant 0 : i32
    %c0_i32_1 = arith.constant 0 : i32
    return %1, %c0_i32, %c0_i32_0, %arg2 : i32, i32, i32, i32
  }
}

</mosaic_0001>

<bundles_post_ra>
// kernel: tile.18
= control target key start
LH: loop header
LB: loop body
LE: loop exit
PB: predicated region body
PF: predicated region fallthrough
CT: control target
= control target key end

     0   :  { %s22_s0 = inlined_call_operand.vmem [shape: f32[4], index: 0, kind: input, shape index: {}]   ;;  %s23_s1 = inlined_call_operand.vmem [shape: f32[4,4], index: 1, kind: output, shape index: {}]  }
   0x1   :  { %v4_v0 = vld [vmem:[%s22_s0] ss:$0 sm:$0xff] }
   0x2   :  { %5 = vst [vmem:[%s23_s1] sm:$0xf] %v4_v0 }

// kernel: tile.28
= control target key start
LH: loop header
LB: loop body
LE: loop exit
PB: predicated region body
PF: predicated region fallthrough
CT: control target
= control target key end

     0   :  { %vm7_vm0 = vcmask 31744   ;;  %s37_s8 = smov 4   ;;  %s38_s9 = smov 8   ;;  %vm13_vm1 = vcmask 130144   ;;  %vm19_vm2 = vcmask 97344   ;;  %vm25_vm3 = vcmask 64544   ;;  %s55_s0 = inlined_call_operand.vmem [shape: f32[4,4], index: 0, kind: input, shape index: {}]   ;;  %s56_s1 = inlined_call_operand.vmem [shape: f32[1,1,16], index: 1, kind: output, shape index: {}]  }
   0x1   :  { %v4_v0 = vld [vmem:[%s55_s0] sm:$0xf]  ;;  %s36_s0 = smov 12  }
   0x2   :  { %5 = vst [vmem:[#allocation1] sm:$0xf] %v4_v0 }
   0x9   :  { %v10_v1 = vld [vmem:[#allocation1 + $0x3] sm:$0x1]   ;;  %v22_v2 = vld [vmem:[#allocation1 + $0x1] sm:$0x1]   ;;  %v6_v3 = vld [vmem:[#allocation1] sm:$0x1]  }
   0xa   :  { %11 = vrot.lane.b32.xlu0 %v10_v1, %s36_s0  ;;  %23 = vrot.lane.b32.xlu1 %v22_v2, %s37_s8  ;;  %v16_v4 = vld [vmem:[#allocation1 + $0x2] sm:$0x1]   ;;  %8 = vst.msk [vmem:[#allocation0] sm:$0x1] %vm7_vm0, %v6_v3  }
   0xe   :  { %17 = vrot.lane.b32.xlu0 %v16_v4, %s38_s9 }
  0x7c   :  { %v12_v5 = vpop.permute.xlu0 %11   ;;  %v24_v6 = vpop.permute.xlu1 %23  }
  0x7d   :  { %14 = vst.msk [vmem:[#allocation0] sm:$0x1] %vm13_vm1, %v12_v5  }
  0x80   :  { %v18_v7 = vpop.permute.xlu0 %17  }
  0x81   :  { %20 = vst.msk [vmem:[#allocation0] sm:$0x1] %vm19_vm2, %v18_v7  }
  0x82   :  { %26 = vst.msk [vmem:[#allocation0] sm:$0x1] %vm25_vm3, %v24_v6  }
  0x89   :  { %v30_v8 = vld [vmem:[#allocation0] sm:$0x1] }
  0x8a   :  { %32 = vst [vmem:[%s56_s1] sm:$0x1] %v30_v8 }

// kernel: _lambda_.3
= control target key start
LH: loop header
LB: loop body
LE: loop exit
PB: predicated region body
PF: predicated region fallthrough
CT: control target
= control target key end

     0   :  { %s858_s15 = smov 0   ;;  %s860_s16 = smov 0   ;;  %s956_s0 = inlined_call_operand.vmem [shape: bf16[4,8,8,8], index: 0, kind: input, shape index: {}]   ;;  %s957_s1 = inlined_call_operand.vmem [shape: bf16[2,8,16], index: 1, kind: input, shape index: {}]   ;;  %s958_s2 = inlined_call_operand.vmem [shape: f32[2,1,16], index: 2, kind: input, shape index: {}]   ;;  %s959_s3 = inlined_call_operand.vmem [shape: f32[2,1,16], index: 3, kind: input, shape index: {}]   ;;  %s960_s4 = inlined_call_operand.vmem [shape: bf16[4,8,2,8,8], index: 4, kind: output, shape index: {}]  }
   0x1   :  { %s862_s17 = smov 0   ;;  %s864_s18 = smov 0  }
   0x2   :  { %s866_s19 = smov 0  }
   0x3 LB: > { %s29_s20 = sadd.s32 1, %s822_s17  ;;  %s33_s21 = sadd.s32 1, %s826_s18  ;;  %s830_s19 = sphi %s866_s19, %s14_s19   ;;  %s826_s18 = sphi %s864_s18, %s964_s18   ;;  %s822_s17 = sphi %s862_s17, %s963_s17   ;;  %s818_s16 = sphi %s860_s16, %s962_s16   ;;  %s814_s15 = sphi %s858_s15, %s961_s15  }
   0x4   : > { %p31_p0 = scmp.ge.s32.totalorder %s29_s20, 2  ;;  %p682_p1 = scmp.ge.s32.totalorder %s830_s19, 1 }
   0x5   : > { %p227_p2 = scmp.lt.s32.totalorder %s830_s19, 5 }
   0x6   : > { %s966_s20 = smov (%p31_p0, %s29_s20), 0  ;;  %s968_s21 = smov (!%p31_p0, %s33_s21), %s826_s18 }
   0x7   : > { %p228_p3 = pnand %p682_p1, %p227_p2  ;;  %p35_p4 = scmp.ge.s32.totalorder %s968_s21, 2 }
   0x8   : > { %p290_p5 = scmp.lt.s32.totalorder (!%p228_p3), %s818_s16, 1  ;;  %s683_s22 = sshll.u32 (!%p228_p3), %s818_s16, 1  ;;  %vm358_vm0 = vcmask (!%p228_p3), 1043456   ;;  %vm345_vm1 = vcmask (!%p228_p3), 64512   ;;  %vm497_vm2 = vcmask (!%p228_p3), 60416  }
   0x9   : > { %s970_s21 = smov (%p35_p4, %s968_s21), 0  ;;  %231 = sbr.rel (%p228_p3) target bundleno = 373 (0x175), region = 36 }
   0xa   : > { %s277_s23 = sadd.s32 (!%p228_p3), %s814_s15, %s683_s22 }
   0xb   : > { %p279_p6 = scmp.lt.s32.totalorder (!%p228_p3), %s277_s23, 3 }
  0x10   : > { %s972_s16 = smov (!%p290_p5, %s818_s16), 1  ;;  %s974_s23 = smov (!%p279_p6, %s277_s23), 3 }
  0x11   : > { %s686_s24 = sshll.u32 %s972_s16, 2  ;;  %s718_s28 = sshll.u32 %s974_s23, 5 }
  0x12   : > { %s293_s27 = scalar_lea.vmem %s957_s1, %s686_s24  ;;  %s286_s5 = scalar_lea.vmem %s956_s0, %s718_s28 }
  0x13   : > { %v324_v0 = vld [vmem:[%s293_s27] sm:$0xf]  ;;  %v789_v3 = vld [vmem:[%s286_s5 + $0x8] sm:$0xff]   ;;  %v790_v4 = vld [vmem:[%s286_s5 + $0x10] sm:$0xff]   ;;  %s296_s8 = scalar_lea.vmem %s958_s2, %s972_s16  ;;  %s299_s11 = scalar_lea.vmem %s959_s3, %s972_s16 }
  0x14   : > { %745 = vmatprep.subr.msk.bf16.mxu0 %vm358_vm0, %v324_v0  ;;  %746 = vmatprep.subr.msk.bf16.mxu1 %vm358_vm0, %v324_v0  ;;  %v360_v1 = vsel %vm358_vm0, %v324_v0, 0  ;;  %v788_v2 = vld [vmem:[%s286_s5] sm:$0xff]   ;;  %v791_v5 = vld [vmem:[%s286_s5 + $0x18] sm:$0xff]   ;;  %s719_s12 = sshll.u32 %s974_s23, 6  ;;  %s832_s16 = smov 120  }
  0x15   : > { %734 = vmatpush3.bf16.msra.mxu0 %v360_v1  ;;  %744 = vmatpush3.bf16.msra.mxu1 %v360_v1  ;;  %v698_v6 = vld [vmem:[%s296_s8] ss:$0 sm:$0xff]  ;;  %s907_s15 = scalar_lea.vmem %s960_s4, %s719_s12 }
  0x16   : > { %735 = vmatprep.mubr.msk.bf16.mxu0 %vm345_vm1, %v788_v2  ;;  %739 = vmatprep.mubr.msk.bf16.mxu1 %vm345_vm1, %v790_v4  ;;  %v699_v7 = vld [vmem:[%s299_s11] ss:$0 sm:$0xff] }
  0x18   : > { %736 = vmatmul.mubr.msk.bf16.vlgmr.msra.gmra.mrb[0].mxu0 %vm345_vm1, %v789_v3  ;;  %740 = vmatmul.mubr.msk.bf16.vlgmr.msra.gmra.mrb[0].mxu1 %vm345_vm1, %v791_v5 }
  0xeb   : > { %v737_v8 = vpop.f32.mrb[0].mxu0  ;;  %v741_v12 = vpop.f32.mrb[0].mxu1 }
  0xec   : > { %v436_v9 = vmul.f32 %v737_v8, %v698_v6  ;;  %v396_v10 = vpop.f32.mrb[1].mxu0  ;;  %v440_v14 = vmul.f32 %v741_v12, %v698_v6  ;;  %v412_v16 = vpop.f32.mrb[1].mxu1 }
  0xed   : > { %v434_v11 = vmul.f32 %v698_v6, %v396_v10  ;;  %v738_v13 = vpop.f32.mrb[2].mxu0  ;;  %v438_v19 = vmul.f32 %v698_v6, %v412_v16  ;;  %v742_v21 = vpop.f32.mrb[2].mxu1 }
  0xee   : > { %v437_v15 = vmul.f32 %v738_v13, %v698_v6  ;;  %v399_v17 = vpop.f32.mrb[3].mxu0  ;;  %v451_v18 = vadd.f32 %v699_v7, %v436_v9  ;;  %v455_v23 = vadd.f32 %v699_v7, %v440_v14  ;;  %v441_v25 = vmul.f32 %v742_v21, %v698_v6  ;;  %v415_v26 = vpop.f32.mrb[3].mxu1 }
  0xef   : > { %v435_v20 = vmul.f32 %v698_v6, %v399_v17  ;;  %v449_v22 = vadd.f32 %v699_v7, %v434_v11  ;;  %v453_v28 = vadd.f32 %v699_v7, %v438_v19  ;;  %v439_v30 = vmul.f32 %v698_v6, %v415_v26 }
  0xf0   : > { %v452_v24 = vadd.f32 %v699_v7, %v437_v15  ;;  %v459_v27 = vmax.f32 %v451_v18, 0.0  ;;  %v463_v32 = vmax.f32 %v455_v23, 0.0  ;;  %v456_v34 = vadd.f32 %v699_v7, %v441_v25 }
  0xf1   : > { %v450_v29 = vadd.f32 %v699_v7, %v435_v20  ;;  %v457_v31 = vmax.f32 %v449_v22, 0.0  ;;  %v461_v36 = vmax.f32 %v453_v28, 0.0  ;;  %v454_v38 = vadd.f32 %v699_v7, %v439_v30 }
  0xf2   : > { %v460_v33 = vmax.f32 %v452_v24, 0.0  ;;  %v722_v35 = vpack.c.bf16 %v459_v27, %v459_v27  ;;  %v726_v40 = vpack.c.bf16 %v463_v32, %v463_v32  ;;  %v464_v42 = vmax.f32 %v456_v34, 0.0 }
  0xf3   : > { %v458_v37 = vmax.f32 %v450_v29, 0.0  ;;  %v720_v39 = vpack.c.bf16 %v457_v31, %v457_v31  ;;  %v724_v43 = vpack.c.bf16 %v461_v36, %v461_v36  ;;  %v462_v45 = vmax.f32 %v454_v38, 0.0 }
  0xf4   : > { %v723_v41 = vpack.c.bf16 %v460_v33, %v460_v33  ;;  %510 = vrot.lane.b32.xlu1 %v722_v35, %s832_s16  ;;  %500 = vst.msk [vmem:[%s907_s15 + $0x10] sm:$0xf] %vm497_vm2, %v722_v35  ;;  %504 = vst.msk [vmem:[%s907_s15 + $0x30] sm:$0xf] %vm497_vm2, %v726_v40  ;;  %v727_v46 = vpack.c.bf16 %v464_v42, %v464_v42 }
  0xf5   : > { %v721_v44 = vpack.c.bf16 %v458_v37, %v458_v37  ;;  %506 = vrot.lane.b32.xlu0 %v720_v39, %s832_s16  ;;  %498 = vst.msk [vmem:[%s907_s15] sm:$0xf] %vm497_vm2, %v720_v39  ;;  %502 = vst.msk [vmem:[%s907_s15 + $0x20] sm:$0xf] %vm497_vm2, %v724_v43  ;;  %v725_v47 = vpack.c.bf16 %v462_v45, %v462_v45 }
  0xf6   : > { %501 = vst.msk [vmem:[%s907_s15 + $0x18] sm:$0xf] %vm497_vm2, %v723_v41  ;;  %505 = vst.msk [vmem:[%s907_s15 + $0x38] sm:$0xf] %vm497_vm2, %v727_v46 }
  0xf7   : > { %499 = vst.msk [vmem:[%s907_s15 + $0x8] sm:$0xf] %vm497_vm2, %v721_v44  ;;  %503 = vst.msk [vmem:[%s907_s15 + $0x28] sm:$0xf] %vm497_vm2, %v725_v47 }
  0xf8   : > { %512 = vrot.lane.b32.xlu1 %v723_v41, %s832_s16 }
  0xf9   : > { %514 = vrot.lane.b32.xlu0 %v724_v43, %s832_s16 }
  0xfc   : > { %516 = vrot.lane.b32.xlu1 %v725_v47, %s832_s16 }
  0xfd   : > { %508 = vrot.lane.b32.xlu0 %v721_v44, %s832_s16 }
 0x100   : > { %520 = vrot.lane.b32.xlu1 %v727_v46, %s832_s16 }
 0x101   : > { %518 = vrot.lane.b32.xlu0 %v726_v40, %s832_s16 }
 0x166   : > { %v511_v48 = vpop.permute.xlu1 %510 }
 0x167   : > { %710 = vst.msk [vmem:[%s907_s15 + $0x14] sm:$0xf] %vm497_vm2, %v511_v48  ;;  %v507_v49 = vpop.permute.xlu0 %506 }
 0x168   : > { %708 = vst.msk [vmem:[%s907_s15 + $0x4] sm:$0xf] %vm497_vm2, %v507_v49 }
 0x16a   : > { %v513_v50 = vpop.permute.xlu1 %512 }
 0x16b   : > { %711 = vst.msk [vmem:[%s907_s15 + $0x1c] sm:$0xf] %vm497_vm2, %v513_v50  ;;  %v515_v51 = vpop.permute.xlu0 %514 }
 0x16c   : > { %712 = vst.msk [vmem:[%s907_s15 + $0x24] sm:$0xf] %vm497_vm2, %v515_v51 }
 0x16e   : > { %v517_v52 = vpop.permute.xlu1 %516 }
 0x16f   : > { %713 = vst.msk [vmem:[%s907_s15 + $0x2c] sm:$0xf] %vm497_vm2, %v517_v52  ;;  %v509_v53 = vpop.permute.xlu0 %508 }
 0x170   : > { %709 = vst.msk [vmem:[%s907_s15 + $0xc] sm:$0xf] %vm497_vm2, %v509_v53 }
 0x172   : > { %v521_v54 = vpop.permute.xlu1 %520 }
 0x173   : > { %715 = vst.msk [vmem:[%s907_s15 + $0x3c] sm:$0xf] %vm497_vm2, %v521_v54  ;;  %v519_v55 = vpop.permute.xlu0 %518 }
 0x174   : > { %714 = vst.msk [vmem:[%s907_s15 + $0x34] sm:$0xf] %vm497_vm2, %v519_v55 }
 0x175 PF: > { %s14_s19 = sadd.s32 1, %s830_s19   ;;  %s961_s15 = smov %s822_s17 }
 0x176   : > { %p11_p7 = scmp.ge.s32.totalorder %s14_s19, 6   ;;  %s962_s16 = smov %s826_s18 }
 0x177   : > { %s963_s17 = smov %s966_s20  ;;  %s964_s18 = smov %s970_s21 }
 0x178   :  { %13 = sbr.rel (!%p11_p7) target bundleno = 3 (0x3), region = 76 }

// kernel: _lambda_.5
= control target key start
LH: loop header
LB: loop body
LE: loop exit
PB: predicated region body
PF: predicated region fallthrough
CT: control target
= control target key end

     0   :  { %s2542_s15 = smov 0   ;;  %s2544_s16 = smov 0   ;;  %s3125_s0 = inlined_call_operand.vmem [shape: bf16[4,16,16,4], index: 0, kind: input, shape index: {}]   ;;  %s3126_s1 = inlined_call_operand.vmem [shape: bf16[2,3,12,4], index: 1, kind: input, shape index: {}]   ;;  %s3127_s2 = inlined_call_operand.vmem [shape: f32[2,1,4], index: 2, kind: input, shape index: {}]   ;;  %s3128_s3 = inlined_call_operand.vmem [shape: f32[2,1,4], index: 3, kind: input, shape index: {}]   ;;  %s3129_s4 = inlined_call_operand.vmem [shape: bf16[4,16,16,4], index: 4, kind: output, shape index: {}]  }
   0x1   :  { %s2546_s17 = smov 0   ;;  %s2548_s18 = smov 0  }
   0x2   :  { %s2550_s19 = smov 0  }
   0x3 LB: > { %s29_s20 = sadd.s32 1, %s2504_s17  ;;  %s33_s21 = sadd.s32 1, %s2508_s18  ;;  %s2512_s19 = sphi %s2550_s19, %s14_s19   ;;  %s2508_s18 = sphi %s2548_s18, %s3135_s18   ;;  %s2504_s17 = sphi %s2546_s17, %s3134_s17   ;;  %s2500_s16 = sphi %s2544_s16, %s3133_s16   ;;  %s2496_s15 = sphi %s2542_s15, %s3132_s15  }
   0x4   : > { %p31_p0 = scmp.ge.s32.totalorder %s29_s20, 2  ;;  %p2039_p1 = scmp.ge.s32.totalorder %s2512_s19, 1 }
   0x5   : > { %p236_p2 = scmp.lt.s32.totalorder %s2512_s19, 5 }
   0x6   : > { %s3137_s20 = smov (%p31_p0, %s29_s20), 0  ;;  %s3139_s21 = smov (!%p31_p0, %s33_s21), %s2508_s18 }
   0x7   : > { %p237_p3 = pnand %p2039_p1, %p236_p2  ;;  %p35_p4 = scmp.ge.s32.totalorder %s3139_s21, 2 }
   0x8   : > { %v2514_v0 = vmov (!%p237_p3), 0   ;;  %s2040_s22 = sshll.u32 (!%p237_p3), %s2500_s16, 1  ;;  %s2515_s24 = smov (!%p237_p3), 8   ;;  %vm588_vm0 = vsmask.f32 (!%p237_p3), 256  ;;  %vm587_vm1 = vcmask (!%p237_p3), 1040384  }
   0x9   : > { %s3141_s21 = smov (%p35_p4, %s3139_s21), 0  ;;  %240 = sbr.rel (%p237_p3) target bundleno = 470 (0x1d6), region = 36 }
   0xa   : > { %v628_v1 = vrot.slane (!%p237_p3), %v2514_v0, 1  ;;  %s290_s23 = sadd.s32 (!%p237_p3), %s2496_s15, %s2040_s22  ;;  %s2516_s25 = smov (!%p237_p3), 4   ;;  %vm622_vm2 = vsmask.f32 (!%p237_p3), 7424  ;;  %vm2591_vm3 = vmand (!%p237_p3), %vm587_vm1, %vm588_vm0  ;;  %vm874_vm4 = vcmask (!%p237_p3), 1046528   ;;  %vm1088_vm5 = vcmask (!%p237_p3), 1045504  }
   0xb   : > { %p291_p5 = scmp.lt.s32.totalorder (!%p237_p3), %s290_s23, 3  ;;  %p298_p6 = scmp.lt.s32.totalorder (!%p237_p3), %s2500_s16, 1  ;;  %vm954_vm6 = vcmask (!%p237_p3), 31744   ;;  %vm987_vm7 = vcmask (!%p237_p3), 64512   ;;  %vm1055_vm8 = vcmask (!%p237_p3), 97280   ;;  %vm1866_vm9 = vcmask (!%p237_p3), 27648  }
   0xc   : > { %922 = vrot.lane.b32.xlu1 (!%p237_p3), %v628_v1, %s2515_s24  ;;  %811 = vrot.lane.b32.xlu0 (!%p237_p3), %v628_v1, %s2516_s25 }
  0x10   : > { %s3143_s23 = smov (!%p291_p5, %s290_s23), 3  ;;  %s3145_s16 = smov (!%p298_p6, %s2500_s16), 1 }
  0x11   : > { %s2154_s26 = sshll.u32 %s3143_s23, 7  ;;  %s2411_s30 = smul.u32 24, %s3145_s16 }
  0x12   : > { %s2585_s29 = scalar_lea.vmem %s3125_s0, %s2154_s26  ;;  %s311_s10 = scalar_lea.vmem %s3127_s2, %s3145_s16 }
  0x13   : > { %v2455_v2 = vld [vmem:[%s2585_s29 + $0x8] sm:$0xff]   ;;  %v2456_v3 = vld [vmem:[%s2585_s29] sm:$0xff]   ;;  %v2457_v8 = vld [vmem:[%s2585_s29 + $0x18] sm:$0xff]   ;;  %s2674_s7 = scalar_lea.vmem %s3126_s1, %s2411_s30  ;;  %s317_s13 = scalar_lea.vmem %s3128_s3, %s3145_s16 }
  0x14   : > { %v451_v4 = vshrl.u32 %v2455_v2, 16  ;;  %v454_v5 = vshll.u32 %v2455_v2, 16  ;;  %v444_v6 = vshrl.u32 %v2456_v3, 16  ;;  %v447_v7 = vshll.u32 %v2456_v3, 16  ;;  %v2458_v9 = vld [vmem:[%s2585_s29 + $0x10] sm:$0xff]   ;;  %v2459_v22 = vld [vmem:[%s2585_s29 + $0x28] sm:$0xff]   ;;  %s2979_s16 = scalar_lea.vmem %s3129_s4, %s2154_s26 }
  0x15   : > { %v465_v13 = vshrl.u32 %v2457_v8, 16  ;;  %v468_v16 = vshll.u32 %v2457_v8, 16  ;;  %v458_v17 = vshrl.u32 %v2458_v9, 16  ;;  %v461_v21 = vshll.u32 %v2458_v9, 16  ;;  %v2460_v51 = vld [vmem:[%s2585_s29 + $0x20] sm:$0xff]   ;;  %v2461_v8 = vld [vmem:[%s2585_s29 + $0x38] sm:$0xff]  }
  0x16   : > { %v453_v10 = vrot.slane %v451_v4, 7  ;;  %v446_v12 = vrot.slane %v444_v6, 7  ;;  %v479_v46 = vshrl.u32 %v2459_v22, 16  ;;  %v482_v63 = vshll.u32 %v2459_v22, 16 }
  0x17   : > { %v467_v26 = vrot.slane %v465_v13, 7  ;;  %v460_v42 = vrot.slane %v458_v17, 7  ;;  %v475_v13 = vshll.u32 %v2460_v51, 16 }
  0x18   : > { %v456_v14 = vor.u32 %v454_v5, %v453_v10  ;;  %v607_v15 = vsel %vm2591_vm3, %v453_v10, 0  ;;  %v449_v19 = vor.u32 %v447_v7, %v446_v12  ;;  %v606_v20 = vsel %vm2591_vm3, %v446_v12, 0 }
  0x19   : > { %v651_v18 = vshll.u32 %v607_v15, 16  ;;  %v639_v24 = vshll.u32 %v606_v20, 16  ;;  %v881_v25 = vrot.slane %v607_v15, 1  ;;  %v878_v30 = vrot.slane %v606_v20, 1 }
  0x1a   : > { %v2602_v23 = vsel %vm2591_vm3, 0, %v456_v14  ;;  %v2608_v29 = vsel %vm2591_vm3, 0, %v449_v19  ;;  %v470_v37 = vor.u32 %v468_v16, %v467_v26  ;;  %v609_v38 = vsel %vm2591_vm3, %v467_v26, 0 }
  0x1b   : > { %v644_v27 = vshrl.u32 %v2602_v23, 16  ;;  %v646_v28 = vshll.u32 %v2602_v23, 16  ;;  %v653_v31 = vrot.slane %v651_v18, 1  ;;  %v632_v32 = vshrl.u32 %v2608_v29, 16 }
  0x1c   : > { %v634_v33 = vshll.u32 %v2608_v29, 16  ;;  %v880_v34 = vrot.slane %v2602_v23, 1  ;;  %v877_v36 = vrot.slane %v2608_v29, 1  ;;  %v641_v40 = vrot.slane %v639_v24, 1 }
  0x1d   : > { %v648_v35 = vrot.slane %v646_v28, 1  ;;  %v675_v41 = vshll.u32 %v609_v38, 16  ;;  %v2619_v45 = vsel %vm2591_vm3, 0, %v470_v37  ;;  %v463_v53 = vor.u32 %v461_v21, %v460_v42 }
  0x1e   : > { %v636_v39 = vrot.slane %v634_v33, 1  ;;  %v882_v44 = vsel %vm874_vm4, %v880_v34, %v881_v25  ;;  %v879_v48 = vsel %vm874_vm4, %v877_v36, %v878_v30  ;;  %v668_v49 = vshrl.u32 %v2619_v45, 16 }
  0x1f   : > { %v649_v43 = vor.u32 %v648_v35, %v644_v27  ;;  %v670_v50 = vshll.u32 %v2619_v45, 16  ;;  %v608_v54 = vsel %vm2591_vm3, %v460_v42, 0  ;;  %v887_v55 = vrot.slane %v609_v38, 1  ;;  %v2462_v27 = vld [vmem:[%s2585_s29 + $0x30] sm:$0xff]  }
  0x20   : > { %v637_v47 = vor.u32 %v636_v39, %v632_v32  ;;  %v677_v58 = vrot.slane %v675_v41, 1  ;;  %v663_v59 = vshll.u32 %v608_v54, 16  ;;  %v2634_v60 = vsel %vm2591_vm3, 0, %v463_v53 }
  0x21   : > { %v654_v52 = vsel %vm622_vm2, %v649_v43, %v653_v31  ;;  %v672_v57 = vrot.slane %v670_v50, 1  ;;  %v886_v61 = vrot.slane %v2619_v45, 1  ;;  %v481_v62 = vrot.slane %v479_v46, 7  ;;  %v2463_v46 = vld [vmem:[%s2585_s29 + $0x48] sm:$0xff]  }
  0x22   : > { %815 = vrot.lane.b32.xlu1 %v654_v52, %s2516_s25  ;;  %v642_v56 = vsel %vm622_vm2, %v637_v47, %v641_v40  ;;  %v656_v1 = vshrl.u32 %v2634_v60, 16  ;;  %v658_v2 = vshll.u32 %v2634_v60, 16  ;;  %v884_v3 = vrot.slane %v608_v54, 1 }
  0x23   : > { %813 = vrot.lane.b32.xlu0 %v642_v56, %s2516_s25  ;;  %v673_v0 = vor.u32 %v672_v57, %v668_v49  ;;  %v883_v4 = vrot.slane %v2634_v60, 1  ;;  %v484_v5 = vor.u32 %v482_v63, %v481_v62  ;;  %v611_v6 = vsel %vm2591_vm3, %v481_v62, 0 }
  0x24   : > { %v472_v7 = vshrl.u32 %v2460_v51, 16  ;;  %v660_v9 = vrot.slane %v658_v2, 1  ;;  %v665_v10 = vrot.slane %v663_v59, 1  ;;  %v699_v12 = vshll.u32 %v611_v6, 16 }
  0x25   : > { %v678_v14 = vsel %vm622_vm2, %v673_v0, %v677_v58  ;;  %v888_v15 = vsel %vm874_vm4, %v886_v61, %v887_v55  ;;  %v2654_v16 = vsel %vm2591_vm3, 0, %v484_v5  ;;  %v885_v19 = vsel %vm874_vm4, %v883_v4, %v884_v3  ;;  %v2464_v0 = vld [vmem:[%s2585_s29 + $0x40] sm:$0xff]  }
  0x26   : > { %926 = vrot.lane.b32.xlu1 %v882_v44, %s2515_s24  ;;  %v474_v17 = vrot.slane %v472_v7, 7  ;;  %v661_v18 = vor.u32 %v660_v9, %v656_v1  ;;  %v692_v20 = vshrl.u32 %v2654_v16, 16  ;;  %v694_v21 = vshll.u32 %v2654_v16, 16 }
  0x27   : > { %924 = vrot.lane.b32.xlu0 %v879_v48, %s2515_s24  ;;  %v893_v25 = vrot.slane %v611_v6, 1  ;;  %v493_v26 = vshrl.u32 %v2461_v8, 16  ;;  %v701_v31 = vrot.slane %v699_v12, 1  ;;  %v892_v34 = vrot.slane %v2654_v16, 1 }
  0x28   : > { %v477_v22 = vor.u32 %v475_v13, %v474_v17  ;;  %v610_v24 = vsel %vm2591_vm3, %v474_v17, 0  ;;  %v666_v28 = vsel %vm622_vm2, %v661_v18, %v665_v10  ;;  %v696_v30 = vrot.slane %v694_v21, 1 }
  0x29   : > { %v687_v32 = vshll.u32 %v610_v24, 16  ;;  %v495_v35 = vrot.slane %v493_v26, 7  ;;  %v496_v36 = vshll.u32 %v2461_v8, 16  ;;  %v890_v40 = vrot.slane %v610_v24, 1 }
  0x2a   : > { %819 = vrot.lane.b32.xlu1 %v678_v14, %s2516_s25  ;;  %v2668_v33 = vsel %vm2591_vm3, 0, %v477_v22  ;;  %v697_v37 = vor.u32 %v696_v30, %v692_v20  ;;  %v486_v44 = vshrl.u32 %v2462_v27, 16  ;;  %v489_v50 = vshll.u32 %v2462_v27, 16 }
  0x2b   : > { %817 = vrot.lane.b32.xlu0 %v666_v28, %s2516_s25  ;;  %v680_v38 = vshrl.u32 %v2668_v33, 16  ;;  %v682_v39 = vshll.u32 %v2668_v33, 16  ;;  %v889_v41 = vrot.slane %v2668_v33, 1  ;;  %v498_v42 = vor.u32 %v496_v36, %v495_v35 }
  0x2c   : > { %v613_v43 = vsel %vm2591_vm3, %v495_v35, 0  ;;  %v689_v48 = vrot.slane %v687_v32, 1  ;;  %v702_v51 = vsel %vm622_vm2, %v697_v37, %v701_v31  ;;  %v894_v52 = vsel %vm874_vm4, %v892_v34, %v893_v25 }
  0x2d   : > { %v684_v47 = vrot.slane %v682_v39, 1  ;;  %v723_v49 = vshll.u32 %v613_v43, 16  ;;  %v2688_v53 = vsel %vm2591_vm3, 0, %v498_v42  ;;  %v488_v54 = vrot.slane %v486_v44, 7  ;;  %v2466_v39 = vld [vmem:[%s2585_s29 + $0x50] sm:$0xff]  }
  0x2e   : > { %930 = vrot.lane.b32.xlu1 %v888_v15, %s2515_s24  ;;  %v891_v56 = vsel %vm874_vm4, %v889_v41, %v890_v40  ;;  %v716_v57 = vshrl.u32 %v2688_v53, 16  ;;  %v718_v58 = vshll.u32 %v2688_v53, 16  ;;  %v899_v62 = vrot.slane %v613_v43, 1 }
  0x2f   : > { %928 = vrot.lane.b32.xlu0 %v885_v19, %s2515_s24  ;;  %v685_v55 = vor.u32 %v684_v47, %v680_v38  ;;  %v491_v59 = vor.u32 %v489_v50, %v488_v54  ;;  %v612_v61 = vsel %vm2591_vm3, %v488_v54, 0  ;;  %v507_v63 = vshrl.u32 %v2463_v46, 16  ;;  %v2465_v19 = vld [vmem:[%s2585_s29 + $0x58] sm:$0xff]  }
  0x30   : > { %v720_v2 = vrot.slane %v718_v58, 1  ;;  %v725_v3 = vrot.slane %v723_v49, 1  ;;  %v711_v4 = vshll.u32 %v612_v61, 16  ;;  %v898_v6 = vrot.slane %v2688_v53, 1  ;;  %v2467_v58 = vld [vmem:[%s2585_s29 + $0x68] sm:$0xff]  }
  0x31   : > { %v690_v1 = vsel %vm622_vm2, %v685_v55, %v689_v48  ;;  %v2701_v5 = vsel %vm2591_vm3, 0, %v491_v59  ;;  %v509_v7 = vrot.slane %v507_v63, 7  ;;  %v510_v8 = vshll.u32 %v2463_v46, 16 }
  0x32   : > { %823 = vrot.lane.b32.xlu1 %v702_v51, %s2516_s25  ;;  %v721_v9 = vor.u32 %v720_v2, %v716_v57  ;;  %v704_v10 = vshrl.u32 %v2701_v5, 16  ;;  %v706_v12 = vshll.u32 %v2701_v5, 16  ;;  %v896_v13 = vrot.slane %v612_v61, 1 }
  0x33   : > { %821 = vrot.lane.b32.xlu0 %v690_v1, %s2516_s25  ;;  %v895_v14 = vrot.slane %v2701_v5, 1  ;;  %v512_v15 = vor.u32 %v510_v8, %v509_v7  ;;  %v615_v17 = vsel %vm2591_vm3, %v509_v7, 0  ;;  %v500_v18 = vshrl.u32 %v2464_v0, 16 }
  0x34   : > { %v708_v20 = vrot.slane %v706_v12, 1  ;;  %v713_v21 = vrot.slane %v711_v4, 1  ;;  %v747_v22 = vshll.u32 %v615_v17, 16  ;;  %v503_v24 = vshll.u32 %v2464_v0, 16 }
  0x35   : > { %v726_v25 = vsel %vm622_vm2, %v721_v9, %v725_v3  ;;  %v900_v26 = vsel %vm874_vm4, %v898_v6, %v899_v62  ;;  %v2716_v27 = vsel %vm2591_vm3, 0, %v512_v15  ;;  %v502_v28 = vrot.slane %v500_v18, 7 }
  0x36   : > { %934 = vrot.lane.b32.xlu1 %v894_v52, %s2515_s24  ;;  %v709_v30 = vor.u32 %v708_v20, %v704_v10  ;;  %v897_v31 = vsel %vm874_vm4, %v895_v14, %v896_v13  ;;  %v740_v32 = vshrl.u32 %v2716_v27, 16  ;;  %v742_v34 = vshll.u32 %v2716_v27, 16  ;;  %v2468_v14 = vld [vmem:[%s2585_s29 + $0x60] sm:$0xff]  }
  0x37   : > { %932 = vrot.lane.b32.xlu0 %v891_v56, %s2515_s24  ;;  %v505_v35 = vor.u32 %v503_v24, %v502_v28  ;;  %v614_v36 = vsel %vm2591_vm3, %v502_v28, 0  ;;  %v905_v37 = vrot.slane %v615_v17, 1  ;;  %v521_v38 = vshrl.u32 %v2465_v19, 16 }
  0x38   : > { %v714_v40 = vsel %vm622_vm2, %v709_v30, %v713_v21  ;;  %v744_v41 = vrot.slane %v742_v34, 1  ;;  %v749_v42 = vrot.slane %v747_v22, 1  ;;  %v735_v43 = vshll.u32 %v614_v36, 16 }
  0x39   : > { %v2729_v44 = vsel %vm2591_vm3, 0, %v505_v35  ;;  %v904_v46 = vrot.slane %v2716_v27, 1  ;;  %v523_v47 = vrot.slane %v521_v38, 7  ;;  %v524_v48 = vshll.u32 %v2465_v19, 16 }
  0x3a   : > { %827 = vrot.lane.b32.xlu1 %v726_v25, %s2516_s25  ;;  %v745_v49 = vor.u32 %v744_v41, %v740_v32  ;;  %v728_v50 = vshrl.u32 %v2729_v44, 16  ;;  %v730_v51 = vshll.u32 %v2729_v44, 16  ;;  %v902_v52 = vrot.slane %v614_v36, 1  ;;  %v2469_v36 = vld [vmem:[%s2585_s29 + $0x70] sm:$0xff]  }
  0x3b   : > { %825 = vrot.lane.b32.xlu0 %v714_v40, %s2516_s25  ;;  %v901_v54 = vrot.slane %v2729_v44, 1  ;;  %v526_v55 = vor.u32 %v524_v48, %v523_v47  ;;  %v617_v56 = vsel %vm2591_vm3, %v523_v47, 0  ;;  %v514_v57 = vshrl.u32 %v2466_v39, 16 }
  0x3c   : > { %v732_v59 = vrot.slane %v730_v51, 1  ;;  %v737_v61 = vrot.slane %v735_v43, 1  ;;  %v771_v62 = vshll.u32 %v617_v56, 16  ;;  %v517_v63 = vshll.u32 %v2466_v39, 16 }
  0x3d   : > { %v750_v0 = vsel %vm622_vm2, %v745_v49, %v749_v42  ;;  %v906_v1 = vsel %vm874_vm4, %v904_v46, %v905_v37  ;;  %v2744_v2 = vsel %vm2591_vm3, 0, %v526_v55  ;;  %v516_v3 = vrot.slane %v514_v57, 7  ;;  %v2470_v55 = vld [vmem:[%s2585_s29 + $0x78] sm:$0xff]  }
  0x3e   : > { %938 = vrot.lane.b32.xlu1 %v900_v26, %s2515_s24  ;;  %v733_v4 = vor.u32 %v732_v59, %v728_v50  ;;  %v903_v6 = vsel %vm874_vm4, %v901_v54, %v902_v52  ;;  %v764_v7 = vshrl.u32 %v2744_v2, 16  ;;  %v766_v8 = vshll.u32 %v2744_v2, 16 }
  0x3f   : > { %936 = vrot.lane.b32.xlu0 %v897_v31, %s2515_s24  ;;  %v519_v9 = vor.u32 %v517_v63, %v516_v3  ;;  %v616_v10 = vsel %vm2591_vm3, %v516_v3, 0  ;;  %v911_v12 = vrot.slane %v617_v56, 1  ;;  %v535_v13 = vshrl.u32 %v2467_v58, 16 }
  0x40   : > { %v738_v15 = vsel %vm622_vm2, %v733_v4, %v737_v61  ;;  %v768_v17 = vrot.slane %v766_v8, 1  ;;  %v773_v18 = vrot.slane %v771_v62, 1  ;;  %v759_v19 = vshll.u32 %v616_v10, 16 }
  0x41   : > { %v2757_v20 = vsel %vm2591_vm3, 0, %v519_v9  ;;  %v910_v21 = vrot.slane %v2744_v2, 1  ;;  %v537_v22 = vrot.slane %v535_v13, 7  ;;  %v538_v24 = vshll.u32 %v2467_v58, 16 }
  0x42   : > { %831 = vrot.lane.b32.xlu1 %v750_v0, %s2516_s25  ;;  %v769_v25 = vor.u32 %v768_v17, %v764_v7  ;;  %v752_v26 = vshrl.u32 %v2757_v20, 16  ;;  %v754_v28 = vshll.u32 %v2757_v20, 16  ;;  %v908_v30 = vrot.slane %v616_v10, 1  ;;  %v2471_v17 = vld [vmem:[%s2674_s7 + $0x8] sm:$0x3f]  }
  0x43   : > { %829 = vrot.lane.b32.xlu0 %v738_v15, %s2516_s25  ;;  %v907_v31 = vrot.slane %v2757_v20, 1  ;;  %v540_v32 = vor.u32 %v538_v24, %v537_v22  ;;  %v619_v34 = vsel %vm2591_vm3, %v537_v22, 0  ;;  %v528_v35 = vshrl.u32 %v2468_v14, 16  ;;  %v2472_v24 = vld [vmem:[%s2674_s7] sm:$0x3f]   ;;  %2407 = vmatprep.subr.msk.bf16.mxu1 %vm1088_vm5, %v2471_v17 }
  0x44   : > { %v756_v37 = vrot.slane %v754_v28, 1  ;;  %v761_v38 = vrot.slane %v759_v19, 1  ;;  %v531_v39 = vshll.u32 %v2468_v14, 16  ;;  %v774_v40 = vsel %vm622_vm2, %v769_v25, %v773_v18  ;;  %2408 = vmatprep.subr.msk.bf16.mxu0 %vm1088_vm5, %v2472_v24 }
  0x45   : > { %v2771_v41 = vsel %vm2591_vm3, 0, %v540_v32  ;;  %v795_v42 = vshll.u32 %v619_v34, 16  ;;  %v530_v43 = vrot.slane %v528_v35, 7  ;;  %v912_v47 = vsel %vm874_vm4, %v910_v21, %v911_v12  ;;  %v2473_v35 = vld [vmem:[%s2674_s7 + $0x10] sm:$0x3f]  }
  0x46   : > { %942 = vrot.lane.b32.xlu1 %v906_v1, %s2515_s24  ;;  %v757_v46 = vor.u32 %v756_v37, %v752_v26  ;;  %v788_v48 = vshrl.u32 %v2771_v41, 16  ;;  %v790_v49 = vshll.u32 %v2771_v41, 16  ;;  %v909_v50 = vsel %vm874_vm4, %v907_v31, %v908_v30 }
  0x47   : > { %940 = vrot.lane.b32.xlu0 %v903_v6, %s2515_s24  ;;  %v533_v51 = vor.u32 %v531_v39, %v530_v43  ;;  %v618_v52 = vsel %vm2591_vm3, %v530_v43, 0  ;;  %v542_v54 = vshrl.u32 %v2469_v36, 16  ;;  %v917_v59 = vrot.slane %v619_v34, 1 }
  0x48   : > { %v762_v56 = vsel %vm622_vm2, %v757_v46, %v761_v38  ;;  %v792_v57 = vrot.slane %v790_v49, 1  ;;  %v783_v58 = vshll.u32 %v618_v52, 16  ;;  %v797_v61 = vrot.slane %v795_v42, 1 }
  0x49   : > { %v2785_v62 = vsel %vm2591_vm3, 0, %v533_v51  ;;  %v544_v63 = vrot.slane %v542_v54, 7  ;;  %v545_v0 = vshll.u32 %v2469_v36, 16  ;;  %v916_v6 = vrot.slane %v2771_v41, 1 }
  0x4a   : > { %835 = vrot.lane.b32.xlu1 %v774_v40, %s2516_s25  ;;  %v793_v1 = vor.u32 %v792_v57, %v788_v48  ;;  %v776_v3 = vshrl.u32 %v2785_v62, 16  ;;  %v778_v4 = vshll.u32 %v2785_v62, 16  ;;  %v914_v7 = vrot.slane %v618_v52, 1 }
  0x4b   : > { %833 = vrot.lane.b32.xlu0 %v762_v56, %s2516_s25  ;;  %v547_v8 = vor.u32 %v545_v0, %v544_v63  ;;  %v620_v9 = vsel %vm2591_vm3, %v544_v63, 0  ;;  %v549_v10 = vshrl.u32 %v2470_v55, 16  ;;  %v785_v13 = vrot.slane %v783_v58, 1 }
  0x4c   : > { %v780_v12 = vrot.slane %v778_v4, 1  ;;  %v913_v14 = vrot.slane %v2785_v62, 1  ;;  %v807_v15 = vshll.u32 %v620_v9, 16  ;;  %v798_v18 = vsel %vm622_vm2, %v793_v1, %v797_v61 }
  0x4d   : > { %v2799_v19 = vsel %vm2591_vm3, 0, %v547_v8  ;;  %v551_v21 = vrot.slane %v549_v10, 7  ;;  %v552_v22 = vshll.u32 %v2470_v55, 16  ;;  %v918_v26 = vsel %vm874_vm4, %v916_v6, %v917_v59 }
  0x4e   : > { %946 = vrot.lane.b32.xlu1 %v912_v47, %s2515_s24  ;;  %v781_v25 = vor.u32 %v780_v12, %v776_v3  ;;  %v800_v28 = vshrl.u32 %v2799_v19, 16  ;;  %v802_v30 = vshll.u32 %v2799_v19, 16  ;;  %v920_v31 = vrot.slane %v620_v9, 1 }
  0x4f   : > { %944 = vrot.lane.b32.xlu0 %v909_v50, %s2515_s24  ;;  %v554_v32 = vor.u32 %v552_v22, %v551_v21  ;;  %v621_v34 = vsel %vm2591_vm3, %v551_v21, 0  ;;  %v915_v37 = vsel %vm874_vm4, %v913_v14, %v914_v7  ;;  %v809_v39 = vrot.slane %v807_v15, 1 }
  0x50   : > { %v786_v36 = vsel %vm622_vm2, %v781_v25, %v785_v13  ;;  %v804_v38 = vrot.slane %v802_v30, 1  ;;  %v919_v40 = vrot.slane %v2799_v19, 1  ;;  %v1090_v43 = vsel %vm1088_vm5, %v2471_v17, 0 }
  0x51   : > { %v2816_v42 = vsel %vm2591_vm3, 0, %v554_v32  ;;  %v1261_v46 = vsel %vm1088_vm5, %v2472_v24, 0  ;;  %v1030_v50 = vshll.u32 %v621_v34, 16  ;;  %2240 = vmatpush3.bf16.msra.mxu1 %v1090_v43  ;;  %v1433_v11 = vsel %vm1088_vm5, %v2473_v35, 0 }
  0x52   : > { %839 = vrot.lane.b32.xlu1 %v798_v18, %s2516_s25  ;;  %v805_v47 = vor.u32 %v804_v38, %v800_v28  ;;  %v1023_v48 = vshrl.u32 %v2816_v42, 16  ;;  %v1025_v49 = vshll.u32 %v2816_v42, 16  ;;  %2274 = vmatpush3.bf16.msra.mxu0 %v1261_v46  ;;  %v921_v52 = vsel %vm874_vm4, %v919_v40, %v920_v31 }
  0x53   : > { %837 = vrot.lane.b32.xlu0 %v786_v36, %s2516_s25  ;;  %2409 = vmatprep.subr.msk.bf16.mxu1 %vm1088_vm5, %v2472_v24  ;;  %v1038_v54 = vrot.slane %v2816_v42, 1  ;;  %v1039_v55 = vrot.slane %v621_v34, 1  ;;  %v1032_v58 = vrot.slane %v1030_v50, 1 }
  0x54   : > { %2410 = vmatprep.subr.msk.bf16.mxu0 %vm1088_vm5, %v2473_v35  ;;  %v1027_v51 = vrot.slane %v1025_v49, 1  ;;  %v810_v56 = vsel %vm622_vm2, %v805_v47, %v809_v39 }
  0x55   : > { %v1040_v59 = vsel %vm874_vm4, %v1038_v54, %v1039_v55 }
  0x56   : > { %950 = vrot.lane.b32.xlu1 %v918_v26, %s2515_s24  ;;  %v1028_v57 = vor.u32 %v1027_v51, %v1023_v48 }
  0x57   : > { %948 = vrot.lane.b32.xlu0 %v915_v37, %s2515_s24 }
  0x58   : > { %v1033_v61 = vsel %vm622_vm2, %v1028_v57, %v1032_v58 }
  0x5a   : > { %952 = vrot.lane.b32.xlu1 %v921_v52, %s2515_s24 }
  0x5b   : > { %841 = vrot.lane.b32.xlu0 %v810_v56, %s2516_s25 }
  0x5e   : > { %1041 = vrot.lane.b32.xlu1 %v1040_v59, %s2515_s24 }
  0x5f   : > { %1034 = vrot.lane.b32.xlu0 %v1033_v61, %s2516_s25 }
  0x7e   : > { %v923_v63 = vpop.permute.xlu1 %922  ;;  %v812_v0 = vpop.permute.xlu0 %811 }
  0x7f   : > { %v956_v1 = vsel %vm954_vm6, 0, %v812_v0 }
  0x80   : > { %v2839_v3 = vsel %vm987_vm7, %v956_v1, %v923_v63 }
  0x81   : > { %2275 = vmatprep.mubr.msk.bf16.mxu0 %vm1055_vm8, %v2839_v3 }
  0x94   : > { %v816_v4 = vpop.permute.xlu1 %815 }
  0x95   : > { %v814_v6 = vpop.permute.xlu0 %813  ;;  %v960_v7 = vsel %vm954_vm6, %v2602_v23, %v816_v4 }
  0x96   : > { %v958_v9 = vsel %vm954_vm6, %v2608_v29, %v814_v6 }
  0x98   : > { %v927_v8 = vpop.permute.xlu1 %926 }
  0x99   : > { %v993_v10 = vsel %vm987_vm7, %v960_v7, %v927_v8  ;;  %v925_v12 = vpop.permute.xlu0 %924 }
  0x9a   : > { %v991_v13 = vsel %vm987_vm7, %v958_v9, %v925_v12 }
  0x9b   : > { %2241 = vmatprep.mubr.msk.bf16.mxu1 %vm1055_vm8, %v991_v13  ;;  %2276 = vmatmul.mubr.msk.bf16.vlgmr.msra.gmra.mrb[0].mxu0 %vm1055_vm8, %v991_v13 }
  0x9c   : > { %2242 = vmatmul.mubr.msk.bf16.vlgmr.msra.gmra.mrb[0].mxu1 %vm1055_vm8, %v993_v10  ;;  %2279 = vmatprep.mubr.msk.bf16.mxu0 %vm1055_vm8, %v993_v10  ;;  %v820_v14 = vpop.permute.xlu1 %819 }
  0x9d   : > { %2342 = vmatpush3.bf16.msra.mxu1 %v1261_v46  ;;  %2308 = vmatpush3.bf16.msra.mxu0 %v1433_v11  ;;  %v818_v23 = vpop.permute.xlu0 %817  ;;  %v964_v29 = vsel %vm954_vm6, %v2619_v45, %v820_v14 }
  0x9e   : > { %v962_v17 = vsel %vm954_vm6, %v2634_v60, %v818_v23 }
  0xa0   : > { %v931_v15 = vpop.permute.xlu1 %930 }
  0xa1   : > { %v997_v18 = vsel %vm987_vm7, %v964_v29, %v931_v15  ;;  %v929_v21 = vpop.permute.xlu0 %928 }
  0xa2   : > { %v995_v22 = vsel %vm987_vm7, %v962_v17, %v929_v21 }
  0xa3   : > { %2245 = vmatprep.mubr.msk.bf16.mxu1 %vm1055_vm8, %v995_v22  ;;  %2280 = vmatmul.mubr.msk.bf16.gmra.mrb[4].mxu0 %vm1055_vm8, %v995_v22 }
  0xa4   : > { %2246 = vmatmul.mubr.msk.bf16.gmra.mrb[4].mxu1 %vm1055_vm8, %v997_v18  ;;  %2283 = vmatprep.mubr.msk.bf16.mxu0 %vm1055_vm8, %v997_v18  ;;  %v824_v24 = vpop.permute.xlu1 %823 }
  0xa5   : > { %v822_v25 = vpop.permute.xlu0 %821  ;;  %v968_v45 = vsel %vm954_vm6, %v2654_v16, %v824_v24 }
  0xa6   : > { %v966_v60 = vsel %vm954_vm6, %v2668_v33, %v822_v25  ;;  %v2963_v25 = vld [vmem:[%s311_s10] ss:$0 sm:$0xff] }
  0xa8   : > { %v935_v26 = vpop.permute.xlu1 %934 }
  0xa9   : > { %v1001_v28 = vsel %vm987_vm7, %v968_v45, %v935_v26  ;;  %v933_v30 = vpop.permute.xlu0 %932 }
  0xaa   : > { %v999_v31 = vsel %vm987_vm7, %v966_v60, %v933_v30  ;;  %v2965_v60 = vld [vmem:[%s317_s13] ss:$0 sm:$0xff] }
  0xab   : > { %2249 = vmatprep.mubr.msk.bf16.mxu1 %vm1055_vm8, %v999_v31  ;;  %2284 = vmatmul.mubr.msk.bf16.gmra.mrb[8].mxu0 %vm1055_vm8, %v999_v31 }
  0xac   : > { %2250 = vmatmul.mubr.msk.bf16.gmra.mrb[8].mxu1 %vm1055_vm8, %v1001_v28  ;;  %2287 = vmatprep.mubr.msk.bf16.mxu0 %vm1055_vm8, %v1001_v28  ;;  %v828_v32 = vpop.permute.xlu1 %827 }
  0xad   : > { %v826_v34 = vpop.permute.xlu0 %825  ;;  %v972_v16 = vsel %vm954_vm6, %v2688_v53, %v828_v32 }
  0xae   : > { %v970_v33 = vsel %vm954_vm6, %v2701_v5, %v826_v34 }
  0xb0   : > { %v939_v35 = vpop.permute.xlu1 %938 }
  0xb1   : > { %v1005_v36 = vsel %vm987_vm7, %v972_v16, %v939_v35  ;;  %v937_v37 = vpop.permute.xlu0 %936 }
  0xb2   : > { %v1003_v38 = vsel %vm987_vm7, %v970_v33, %v937_v37 }
  0xb3   : > { %2253 = vmatprep.mubr.msk.bf16.mxu1 %vm1055_vm8, %v1003_v38  ;;  %2288 = vmatmul.mubr.msk.bf16.gmra.mrb[12].mxu0 %vm1055_vm8, %v1003_v38 }
  0xb4   : > { %2254 = vmatmul.mubr.msk.bf16.gmra.mrb[12].mxu1 %vm1055_vm8, %v1005_v36  ;;  %2309 = vmatprep.mubr.msk.bf16.mxu0 %vm1055_vm8, %v993_v10  ;;  %v832_v39 = vpop.permute.xlu1 %831 }
  0xb5   : > { %v830_v40 = vpop.permute.xlu0 %829  ;;  %v976_v53 = vsel %vm954_vm6, %v2716_v27, %v832_v39 }
  0xb6   : > { %v974_v5 = vsel %vm954_vm6, %v2729_v44, %v830_v40 }
  0xb8   : > { %v943_v43 = vpop.permute.xlu1 %942 }
  0xb9   : > { %v1009_v46 = vsel %vm987_vm7, %v976_v53, %v943_v43  ;;  %v941_v47 = vpop.permute.xlu0 %940 }
  0xba   : > { %v1007_v48 = vsel %vm987_vm7, %v974_v5, %v941_v47 }
  0xbb   : > { %2257 = vmatprep.mubr.msk.bf16.mxu1 %vm1055_vm8, %v1007_v48  ;;  %2310 = vmatmul.mubr.msk.bf16.vlgmr.msra.gmra.mrb[0].mxu0 %vm1055_vm8, %v995_v22 }
  0xbc   : > { %2258 = vmatmul.mubr.msk.bf16.gmra.mrb[16].mxu1 %vm1055_vm8, %v1009_v46  ;;  %2313 = vmatprep.mubr.msk.bf16.mxu0 %vm1055_vm8, %v997_v18  ;;  %v836_v49 = vpop.permute.xlu1 %835 }
  0xbd   : > { %v834_v50 = vpop.permute.xlu0 %833  ;;  %v980_v27 = vsel %vm954_vm6, %v2744_v2, %v836_v49 }
  0xbe   : > { %v978_v44 = vsel %vm954_vm6, %v2757_v20, %v834_v50 }
  0xc0   : > { %v947_v11 = vpop.permute.xlu1 %946 }
  0xc1   : > { %v1013_v51 = vsel %vm987_vm7, %v980_v27, %v947_v11  ;;  %v945_v52 = vpop.permute.xlu0 %944 }
  0xc2   : > { %v1011_v54 = vsel %vm987_vm7, %v978_v44, %v945_v52 }
  0xc3   : > { %2261 = vmatprep.mubr.msk.bf16.mxu1 %vm1055_vm8, %v1011_v54  ;;  %2314 = vmatmul.mubr.msk.bf16.gmra.mrb[4].mxu0 %vm1055_vm8, %v999_v31 }
  0xc4   : > { %2262 = vmatmul.mubr.msk.bf16.gmra.mrb[20].mxu1 %vm1055_vm8, %v1013_v51  ;;  %2317 = vmatprep.mubr.msk.bf16.mxu0 %vm1055_vm8, %v1001_v28  ;;  %v840_v55 = vpop.permute.xlu1 %839 }
  0xc5   : > { %v838_v56 = vpop.permute.xlu0 %837  ;;  %v984_v2 = vsel %vm954_vm6, %v2771_v41, %v840_v55 }
  0xc6   : > { %v982_v20 = vsel %vm954_vm6, %v2785_v62, %v838_v56 }
  0xc8   : > { %v951_v57 = vpop.permute.xlu1 %950 }
  0xc9   : > { %v1017_v58 = vsel %vm987_vm7, %v984_v2, %v951_v57  ;;  %v949_v59 = vpop.permute.xlu0 %948 }
  0xca   : > { %v1015_v61 = vsel %vm987_vm7, %v982_v20, %v949_v59 }
  0xcb   : > { %2265 = vmatprep.mubr.msk.bf16.mxu1 %vm1055_vm8, %v1015_v61  ;;  %2318 = vmatmul.mubr.msk.bf16.gmra.mrb[8].mxu0 %vm1055_vm8, %v1003_v38 }
  0xcc   : > { %2266 = vmatmul.mubr.msk.bf16.gmra.mrb[24].mxu1 %vm1055_vm8, %v1017_v58  ;;  %2321 = vmatprep.mubr.msk.bf16.mxu0 %vm1055_vm8, %v1005_v36  ;;  %v953_v63 = vpop.permute.xlu1 %952 }
  0xcd   : > { %v842_v0 = vpop.permute.xlu0 %841 }
  0xce   : > { %v986_v41 = vsel %vm954_vm6, %v2799_v19, %v842_v0 }
  0xcf   : > { %v1019_v62 = vsel %vm987_vm7, %v986_v41, %v953_v63 }
  0xd0   : > { %2269 = vmatprep.mubr.msk.bf16.mxu1 %vm1055_vm8, %v1019_v62  ;;  %v1042_v1 = vpop.permute.xlu1 %1041 }
  0xd1   : > { %v1035_v4 = vpop.permute.xlu0 %1034 }
  0xd2   : > { %v1044_v6 = vsel %vm954_vm6, %v2816_v42, %v1035_v4 }
  0xd3   : > { %v1046_v7 = vsel %vm987_vm7, %v1044_v6, %v1042_v1  ;;  %2322 = vmatmul.mubr.msk.bf16.gmra.mrb[12].mxu0 %vm1055_vm8, %v1007_v48 }
  0xd4   : > { %2270 = vmatmul.mubr.msk.bf16.gmra.mrb[28].mxu1 %vm1055_vm8, %v1046_v7  ;;  %2325 = vmatprep.mubr.msk.bf16.mxu0 %vm1055_vm8, %v1009_v46 }
  0xd5   : > { %2291 = vmatprep.mubr.msk.bf16.mxu1 %vm1055_vm8, %v1005_v36 }
  0xdb   : > { %2326 = vmatmul.mubr.msk.bf16.gmra.mrb[16].mxu0 %vm1055_vm8, %v1011_v54 }
  0xdc   : > { %2292 = vmatmul.mubr.msk.bf16.vlgmr.msra.gmra.mrb[16].mxu1 %vm1055_vm8, %v1007_v48  ;;  %2329 = vmatprep.mubr.msk.bf16.mxu0 %vm1055_vm8, %v1013_v51 }
  0xdd   : > { %2295 = vmatprep.mubr.msk.bf16.mxu1 %vm1055_vm8, %v1009_v46 }
  0xe3   : > { %2330 = vmatmul.mubr.msk.bf16.gmra.mrb[20].mxu0 %vm1055_vm8, %v1015_v61 }
  0xe4   : > { %2296 = vmatmul.mubr.msk.bf16.gmra.mrb[20].mxu1 %vm1055_vm8, %v1011_v54  ;;  %2333 = vmatprep.mubr.msk.bf16.mxu0 %vm1055_vm8, %v1017_v58 }
  0xe5   : > { %2299 = vmatprep.mubr.msk.bf16.mxu1 %vm1055_vm8, %v1013_v51 }
  0xeb   : > { %2334 = vmatmul.mubr.msk.bf16.gmra.mrb[24].mxu0 %vm1055_vm8, %v1019_v62 }
  0xec   : > { %2300 = vmatmul.mubr.msk.bf16.gmra.mrb[24].mxu1 %vm1055_vm8, %v1015_v61  ;;  %2337 = vmatprep.mubr.msk.bf16.mxu0 %vm1055_vm8, %v1046_v7 }
  0xed   : > { %2303 = vmatprep.mubr.msk.bf16.mxu1 %vm1055_vm8, %v1017_v58 }
  0xf3   : > { %2338 = vmatmul.mubr.msk.bf16.gmra.mrb[28].mxu0 %vm1055_vm8, %v2839_v3 }
  0xf4   : > { %2304 = vmatmul.mubr.msk.bf16.gmra.mrb[28].mxu1 %vm1055_vm8, %v1019_v62 }
 0x16f   : > { %v2243_v19 = vpop.f32.mrb[0].mxu1 }
 0x170   : > { %v1126_v42 = vpop.f32.mrb[1].mxu1 }
 0x171   : > { %v2244_v8 = vpop.f32.mrb[2].mxu1 }
 0x172   : > { %v1129_v9 = vpop.f32.mrb[3].mxu1 }
 0x177   : > { %v2247_v10 = vpop.f32.mrb[4].mxu1 }
 0x178   : > { %v1142_v12 = vpop.f32.mrb[5].mxu1 }
 0x179   : > { %v2248_v13 = vpop.f32.mrb[6].mxu1 }
 0x17a   : > { %v1145_v14 = vpop.f32.mrb[7].mxu1 }
 0x17f   : > { %v2939_v23 = vpop.f32.mrb[8].mxu1 }
 0x180   : > { %v2941_v29 = vpop.f32.mrb[9].mxu1 }
 0x181   : > { %v2943_v15 = vpop.f32.mrb[10].mxu1 }
 0x182   : > { %v2945_v17 = vpop.f32.mrb[11].mxu1 }
 0x187   : > { %v2947_v3 = vpop.f32.mrb[12].mxu1 }
 0x188   : > { %v2949_v18 = vpop.f32.mrb[13].mxu1 }
 0x189   : > { %v2951_v21 = vpop.f32.mrb[14].mxu1 }
 0x18a   : > { %v2953_v22 = vpop.f32.mrb[15].mxu1 }
 0x18e   : > { %v2311_v24 = vpop.f32.mrb[0].mxu0 }
 0x18f   : > { %v2343_v45 = vadd.f32 %v2311_v24, %v2243_v19  ;;  %v1469_v26 = vpop.f32.mrb[1].mxu0 }
 0x190   : > { %v2344_v28 = vadd.f32 %v1469_v26, %v1126_v42  ;;  %v2312_v30 = vpop.f32.mrb[2].mxu0 }
 0x191   : > { %v1637_v31 = vmul.f32 %v2343_v45, %v2963_v25  ;;  %v2345_v32 = vadd.f32 %v2312_v30, %v2244_v8  ;;  %v1472_v34 = vpop.f32.mrb[3].mxu0 }
 0x192   : > { %v1635_v16 = vmul.f32 %v2344_v28, %v2963_v25  ;;  %v2346_v35 = vadd.f32 %v1472_v34, %v1129_v9 }
 0x193   : > { %v1676_v33 = vadd.f32 %v2965_v60, %v1637_v31  ;;  %v1638_v36 = vmul.f32 %v2345_v32, %v2963_v25 }
 0x194   : > { %v1674_v37 = vadd.f32 %v2965_v60, %v1635_v16  ;;  %v1636_v38 = vmul.f32 %v2346_v35, %v2963_v25 }
 0x195   : > { %v1708_v39 = vmax.f32 %v1676_v33, 0.0  ;;  %v1677_v40 = vadd.f32 %v2965_v60, %v1638_v36 }
 0x196   : > { %v1706_v53 = vmax.f32 %v1674_v37, 0.0  ;;  %v1675_v43 = vadd.f32 %v2965_v60, %v1636_v38  ;;  %v2315_v5 = vpop.f32.mrb[4].mxu0 }
 0x197   : > { %v2158_v46 = vpack.c.bf16 %v1708_v39, %v1708_v39  ;;  %v1709_v47 = vmax.f32 %v1677_v40, 0.0  ;;  %v2347_v48 = vadd.f32 %v2315_v5, %v2247_v10  ;;  %v1485_v49 = vpop.f32.mrb[5].mxu0 }
 0x198   : > { %v2156_v50 = vpack.c.bf16 %v1706_v53, %v1706_v53  ;;  %v1707_v27 = vmax.f32 %v1675_v43, 0.0  ;;  %v2348_v11 = vadd.f32 %v1485_v49, %v1142_v12  ;;  %v2316_v44 = vpop.f32.mrb[6].mxu0 }
 0x199   : > { %1869 = vst.msk [vmem:[%s2979_s16 + $0x8] sm:$0xf] %vm1866_vm9, %v2158_v46  ;;  %v2159_v51 = vpack.c.bf16 %v1709_v47, %v1709_v47  ;;  %v1641_v52 = vmul.f32 %v2347_v48, %v2963_v25  ;;  %v2349_v54 = vadd.f32 %v2316_v44, %v2248_v13  ;;  %v1488_v55 = vpop.f32.mrb[7].mxu0 }
 0x19a   : > { %1867 = vst.msk [vmem:[%s2979_s16] sm:$0xf] %vm1866_vm9, %v2156_v50  ;;  %v2157_v56 = vpack.c.bf16 %v1707_v27, %v1707_v27  ;;  %v1639_v2 = vmul.f32 %v2348_v11, %v2963_v25  ;;  %v2350_v57 = vadd.f32 %v1488_v55, %v1145_v14 }
 0x19b   : > { %1870 = vst.msk [vmem:[%s2979_s16 + $0xc] sm:$0xf] %vm1866_vm9, %v2159_v51  ;;  %v1680_v20 = vadd.f32 %v2965_v60, %v1641_v52  ;;  %v1642_v58 = vmul.f32 %v2349_v54, %v2963_v25 }
 0x19c   : > { %1868 = vst.msk [vmem:[%s2979_s16 + $0x4] sm:$0xf] %vm1866_vm9, %v2157_v56  ;;  %v1678_v59 = vadd.f32 %v2965_v60, %v1639_v2  ;;  %v1640_v61 = vmul.f32 %v2350_v57, %v2963_v25 }
 0x19d   : > { %v1712_v63 = vmax.f32 %v1680_v20, 0.0  ;;  %v1681_v0 = vadd.f32 %v2965_v60, %v1642_v58 }
 0x19e   : > { %v1710_v41 = vmax.f32 %v1678_v59, 0.0  ;;  %v1679_v62 = vadd.f32 %v2965_v60, %v1640_v61  ;;  %v2319_v1 = vpop.f32.mrb[8].mxu0 }
 0x19f   : > { %v2162_v4 = vpack.c.bf16 %v1712_v63, %v1712_v63  ;;  %v1713_v6 = vmax.f32 %v1681_v0, 0.0  ;;  %v2351_v7 = vadd.f32 %v2319_v1, %v2939_v23  ;;  %v1501_v19 = vpop.f32.mrb[9].mxu0 }
 0x1a0   : > { %v2160_v42 = vpack.c.bf16 %v1710_v41, %v1710_v41  ;;  %v1711_v8 = vmax.f32 %v1679_v62, 0.0  ;;  %v2352_v9 = vadd.f32 %v1501_v19, %v2941_v29  ;;  %v2320_v10 = vpop.f32.mrb[10].mxu0 }
 0x1a1   : > { %1873 = vst.msk [vmem:[%s2979_s16 + $0x18] sm:$0xf] %vm1866_vm9, %v2162_v4  ;;  %v2163_v12 = vpack.c.bf16 %v1713_v6, %v1713_v6  ;;  %v1645_v13 = vmul.f32 %v2351_v7, %v2963_v25  ;;  %v2353_v14 = vadd.f32 %v2320_v10, %v2943_v15  ;;  %v1504_v24 = vpop.f32.mrb[11].mxu0 }
 0x1a2   : > { %1871 = vst.msk [vmem:[%s2979_s16 + $0x10] sm:$0xf] %vm1866_vm9, %v2160_v42  ;;  %v2161_v45 = vpack.c.bf16 %v1711_v8, %v1711_v8  ;;  %v1643_v23 = vmul.f32 %v2352_v9, %v2963_v25  ;;  %v2354_v26 = vadd.f32 %v1504_v24, %v2945_v17 }
 0x1a3   : > { %1874 = vst.msk [vmem:[%s2979_s16 + $0x1c] sm:$0xf] %vm1866_vm9, %v2163_v12  ;;  %v1684_v29 = vadd.f32 %v2965_v60, %v1645_v13  ;;  %v1646_v28 = vmul.f32 %v2353_v14, %v2963_v25 }
 0x1a4   : > { %1872 = vst.msk [vmem:[%s2979_s16 + $0x14] sm:$0xf] %vm1866_vm9, %v2161_v45  ;;  %v1682_v30 = vadd.f32 %v2965_v60, %v1643_v23  ;;  %v1644_v15 = vmul.f32 %v2354_v26, %v2963_v25 }
 0x1a5   : > { %v1716_v31 = vmax.f32 %v1684_v29, 0.0  ;;  %v1685_v32 = vadd.f32 %v2965_v60, %v1646_v28 }
 0x1a6   : > { %v1714_v34 = vmax.f32 %v1682_v30, 0.0  ;;  %v1683_v17 = vadd.f32 %v2965_v60, %v1644_v15  ;;  %v2323_v16 = vpop.f32.mrb[12].mxu0 }
 0x1a7   : > { %v2166_v35 = vpack.c.bf16 %v1716_v31, %v1716_v31  ;;  %v1717_v33 = vmax.f32 %v1685_v32, 0.0  ;;  %v2355_v36 = vadd.f32 %v2323_v16, %v2947_v3  ;;  %v1517_v37 = vpop.f32.mrb[13].mxu0 }
 0x1a8   : > { %v2164_v38 = vpack.c.bf16 %v1714_v34, %v1714_v34  ;;  %v1715_v39 = vmax.f32 %v1683_v17, 0.0  ;;  %v2356_v40 = vadd.f32 %v1517_v37, %v2949_v18  ;;  %v2324_v53 = vpop.f32.mrb[14].mxu0 }
 0x1a9   : > { %1877 = vst.msk [vmem:[%s2979_s16 + $0x28] sm:$0xf] %vm1866_vm9, %v2166_v35  ;;  %v2167_v43 = vpack.c.bf16 %v1717_v33, %v1717_v33  ;;  %v1649_v5 = vmul.f32 %v2355_v36, %v2963_v25  ;;  %v2357_v46 = vadd.f32 %v2324_v53, %v2951_v21  ;;  %v1520_v47 = vpop.f32.mrb[15].mxu0 }
 0x1aa   : > { %1875 = vst.msk [vmem:[%s2979_s16 + $0x20] sm:$0xf] %vm1866_vm9, %v2164_v38  ;;  %v2165_v48 = vpack.c.bf16 %v1715_v39, %v1715_v39  ;;  %v1647_v3 = vmul.f32 %v2356_v40, %v2963_v25  ;;  %v2358_v49 = vadd.f32 %v1520_v47, %v2953_v22 }
 0x1ab   : > { %1878 = vst.msk [vmem:[%s2979_s16 + $0x2c] sm:$0xf] %vm1866_vm9, %v2167_v43  ;;  %v1688_v18 = vadd.f32 %v2965_v60, %v1649_v5  ;;  %v1650_v50 = vmul.f32 %v2357_v46, %v2963_v25 }
 0x1ac   : > { %1876 = vst.msk [vmem:[%s2979_s16 + $0x24] sm:$0xf] %vm1866_vm9, %v2165_v48  ;;  %v1686_v27 = vadd.f32 %v2965_v60, %v1647_v3  ;;  %v1648_v21 = vmul.f32 %v2358_v49, %v2963_v25 }
 0x1ad   : > { %v1720_v11 = vmax.f32 %v1688_v18, 0.0  ;;  %v1689_v44 = vadd.f32 %v2965_v60, %v1650_v50 }
 0x1ae   : > { %v1718_v51 = vmax.f32 %v1686_v27, 0.0  ;;  %v1687_v52 = vadd.f32 %v2965_v60, %v1648_v21  ;;  %v2327_v22 = vpop.f32.mrb[16].mxu0 }
 0x1af   : > { %v2170_v54 = vpack.c.bf16 %v1720_v11, %v1720_v11  ;;  %v1721_v55 = vmax.f32 %v1689_v44, 0.0  ;;  %v2293_v56 = vpop.f32.mrb[16].mxu1  ;;  %v1533_v2 = vpop.f32.mrb[17].mxu0 }
 0x1b0   : > { %v2168_v57 = vpack.c.bf16 %v1718_v51, %v1718_v51  ;;  %v1719_v20 = vmax.f32 %v1687_v52, 0.0  ;;  %v2359_v58 = vadd.f32 %v2327_v22, %v2293_v56  ;;  %v1361_v59 = vpop.f32.mrb[17].mxu1  ;;  %v2328_v61 = vpop.f32.mrb[18].mxu0 }
 0x1b1   : > { %1881 = vst.msk [vmem:[%s2979_s16 + $0x38] sm:$0xf] %vm1866_vm9, %v2170_v54  ;;  %v2171_v63 = vpack.c.bf16 %v1721_v55, %v1721_v55  ;;  %v2360_v0 = vadd.f32 %v1533_v2, %v1361_v59  ;;  %v2294_v41 = vpop.f32.mrb[18].mxu1  ;;  %v1536_v62 = vpop.f32.mrb[19].mxu0 }
 0x1b2   : > { %1879 = vst.msk [vmem:[%s2979_s16 + $0x30] sm:$0xf] %vm1866_vm9, %v2168_v57  ;;  %v2169_v1 = vpack.c.bf16 %v1719_v20, %v1719_v20  ;;  %v1653_v4 = vmul.f32 %v2359_v58, %v2963_v25  ;;  %v2361_v6 = vadd.f32 %v2328_v61, %v2294_v41  ;;  %v1364_v7 = vpop.f32.mrb[19].mxu1 }
 0x1b3   : > { %1882 = vst.msk [vmem:[%s2979_s16 + $0x3c] sm:$0xf] %vm1866_vm9, %v2171_v63  ;;  %v1651_v19 = vmul.f32 %v2360_v0, %v2963_v25  ;;  %v2362_v42 = vadd.f32 %v1536_v62, %v1364_v7 }
 0x1b4   : > { %1880 = vst.msk [vmem:[%s2979_s16 + $0x34] sm:$0xf] %vm1866_vm9, %v2169_v1  ;;  %v1692_v8 = vadd.f32 %v2965_v60, %v1653_v4  ;;  %v1654_v9 = vmul.f32 %v2361_v6, %v2963_v25 }
 0x1b5   : > { %v1690_v10 = vadd.f32 %v2965_v60, %v1651_v19  ;;  %v1652_v12 = vmul.f32 %v2362_v42, %v2963_v25 }
 0x1b6   : > { %v1724_v13 = vmax.f32 %v1692_v8, 0.0  ;;  %v1693_v14 = vadd.f32 %v2965_v60, %v1654_v9  ;;  %v2331_v24 = vpop.f32.mrb[20].mxu0 }
 0x1b7   : > { %v1722_v45 = vmax.f32 %v1690_v10, 0.0  ;;  %v1691_v23 = vadd.f32 %v2965_v60, %v1652_v12  ;;  %v2297_v26 = vpop.f32.mrb[20].mxu1  ;;  %v1549_v29 = vpop.f32.mrb[21].mxu0 }
 0x1b8   : > { %v2174_v28 = vpack.c.bf16 %v1724_v13, %v1724_v13  ;;  %v1725_v30 = vmax.f32 %v1693_v14, 0.0  ;;  %v2363_v15 = vadd.f32 %v2331_v24, %v2297_v26  ;;  %v1377_v31 = vpop.f32.mrb[21].mxu1  ;;  %v2332_v32 = vpop.f32.mrb[22].mxu0 }
 0x1b9   : > { %v2172_v34 = vpack.c.bf16 %v1722_v45, %v1722_v45  ;;  %v1723_v17 = vmax.f32 %v1691_v23, 0.0  ;;  %v2364_v16 = vadd.f32 %v1549_v29, %v1377_v31  ;;  %v2298_v35 = vpop.f32.mrb[22].mxu1  ;;  %v1552_v33 = vpop.f32.mrb[23].mxu0 }
 0x1ba   : > { %1885 = vst.msk [vmem:[%s2979_s16 + $0x48] sm:$0xf] %vm1866_vm9, %v2174_v28  ;;  %v2175_v36 = vpack.c.bf16 %v1725_v30, %v1725_v30  ;;  %v1657_v37 = vmul.f32 %v2363_v15, %v2963_v25  ;;  %v2365_v38 = vadd.f32 %v2332_v32, %v2298_v35  ;;  %v1380_v39 = vpop.f32.mrb[23].mxu1 }
 0x1bb   : > { %1883 = vst.msk [vmem:[%s2979_s16 + $0x40] sm:$0xf] %vm1866_vm9, %v2172_v34  ;;  %v2173_v40 = vpack.c.bf16 %v1723_v17, %v1723_v17  ;;  %v1655_v53 = vmul.f32 %v2364_v16, %v2963_v25  ;;  %v2366_v43 = vadd.f32 %v1552_v33, %v1380_v39 }
 0x1bc   : > { %1886 = vst.msk [vmem:[%s2979_s16 + $0x4c] sm:$0xf] %vm1866_vm9, %v2175_v36  ;;  %v1696_v5 = vadd.f32 %v2965_v60, %v1657_v37  ;;  %v1658_v46 = vmul.f32 %v2365_v38, %v2963_v25 }
 0x1bd   : > { %1884 = vst.msk [vmem:[%s2979_s16 + $0x44] sm:$0xf] %vm1866_vm9, %v2173_v40  ;;  %v1694_v47 = vadd.f32 %v2965_v60, %v1655_v53  ;;  %v1656_v48 = vmul.f32 %v2366_v43, %v2963_v25 }
 0x1be   : > { %v1728_v3 = vmax.f32 %v1696_v5, 0.0  ;;  %v1697_v49 = vadd.f32 %v2965_v60, %v1658_v46  ;;  %v2335_v18 = vpop.f32.mrb[24].mxu0 }
 0x1bf   : > { %v1726_v50 = vmax.f32 %v1694_v47, 0.0  ;;  %v1695_v27 = vadd.f32 %v2965_v60, %v1656_v48  ;;  %v2301_v21 = vpop.f32.mrb[24].mxu1  ;;  %v1565_v11 = vpop.f32.mrb[25].mxu0 }
 0x1c0   : > { %v2178_v44 = vpack.c.bf16 %v1728_v3, %v1728_v3  ;;  %v1729_v51 = vmax.f32 %v1697_v49, 0.0  ;;  %v2367_v52 = vadd.f32 %v2335_v18, %v2301_v21  ;;  %v1393_v22 = vpop.f32.mrb[25].mxu1  ;;  %v2336_v54 = vpop.f32.mrb[26].mxu0 }
 0x1c1   : > { %v2176_v55 = vpack.c.bf16 %v1726_v50, %v1726_v50  ;;  %v1727_v56 = vmax.f32 %v1695_v27, 0.0  ;;  %v2368_v2 = vadd.f32 %v1565_v11, %v1393_v22  ;;  %v2302_v57 = vpop.f32.mrb[26].mxu1  ;;  %v1568_v20 = vpop.f32.mrb[27].mxu0 }
 0x1c2   : > { %1889 = vst.msk [vmem:[%s2979_s16 + $0x58] sm:$0xf] %vm1866_vm9, %v2178_v44  ;;  %v2179_v58 = vpack.c.bf16 %v1729_v51, %v1729_v51  ;;  %v1661_v59 = vmul.f32 %v2367_v52, %v2963_v25  ;;  %v2369_v61 = vadd.f32 %v2336_v54, %v2302_v57  ;;  %v1396_v63 = vpop.f32.mrb[27].mxu1 }
 0x1c3   : > { %1887 = vst.msk [vmem:[%s2979_s16 + $0x50] sm:$0xf] %vm1866_vm9, %v2176_v55  ;;  %v2177_v0 = vpack.c.bf16 %v1727_v56, %v1727_v56  ;;  %v1659_v41 = vmul.f32 %v2368_v2, %v2963_v25  ;;  %v2370_v62 = vadd.f32 %v1568_v20, %v1396_v63 }
 0x1c4   : > { %1890 = vst.msk [vmem:[%s2979_s16 + $0x5c] sm:$0xf] %vm1866_vm9, %v2179_v58  ;;  %v1700_v1 = vadd.f32 %v2965_v60, %v1661_v59  ;;  %v1662_v4 = vmul.f32 %v2369_v61, %v2963_v25 }
 0x1c5   : > { %1888 = vst.msk [vmem:[%s2979_s16 + $0x54] sm:$0xf] %vm1866_vm9, %v2177_v0  ;;  %v1698_v6 = vadd.f32 %v2965_v60, %v1659_v41  ;;  %v1660_v7 = vmul.f32 %v2370_v62, %v2963_v25 }
 0x1c6   : > { %v1732_v19 = vmax.f32 %v1700_v1, 0.0  ;;  %v1701_v42 = vadd.f32 %v2965_v60, %v1662_v4  ;;  %v2339_v8 = vpop.f32.mrb[28].mxu0 }
 0x1c7   : > { %v1730_v9 = vmax.f32 %v1698_v6, 0.0  ;;  %v1699_v10 = vadd.f32 %v2965_v60, %v1660_v7  ;;  %v2305_v12 = vpop.f32.mrb[28].mxu1  ;;  %v1581_v13 = vpop.f32.mrb[29].mxu0 }
 0x1c8   : > { %v2182_v14 = vpack.c.bf16 %v1732_v19, %v1732_v19  ;;  %v1733_v24 = vmax.f32 %v1701_v42, 0.0  ;;  %v2371_v45 = vadd.f32 %v2339_v8, %v2305_v12  ;;  %v1409_v23 = vpop.f32.mrb[29].mxu1  ;;  %v2340_v26 = vpop.f32.mrb[30].mxu0 }
 0x1c9   : > { %v2180_v29 = vpack.c.bf16 %v1730_v9, %v1730_v9  ;;  %v1731_v28 = vmax.f32 %v1699_v10, 0.0  ;;  %v2372_v30 = vadd.f32 %v1581_v13, %v1409_v23  ;;  %v2306_v15 = vpop.f32.mrb[30].mxu1  ;;  %v1584_v31 = vpop.f32.mrb[31].mxu0 }
 0x1ca   : > { %1893 = vst.msk [vmem:[%s2979_s16 + $0x68] sm:$0xf] %vm1866_vm9, %v2182_v14  ;;  %v2183_v32 = vpack.c.bf16 %v1733_v24, %v1733_v24  ;;  %v1665_v34 = vmul.f32 %v2371_v45, %v2963_v25  ;;  %v2373_v17 = vadd.f32 %v2340_v26, %v2306_v15  ;;  %v1412_v16 = vpop.f32.mrb[31].mxu1 }
 0x1cb   : > { %1891 = vst.msk [vmem:[%s2979_s16 + $0x60] sm:$0xf] %vm1866_vm9, %v2180_v29  ;;  %v2181_v35 = vpack.c.bf16 %v1731_v28, %v1731_v28  ;;  %v1663_v33 = vmul.f32 %v2372_v30, %v2963_v25  ;;  %v2374_v36 = vadd.f32 %v1584_v31, %v1412_v16 }
 0x1cc   : > { %1894 = vst.msk [vmem:[%s2979_s16 + $0x6c] sm:$0xf] %vm1866_vm9, %v2183_v32  ;;  %v1704_v37 = vadd.f32 %v2965_v60, %v1665_v34  ;;  %v1666_v38 = vmul.f32 %v2373_v17, %v2963_v25 }
 0x1cd   : > { %1892 = vst.msk [vmem:[%s2979_s16 + $0x64] sm:$0xf] %vm1866_vm9, %v2181_v35  ;;  %v1702_v39 = vadd.f32 %v2965_v60, %v1663_v33  ;;  %v1664_v40 = vmul.f32 %v2374_v36, %v2963_v25 }
 0x1ce   : > { %v1736_v53 = vmax.f32 %v1704_v37, 0.0  ;;  %v1705_v43 = vadd.f32 %v2965_v60, %v1666_v38 }
 0x1cf   : > { %v1734_v5 = vmax.f32 %v1702_v39, 0.0  ;;  %v1703_v46 = vadd.f32 %v2965_v60, %v1664_v40 }
 0x1d0   : > { %v2186_v47 = vpack.c.bf16 %v1736_v53, %v1736_v53  ;;  %v1737_v48 = vmax.f32 %v1705_v43, 0.0 }
 0x1d1   : > { %v2184_v3 = vpack.c.bf16 %v1734_v5, %v1734_v5  ;;  %v1735_v49 = vmax.f32 %v1703_v46, 0.0 }
 0x1d2   : > { %1897 = vst.msk [vmem:[%s2979_s16 + $0x78] sm:$0xf] %vm1866_vm9, %v2186_v47  ;;  %v2187_v18 = vpack.c.bf16 %v1737_v48, %v1737_v48 }
 0x1d3   : > { %1895 = vst.msk [vmem:[%s2979_s16 + $0x70] sm:$0xf] %vm1866_vm9, %v2184_v3  ;;  %v2185_v50 = vpack.c.bf16 %v1735_v49, %v1735_v49 }
 0x1d4   : > { %1898 = vst.msk [vmem:[%s2979_s16 + $0x7c] sm:$0xf] %vm1866_vm9, %v2187_v18 }
 0x1d5   : > { %1896 = vst.msk [vmem:[%s2979_s16 + $0x74] sm:$0xf] %vm1866_vm9, %v2185_v50 }
 0x1d6 PF: > { %s14_s19 = sadd.s32 1, %s2512_s19   ;;  %s3132_s15 = smov %s2504_s17 }
 0x1d7   : > { %p11_p7 = scmp.ge.s32.totalorder %s14_s19, 6   ;;  %s3133_s16 = smov %s2508_s18 }
 0x1d8   : > { %s3134_s17 = smov %s3137_s20  ;;  %s3135_s18 = smov %s3141_s21 }
 0x1d9   :  { %13 = sbr.rel (!%p11_p7) target bundleno = 3 (0x3), region = 77 }

// kernel: _lambda_.4
= control target key start
LH: loop header
LB: loop body
LE: loop exit
PB: predicated region body
PF: predicated region fallthrough
CT: control target
= control target key end

     0   :  { %s3465_s18 = smov 0   ;;  %s3467_s19 = smov 0   ;;  %s4534_s0 = inlined_call_operand.vmem [shape: bf16[4,16,16,4], index: 0, kind: input, shape index: {}]   ;;  %s4535_s1 = inlined_call_operand.vmem [shape: bf16[4,16,16,4], index: 1, kind: input, shape index: {}]   ;;  %s4536_s2 = inlined_call_operand.vmem [shape: bf16[2,3,24,4], index: 2, kind: input, shape index: {}]   ;;  %s4537_s3 = inlined_call_operand.vmem [shape: f32[2,1,4], index: 3, kind: input, shape index: {}]   ;;  %s4538_s4 = inlined_call_operand.vmem [shape: f32[2,1,4], index: 4, kind: input, shape index: {}]   ;;  %s4539_s5 = inlined_call_operand.vmem [shape: bf16[4,16,16,4], index: 5, kind: output, shape index: {}]  }
   0x1   :  { %s3469_s20 = smov 0   ;;  %s3471_s21 = smov 0  }
   0x2   :  { %s3473_s22 = smov 0  }
   0x3 LB: > { %s30_s23 = sadd.s32 1, %s3419_s20  ;;  %s34_s24 = sadd.s32 1, %s3423_s21  ;;  %s3427_s22 = sphi %s3473_s22, %s15_s22   ;;  %s3423_s21 = sphi %s3471_s21, %s4545_s21   ;;  %s3419_s20 = sphi %s3469_s20, %s4544_s20   ;;  %s3415_s19 = sphi %s3467_s19, %s4543_s19   ;;  %s3411_s18 = sphi %s3465_s18, %s4542_s18  }
   0x4   : > { %p32_p0 = scmp.ge.s32.totalorder %s30_s23, 2  ;;  %p2896_p1 = scmp.ge.s32.totalorder %s3427_s22, 1 }
   0x5   : > { %p279_p2 = scmp.lt.s32.totalorder %s3427_s22, 5 }
   0x6   : > { %s4547_s23 = smov (%p32_p0, %s30_s23), 0  ;;  %s4549_s24 = smov (!%p32_p0, %s34_s24), %s3423_s21 }
   0x7   : > { %p280_p3 = pnand %p2896_p1, %p279_p2  ;;  %p36_p4 = scmp.ge.s32.totalorder %s4549_s24, 2 }
   0x8   : > { %v3429_v0 = vmov (!%p280_p3), 0   ;;  %s2897_s25 = sshll.u32 (!%p280_p3), %s3415_s19, 1  ;;  %s3430_s26 = smov (!%p280_p3), 4   ;;  %vm649_vm0 = vsmask.f32 (!%p280_p3), 256  ;;  %vm648_vm1 = vcmask (!%p280_p3), 1040384  }
   0x9   : > { %s4551_s24 = smov (%p36_p4, %s4549_s24), 0  ;;  %283 = sbr.rel (%p280_p3) target bundleno = 561 (0x231), region = 40 }
   0xa   : > { %v977_v1 = vrot.slane (!%p280_p3), %v3429_v0, 1  ;;  %s3431_s27 = smov (!%p280_p3), 8   ;;  %s342_s28 = sadd.s32 (!%p280_p3), %s3411_s18, %s2897_s25  ;;  %vm1223_vm2 = vcmask (!%p280_p3), 1046528   ;;  %vm3525_vm3 = vmand (!%p280_p3), %vm648_vm1, %vm649_vm0  ;;  %vm971_vm4 = vsmask.f32 (!%p280_p3), 7424  ;;  %vm1922_vm5 = vcmask (!%p280_p3), 1043456  }
   0xb   : > { %p343_p5 = scmp.lt.s32.totalorder (!%p280_p3), %s342_s28, 3  ;;  %s3432_s29 = smov (!%p280_p3), 12   ;;  %vm1654_vm6 = vcmask (!%p280_p3), 31744   ;;  %vm1687_vm7 = vcmask (!%p280_p3), 64512   ;;  %vm1720_vm8 = vcmask (!%p280_p3), 97280   ;;  %vm1753_vm9 = vcmask (!%p280_p3), 130048  }
   0xc   : > { %1160 = vrot.lane.b32.xlu0 (!%p280_p3), %v977_v1, %s3430_s26  ;;  %1271 = vrot.lane.b32.xlu1 (!%p280_p3), %v977_v1, %s3431_s27  ;;  %s3433_s30 = smov (!%p280_p3), 16   ;;  %s3434_s13 = smov (!%p280_p3), 20   ;;  %vm1786_vm10 = vcmask (!%p280_p3), 162816   ;;  %vm1889_vm11 = vcmask (!%p280_p3), 195584   ;;  %vm2709_vm12 = vcmask (!%p280_p3), 27648  }
   0xd   : > { %p359_p6 = scmp.lt.s32.totalorder (!%p280_p3), %s3415_s19, 1 }
  0x10   : > { %s4553_s28 = smov (!%p343_p5, %s342_s28), 3  ;;  %1318 = vrot.lane.b32.xlu0 %v3429_v0, %s3432_s29  ;;  %1530 = vrot.lane.b32.xlu1 %v977_v1, %s3433_s30  ;;  %s4555_s19 = smov (!%p359_p6, %s3415_s19), 1 }
  0x11   : > { %s3502_s6 = sshll.u32 %s4553_s28, 7  ;;  %s3304_s14 = smul.u32 36, %s4555_s19 }
  0x12   : > { %s3508_s9 = scalar_lea.vmem %s4535_s1, %s3502_s6  ;;  %s3515_s12 = scalar_lea.vmem %s4534_s0, %s3502_s6 }
  0x13   : > { %v3351_v2 = vld [vmem:[%s3508_s9 + $0x8] sm:$0xff]   ;;  %v3352_v3 = vld [vmem:[%s3508_s9] sm:$0xff]   ;;  %v3522_v11 = vld [vmem:[%s3515_s12 + $0x10] sm:$0xff]   ;;  %s3683_s17 = scalar_lea.vmem %s4536_s2, %s3304_s14  ;;  %s4370_s7 = scalar_lea.vmem %s4539_s5, %s3502_s6 }
  0x14   : > { %1622 = vrot.lane.b32.xlu0 %v977_v1, %s3434_s13  ;;  %v803_v4 = vshrl.u32 %v3351_v2, 16  ;;  %v806_v5 = vshll.u32 %v3351_v2, 16  ;;  %v796_v6 = vshrl.u32 %v3352_v3, 16  ;;  %v799_v7 = vshll.u32 %v3352_v3, 16  ;;  %v3353_v8 = vld [vmem:[%s3515_s12 + $0x8] sm:$0xff]   ;;  %v3354_v9 = vld [vmem:[%s3515_s12] sm:$0xff]  }
  0x15   : > { %v512_v14 = vshrl.u32 %v3353_v8, 16  ;;  %v515_v15 = vshll.u32 %v3353_v8, 16  ;;  %v505_v16 = vshrl.u32 %v3354_v9, 16  ;;  %v508_v18 = vshll.u32 %v3354_v9, 16  ;;  %v3356_v61 = vld [vmem:[%s3515_s12 + $0x18] sm:$0xff]   ;;  %v3357_v0 = vld [vmem:[%s3508_s9 + $0x10] sm:$0xff]  }
  0x16   : > { %v805_v10 = vrot.slane %v803_v4, 7  ;;  %v798_v13 = vrot.slane %v796_v6, 7  ;;  %v519_v20 = vshrl.u32 %v3522_v11, 16  ;;  %v522_v9 = vshll.u32 %v3522_v11, 16 }
  0x17   : > { %v514_v22 = vrot.slane %v512_v14, 7  ;;  %v507_v23 = vrot.slane %v505_v16, 7  ;;  %v526_v14 = vshrl.u32 %v3356_v61, 16 }
  0x18   : > { %v808_v17 = vor.u32 %v806_v5, %v805_v10  ;;  %v3531_v19 = vsel %vm3525_vm3, %v805_v10, 0  ;;  %v801_v21 = vor.u32 %v799_v7, %v798_v13  ;;  %v955_v24 = vsel %vm3525_vm3, %v798_v13, 0  ;;  %v3358_v5 = vld [vmem:[%s3508_s9 + $0x18] sm:$0xff]  }
  0x19   : > { %v1578_v26 = vrot.slane %v955_v24, 1  ;;  %v1358_v27 = vshll.u32 %v955_v24, 16  ;;  %v1370_v28 = vshll.u32 %v3531_v19, 16  ;;  %v517_v32 = vor.u32 %v515_v15, %v514_v22 }
  0x1a   : > { %v3538_v25 = vsel %vm3525_vm3, 0, %v808_v17  ;;  %v939_v31 = vsel %vm3525_vm3, 0, %v801_v21  ;;  %v668_v35 = vsel %vm3525_vm3, %v514_v22, 0  ;;  %v510_v36 = vor.u32 %v508_v18, %v507_v23 }
  0x1b   : > { %1322 = vrot.lane.b32.xlu0 %v3538_v25, %s3432_s29  ;;  %v1363_v29 = vshrl.u32 %v3538_v25, 16  ;;  %v1365_v30 = vshll.u32 %v3538_v25, 16  ;;  %1320 = vrot.lane.b32.xlu1 %v939_v31, %s3432_s29  ;;  %v1351_v33 = vshrl.u32 %v939_v31, 16  ;;  %v1353_v34 = vshll.u32 %v939_v31, 16 }
  0x1c   : > { %v3552_v38 = vsel %vm3525_vm3, 0, %v517_v32  ;;  %v1230_v39 = vrot.slane %v668_v35, 1  ;;  %v667_v40 = vsel %vm3525_vm3, %v507_v23, 0  ;;  %v3559_v43 = vsel %vm3525_vm3, 0, %v510_v36 }
  0x1d   : > { %v1367_v37 = vrot.slane %v1365_v30, 1  ;;  %v1355_v41 = vrot.slane %v1353_v34, 1  ;;  %v1229_v42 = vrot.slane %v3552_v38, 1  ;;  %v1227_v44 = vrot.slane %v667_v40, 1 }
  0x1e   : > { %v1226_v45 = vrot.slane %v3559_v43, 1  ;;  %v1577_v46 = vrot.slane %v939_v31, 1  ;;  %v981_v47 = vshrl.u32 %v3559_v43, 16  ;;  %v983_v48 = vshll.u32 %v3559_v43, 16 }
  0x1f   : > { %v1231_v49 = vsel %vm1223_vm2, %v1229_v42, %v1230_v39  ;;  %v988_v50 = vshll.u32 %v667_v40, 16  ;;  %v993_v51 = vshrl.u32 %v3552_v38, 16  ;;  %v995_v52 = vshll.u32 %v3552_v38, 16 }
  0x20   : > { %1275 = vrot.lane.b32.xlu1 %v1231_v49, %s3431_s27  ;;  %v1228_v53 = vsel %vm1223_vm2, %v1226_v45, %v1227_v44  ;;  %v1579_v54 = vsel %vm1223_vm2, %v1577_v46, %v1578_v26  ;;  %v985_v55 = vrot.slane %v983_v48, 1  ;;  %v1000_v56 = vshll.u32 %v668_v35, 16 }
  0x21   : > { %1273 = vrot.lane.b32.xlu0 %v1228_v53, %s3431_s27  ;;  %v990_v57 = vrot.slane %v988_v50, 1  ;;  %v997_v58 = vrot.slane %v995_v52, 1  ;;  %v1356_v59 = vor.u32 %v1355_v41, %v1351_v33  ;;  %v1360_v60 = vrot.slane %v1358_v27, 1  ;;  %v3359_v33 = vld [vmem:[%s3515_s12 + $0x20] sm:$0xff]  }
  0x22   : > { %v986_v62 = vor.u32 %v985_v55, %v981_v47  ;;  %v1002_v63 = vrot.slane %v1000_v56, 1  ;;  %v1368_v2 = vor.u32 %v1367_v37, %v1363_v29  ;;  %v1372_v3 = vrot.slane %v1370_v28, 1 }
  0x23   : > { %v998_v1 = vor.u32 %v997_v58, %v993_v51  ;;  %v1580_v4 = vrot.slane %v3538_v25, 1  ;;  %v1361_v7 = vsel %vm971_vm4, %v1356_v59, %v1360_v60  ;;  %v521_v8 = vrot.slane %v519_v20, 7  ;;  %v3360_v59 = vld [vmem:[%s3515_s12 + $0x28] sm:$0xff]  }
  0x24   : > { %1624 = vrot.lane.b32.xlu1 %v1579_v54, %s3434_s13  ;;  %v991_v6 = vsel %vm971_vm4, %v986_v62, %v990_v57  ;;  %v1581_v13 = vrot.slane %v3531_v19, 1  ;;  %v529_v15 = vshll.u32 %v3356_v61, 16  ;;  %v810_v18 = vshrl.u32 %v3357_v0, 16 }
  0x25   : > { %1162 = vrot.lane.b32.xlu0 %v991_v6, %s3430_s26  ;;  %v1003_v10 = vsel %vm971_vm4, %v998_v1, %v1002_v63  ;;  %v524_v16 = vor.u32 %v522_v9, %v521_v8  ;;  %v669_v17 = vsel %vm3525_vm3, %v521_v8, 0  ;;  %v813_v21 = vshll.u32 %v3357_v0, 16  ;;  %v3361_v0 = vld [vmem:[%s3508_s9 + $0x20] sm:$0xff]  }
  0x26   : > { %v1012_v22 = vshll.u32 %v669_v17, 16  ;;  %v528_v23 = vrot.slane %v526_v14, 7  ;;  %v817_v20 = vshrl.u32 %v3358_v5, 16  ;;  %v1373_v11 = vsel %vm971_vm4, %v1368_v2, %v1372_v3 }
  0x27   : > { %v3588_v19 = vsel %vm3525_vm3, 0, %v524_v16  ;;  %v812_v24 = vrot.slane %v810_v18, 7  ;;  %v820_v28 = vshll.u32 %v3358_v5, 16  ;;  %v1582_v29 = vsel %vm1223_vm2, %v1580_v4, %v1581_v13  ;;  %v3362_v4 = vld [vmem:[%s3508_s9 + $0x28] sm:$0xff]  }
  0x28   : > { %1164 = vrot.lane.b32.xlu1 %v1003_v10, %s3430_s26  ;;  %v1005_v25 = vshrl.u32 %v3588_v19, 16  ;;  %v1007_v26 = vshll.u32 %v3588_v19, 16  ;;  %v531_v27 = vor.u32 %v529_v15, %v528_v23  ;;  %v670_v30 = vsel %vm3525_vm3, %v528_v23, 0 }
  0x29   : > { %1532 = vrot.lane.b32.xlu0 %v1361_v7, %s3433_s30  ;;  %v815_v31 = vor.u32 %v813_v21, %v812_v24  ;;  %v819_v32 = vrot.slane %v817_v20, 7  ;;  %v1014_v35 = vrot.slane %v1012_v22, 1  ;;  %v1024_v37 = vshll.u32 %v670_v30, 16 }
  0x2a   : > { %v1009_v34 = vrot.slane %v1007_v26, 1  ;;  %v3600_v36 = vsel %vm3525_vm3, 0, %v531_v27  ;;  %v1232_v41 = vrot.slane %v3588_v19, 1  ;;  %v1233_v42 = vrot.slane %v669_v17, 1 }
  0x2b   : > { %v1017_v39 = vshrl.u32 %v3600_v36, 16  ;;  %v1019_v40 = vshll.u32 %v3600_v36, 16  ;;  %v1236_v45 = vrot.slane %v670_v30, 1  ;;  %v3609_v46 = vsel %vm3525_vm3, 0, %v815_v31 }
  0x2c   : > { %1534 = vrot.lane.b32.xlu1 %v1373_v11, %s3433_s30  ;;  %v1010_v44 = vor.u32 %v1009_v34, %v1005_v25  ;;  %v822_v47 = vor.u32 %v820_v28, %v819_v32  ;;  %v1026_v49 = vrot.slane %v1024_v37, 1  ;;  %v1235_v50 = vrot.slane %v3600_v36, 1 }
  0x2d   : > { %1626 = vrot.lane.b32.xlu0 %v1582_v29, %s3434_s13  ;;  %v1021_v48 = vrot.slane %v1019_v40, 1  ;;  %v1377_v51 = vshll.u32 %v3609_v46, 16  ;;  %v3620_v54 = vsel %vm3525_vm3, %v812_v24, 0  ;;  %v3631_v57 = vsel %vm3525_vm3, %v819_v32, 0 }
  0x2e   : > { %v1015_v52 = vsel %vm971_vm4, %v1010_v44, %v1014_v35  ;;  %v3616_v53 = vsel %vm3525_vm3, 0, %v822_v47  ;;  %v533_v58 = vshrl.u32 %v3359_v33, 16  ;;  %v1234_v60 = vsel %vm1223_vm2, %v1232_v41, %v1233_v42 }
  0x2f   : > { %v1022_v55 = vor.u32 %v1021_v48, %v1017_v39  ;;  %v1389_v56 = vshll.u32 %v3616_v53, 16  ;;  %v1375_v61 = vshrl.u32 %v3609_v46, 16  ;;  %v1379_v62 = vrot.slane %v1377_v51, 1 }
  0x30   : > { %1166 = vrot.lane.b32.xlu1 %v1015_v52, %s3430_s26  ;;  %v1382_v63 = vshll.u32 %v3620_v54, 16  ;;  %v1237_v2 = vsel %vm1223_vm2, %v1235_v50, %v1236_v45  ;;  %v1387_v3 = vshrl.u32 %v3616_v53, 16  ;;  %v1394_v6 = vshll.u32 %v3631_v57, 16  ;;  %v3687_v50 = vld [vmem:[%s3683_s17] sm:$0xff]  }
  0x31   : > { %v1027_v1 = vsel %vm971_vm4, %v1022_v55, %v1026_v49  ;;  %v1391_v5 = vrot.slane %v1389_v56, 1  ;;  %v1583_v7 = vrot.slane %v3609_v46, 1  ;;  %v1584_v8 = vrot.slane %v3620_v54, 1  ;;  %v3378_v54 = vld [vmem:[%s3683_s17 + $0xc] sm:$0xff]   ;;  %3160 = vmatprep.subr.bf16.mxu0 %v3687_v50 }
  0x32   : > { %1168 = vrot.lane.b32.xlu0 %v1027_v1, %s3430_s26  ;;  %v1384_v9 = vrot.slane %v1382_v63, 1  ;;  %v535_v10 = vrot.slane %v533_v58, 7  ;;  %v536_v13 = vshll.u32 %v3359_v33, 16  ;;  %v540_v14 = vshrl.u32 %v3360_v59, 16  ;;  %3161 = vmatpush3.bf16.msra.mxu0 %v3687_v50 }
  0x33   : > { %v1380_v15 = vor.u32 %v1379_v62, %v1375_v61  ;;  %v543_v16 = vshll.u32 %v3360_v59, 16  ;;  %v824_v17 = vshrl.u32 %v3361_v0, 16  ;;  %v1392_v23 = vor.u32 %v1391_v5, %v1387_v3  ;;  %v3364_v59 = vld [vmem:[%s3515_s12 + $0x38] sm:$0xff]   ;;  %3124 = vmatprep.subr.bf16.mxu1 %v3378_v54 }
  0x34   : > { %1277 = vrot.lane.b32.xlu1 %v1234_v60, %s3431_s27  ;;  %v538_v18 = vor.u32 %v536_v13, %v535_v10  ;;  %v3649_v21 = vsel %vm3525_vm3, %v535_v10, 0  ;;  %v542_v22 = vrot.slane %v540_v14, 7  ;;  %v1396_v20 = vrot.slane %v1394_v6, 1  ;;  %3125 = vmatpush3.bf16.msra.mxu1 %v3378_v54 }
  0x35   : > { %v826_v11 = vrot.slane %v824_v17, 7  ;;  %v827_v24 = vshll.u32 %v3361_v0, 16  ;;  %v831_v28 = vshrl.u32 %v3362_v4, 16  ;;  %v1385_v29 = vsel %vm971_vm4, %v1380_v15, %v1384_v9  ;;  %v3365_v0 = vld [vmem:[%s3508_s9 + $0x30] sm:$0xff]   ;;  %v3366_v9 = vld [vmem:[%s3508_s9 + $0x38] sm:$0xff]  }
  0x36   : > { %1279 = vrot.lane.b32.xlu0 %v1237_v2, %s3431_s27  ;;  %v3656_v25 = vsel %vm3525_vm3, 0, %v538_v18  ;;  %v545_v26 = vor.u32 %v543_v16, %v542_v22  ;;  %v3660_v27 = vsel %vm3525_vm3, %v542_v22, 0  ;;  %v1036_v32 = vshll.u32 %v3649_v21, 16 }
  0x37   : > { %v1029_v30 = vshrl.u32 %v3656_v25, 16  ;;  %v1031_v31 = vshll.u32 %v3656_v25, 16  ;;  %v829_v34 = vor.u32 %v827_v24, %v826_v11  ;;  %v1048_v40 = vshll.u32 %v3660_v27, 16 }
  0x38   : > { %1324 = vrot.lane.b32.xlu1 %v3609_v46, %s3432_s29  ;;  %v3668_v33 = vsel %vm3525_vm3, 0, %v545_v26  ;;  %v1397_v41 = vsel %vm971_vm4, %v1392_v23, %v1396_v20  ;;  %v1586_v42 = vrot.slane %v3616_v53, 1  ;;  %v1587_v44 = vrot.slane %v3631_v57, 1 }
  0x39   : > { %v1033_v35 = vrot.slane %v1031_v31, 1  ;;  %v1041_v37 = vshrl.u32 %v3668_v33, 16  ;;  %v1043_v39 = vshll.u32 %v3668_v33, 16  ;;  %v833_v45 = vrot.slane %v831_v28, 7 }
  0x3a   : > { %1326 = vrot.lane.b32.xlu0 %v3616_v53, %s3432_s29  ;;  %v1585_v46 = vsel %vm1223_vm2, %v1583_v7, %v1584_v8  ;;  %v1038_v48 = vrot.slane %v1036_v32, 1  ;;  %v3691_v51 = vsel %vm3525_vm3, 0, %v829_v34  ;;  %v834_v52 = vshll.u32 %v3362_v4, 16  ;;  %v3363_v53 = vld [vmem:[%s3515_s12 + $0x30] sm:$0xff]  }
  0x3b   : > { %v1034_v47 = vor.u32 %v1033_v35, %v1029_v30  ;;  %v1045_v49 = vrot.slane %v1043_v39, 1  ;;  %v1050_v56 = vrot.slane %v1048_v40, 1  ;;  %v1588_v57 = vsel %vm1223_vm2, %v1586_v42, %v1587_v44 }
  0x3c   : > { %1536 = vrot.lane.b32.xlu1 %v1385_v29, %s3433_s30  ;;  %v836_v58 = vor.u32 %v834_v52, %v833_v45  ;;  %v1238_v61 = vrot.slane %v3656_v25, 1  ;;  %v1239_v62 = vrot.slane %v3649_v21, 1  ;;  %v1401_v63 = vshll.u32 %v3691_v51, 16 }
  0x3d   : > { %v1046_v55 = vor.u32 %v1045_v49, %v1041_v37  ;;  %v1039_v60 = vsel %vm971_vm4, %v1034_v47, %v1038_v48  ;;  %v1242_v1 = vrot.slane %v3660_v27, 1  ;;  %v3713_v3 = vsel %vm3525_vm3, %v826_v11, 0 }
  0x3e   : > { %1538 = vrot.lane.b32.xlu0 %v1397_v41, %s3433_s30  ;;  %v3709_v2 = vsel %vm3525_vm3, 0, %v836_v58  ;;  %v547_v4 = vshrl.u32 %v3363_v53, 16  ;;  %v1241_v6 = vrot.slane %v3668_v33, 1  ;;  %v960_v8 = vsel %vm3525_vm3, %v833_v45, 0 }
  0x3f   : > { %v1051_v5 = vsel %vm971_vm4, %v1046_v55, %v1050_v56  ;;  %v1413_v7 = vshll.u32 %v3709_v2, 16  ;;  %v550_v13 = vshll.u32 %v3363_v53, 16  ;;  %v554_v14 = vshrl.u32 %v3364_v59, 16 }
  0x40   : > { %1628 = vrot.lane.b32.xlu1 %v1585_v46, %s3434_s13  ;;  %v549_v10 = vrot.slane %v547_v4, 7  ;;  %v557_v15 = vshll.u32 %v3364_v59, 16  ;;  %v1240_v16 = vsel %vm1223_vm2, %v1238_v61, %v1239_v62  ;;  %v1399_v17 = vshrl.u32 %v3691_v51, 16 }
  0x41   : > { %v1403_v18 = vrot.slane %v1401_v63, 1  ;;  %v1406_v21 = vshll.u32 %v3713_v3, 16  ;;  %v1418_v22 = vshll.u32 %v960_v8, 16  ;;  %v556_v20 = vrot.slane %v554_v14, 7 }
  0x42   : > { %1630 = vrot.lane.b32.xlu0 %v1588_v57, %s3434_s13  ;;  %v552_v23 = vor.u32 %v550_v13, %v549_v10  ;;  %v838_v11 = vshrl.u32 %v3365_v0, 16  ;;  %v1243_v24 = vsel %vm1223_vm2, %v1241_v6, %v1242_v1  ;;  %v1411_v26 = vshrl.u32 %v3709_v2, 16 }
  0x43   : > { %v1415_v27 = vrot.slane %v1413_v7, 1  ;;  %v845_v28 = vshrl.u32 %v3366_v9, 16  ;;  %v1589_v29 = vrot.slane %v3691_v51, 1  ;;  %v3737_v31 = vsel %vm3525_vm3, %v549_v10, 0 }
  0x44   : > { %1170 = vrot.lane.b32.xlu1 %v1039_v60, %s3430_s26  ;;  %v3733_v30 = vsel %vm3525_vm3, 0, %v552_v23  ;;  %v559_v32 = vor.u32 %v557_v15, %v556_v20  ;;  %v1404_v34 = vor.u32 %v1403_v18, %v1399_v17  ;;  %v1408_v35 = vrot.slane %v1406_v21, 1  ;;  %v3367_v60 = vld [vmem:[%s3515_s12 + $0x40] sm:$0xff]  }
  0x45   : > { %v1590_v37 = vrot.slane %v3713_v3, 1  ;;  %v1055_v39 = vshll.u32 %v3733_v30, 16  ;;  %v1420_v40 = vrot.slane %v1418_v22, 1  ;;  %v840_v42 = vrot.slane %v838_v11, 7 }
  0x46   : > { %1172 = vrot.lane.b32.xlu0 %v1051_v5, %s3430_s26  ;;  %v3743_v41 = vsel %vm3525_vm3, 0, %v559_v32  ;;  %v841_v44 = vshll.u32 %v3365_v0, 16  ;;  %v1416_v45 = vor.u32 %v1415_v27, %v1411_v26  ;;  %v1060_v46 = vshll.u32 %v3737_v31, 16  ;;  %v3368_v0 = vld [vmem:[%s3515_s12 + $0x48] sm:$0xff]  }
  0x47   : > { %v3749_v47 = vsel %vm3525_vm3, %v556_v20, 0  ;;  %v847_v48 = vrot.slane %v845_v28, 7  ;;  %v1067_v49 = vshll.u32 %v3743_v41, 16  ;;  %v848_v52 = vshll.u32 %v3366_v9, 16 }
  0x48   : > { %1281 = vrot.lane.b32.xlu1 %v1240_v16, %s3431_s27  ;;  %v1409_v53 = vsel %vm971_vm4, %v1404_v34, %v1408_v35  ;;  %v1053_v54 = vshrl.u32 %v3733_v30, 16  ;;  %v1057_v55 = vrot.slane %v1055_v39, 1  ;;  %v1592_v56 = vrot.slane %v3709_v2, 1  ;;  %v3369_v16 = vld [vmem:[%s3508_s9 + $0x40] sm:$0xff]   ;;  %v3370_v34 = vld [vmem:[%s3508_s9 + $0x48] sm:$0xff]  }
  0x49   : > { %v1593_v57 = vrot.slane %v960_v8, 1  ;;  %v843_v58 = vor.u32 %v841_v44, %v840_v42  ;;  %v1421_v59 = vsel %vm971_vm4, %v1416_v45, %v1420_v40  ;;  %v1069_v61 = vrot.slane %v1067_v49, 1 }
  0x4a   : > { %1283 = vrot.lane.b32.xlu0 %v1243_v24, %s3431_s27  ;;  %v1072_v62 = vshll.u32 %v3749_v47, 16  ;;  %v850_v63 = vor.u32 %v848_v52, %v847_v48  ;;  %v1591_v1 = vsel %vm1223_vm2, %v1589_v29, %v1590_v37  ;;  %v1058_v3 = vor.u32 %v1057_v55, %v1053_v54 }
  0x4b   : > { %v1062_v4 = vrot.slane %v1060_v46, 1  ;;  %v1594_v5 = vsel %vm1223_vm2, %v1592_v56, %v1593_v57  ;;  %v1244_v6 = vrot.slane %v3733_v30, 1  ;;  %v1245_v7 = vrot.slane %v3737_v31, 1 }
  0x4c   : > { %1328 = vrot.lane.b32.xlu1 %v3691_v51, %s3432_s29  ;;  %v1065_v51 = vshrl.u32 %v3743_v41, 16  ;;  %v561_v8 = vshrl.u32 %v3367_v60, 16  ;;  %v564_v9 = vshll.u32 %v3367_v60, 16  ;;  %v1074_v13 = vrot.slane %v1072_v62, 1  ;;  %v3371_v62 = vld [vmem:[%s3515_s12 + $0x50] sm:$0xff]  }
  0x4d   : > { %v3777_v14 = vsel %vm3525_vm3, 0, %v850_v63  ;;  %v568_v15 = vshrl.u32 %v3368_v0, 16  ;;  %v1063_v17 = vsel %vm971_vm4, %v1058_v3, %v1062_v4  ;;  %v571_v22 = vshll.u32 %v3368_v0, 16 }
  0x4e   : > { %1330 = vrot.lane.b32.xlu0 %v3709_v2, %s3432_s29  ;;  %v3769_v2 = vsel %vm3525_vm3, 0, %v843_v58  ;;  %v1070_v10 = vor.u32 %v1069_v61, %v1065_v51  ;;  %v563_v21 = vrot.slane %v561_v8, 7  ;;  %v961_v23 = vsel %vm3525_vm3, %v840_v42, 0  ;;  %v3372_v8 = vld [vmem:[%s3515_s12 + $0x58] sm:$0xff]  }
  0x4f   : > { %v1425_v18 = vshll.u32 %v3769_v2, 16  ;;  %v570_v20 = vrot.slane %v568_v15, 7  ;;  %v1247_v11 = vrot.slane %v3743_v41, 1  ;;  %v1248_v24 = vrot.slane %v3749_v47, 1 }
  0x50   : > { %1540 = vrot.lane.b32.xlu1 %v1409_v53, %s3433_s30  ;;  %v1437_v26 = vshll.u32 %v3777_v14, 16  ;;  %v566_v27 = vor.u32 %v564_v9, %v563_v21  ;;  %v1075_v28 = vsel %vm971_vm4, %v1070_v10, %v1074_v13  ;;  %v1246_v29 = vsel %vm1223_vm2, %v1244_v6, %v1245_v7 }
  0x51   : > { %v962_v31 = vsel %vm3525_vm3, %v847_v48, 0  ;;  %v852_v32 = vshrl.u32 %v3369_v16, 16  ;;  %v1423_v35 = vshrl.u32 %v3769_v2, 16  ;;  %v1427_v37 = vrot.slane %v1425_v18, 1 }
  0x52   : > { %1542 = vrot.lane.b32.xlu0 %v1421_v59, %s3433_s30  ;;  %v1430_v39 = vshll.u32 %v961_v23, 16  ;;  %v573_v40 = vor.u32 %v571_v22, %v570_v20  ;;  %v3797_v42 = vsel %vm3525_vm3, 0, %v566_v27  ;;  %v1435_v44 = vshrl.u32 %v3777_v14, 16 }
  0x53   : > { %v1439_v45 = vrot.slane %v1437_v26, 1  ;;  %v1442_v46 = vshll.u32 %v962_v31, 16  ;;  %v1249_v47 = vsel %vm1223_vm2, %v1247_v11, %v1248_v24  ;;  %v854_v48 = vrot.slane %v852_v32, 7 }
  0x54   : > { %1632 = vrot.lane.b32.xlu1 %v1591_v1, %s3434_s13  ;;  %v855_v49 = vshll.u32 %v3369_v16, 16  ;;  %v859_v52 = vshrl.u32 %v3370_v34, 16  ;;  %v1428_v53 = vor.u32 %v1427_v37, %v1423_v35  ;;  %v1432_v54 = vrot.slane %v1430_v39, 1  ;;  %v3373_v35 = vld [vmem:[%s3508_s9 + $0x50] sm:$0xff]  }
  0x55   : > { %v1079_v55 = vshll.u32 %v3797_v42, 16  ;;  %v3806_v56 = vsel %vm3525_vm3, 0, %v573_v40  ;;  %v1595_v57 = vrot.slane %v3769_v2, 1  ;;  %v3811_v58 = vsel %vm3525_vm3, %v563_v21, 0 }
  0x56   : > { %1634 = vrot.lane.b32.xlu0 %v1594_v5, %s3434_s13  ;;  %v1440_v59 = vor.u32 %v1439_v45, %v1435_v44  ;;  %v1444_v60 = vrot.slane %v1442_v46, 1  ;;  %v1596_v51 = vrot.slane %v961_v23, 1  ;;  %v862_v61 = vshll.u32 %v3370_v34, 16 }
  0x57   : > { %v3819_v63 = vsel %vm3525_vm3, %v570_v20, 0  ;;  %v1091_v0 = vshll.u32 %v3806_v56, 16  ;;  %v857_v1 = vor.u32 %v855_v49, %v854_v48  ;;  %v861_v3 = vrot.slane %v859_v52, 7 }
  0x58   : > { %1174 = vrot.lane.b32.xlu1 %v1063_v17, %s3430_s26  ;;  %v1433_v4 = vsel %vm971_vm4, %v1428_v53, %v1432_v54  ;;  %v1077_v5 = vshrl.u32 %v3797_v42, 16  ;;  %v1081_v6 = vrot.slane %v1079_v55, 1  ;;  %v1084_v7 = vshll.u32 %v3811_v58, 16 }
  0x59   : > { %v1598_v9 = vrot.slane %v3777_v14, 1  ;;  %v1599_v10 = vrot.slane %v962_v31, 1  ;;  %v1096_v13 = vshll.u32 %v3819_v63, 16  ;;  %v575_v15 = vshrl.u32 %v3371_v62, 16 }
  0x5a   : > { %1176 = vrot.lane.b32.xlu0 %v1075_v28, %s3430_s26  ;;  %v1089_v16 = vshrl.u32 %v3806_v56, 16  ;;  %v1093_v17 = vrot.slane %v1091_v0, 1  ;;  %v3835_v18 = vsel %vm3525_vm3, 0, %v857_v1  ;;  %v864_v21 = vor.u32 %v862_v61, %v861_v3 }
  0x5b   : > { %v1597_v22 = vsel %vm1223_vm2, %v1595_v57, %v1596_v51  ;;  %v1086_v23 = vrot.slane %v1084_v7, 1  ;;  %v582_v20 = vshrl.u32 %v3372_v8, 16  ;;  %v577_v11 = vrot.slane %v575_v15, 7  ;;  %v3893_v15 = vld [vmem:[%s3515_s12 + $0x60] sm:$0xff]  }
  0x5c   : > { %1285 = vrot.lane.b32.xlu1 %v1246_v29, %s3431_s27  ;;  %v578_v24 = vshll.u32 %v3371_v62, 16  ;;  %v1600_v26 = vsel %vm1223_vm2, %v1598_v9, %v1599_v10  ;;  %v1251_v27 = vrot.slane %v3811_v58, 1  ;;  %v1449_v28 = vshll.u32 %v3835_v18, 16  ;;  %v3374_v58 = vld [vmem:[%s3508_s9 + $0x58] sm:$0xff]   ;;  %v3885_v9 = vld [vmem:[%s3683_s17 + $0x8] ss:$0 sps:$4 sm:$0xff]  }
  0x5d   : > { %v1094_v29 = vor.u32 %v1093_v17, %v1089_v16  ;;  %v1098_v31 = vrot.slane %v1096_v13, 1  ;;  %v3845_v32 = vsel %vm3525_vm3, 0, %v864_v21  ;;  %v3849_v34 = vsel %vm3525_vm3, %v854_v48, 0  ;;  %v3896_v16 = vld [vmem:[%s3683_s17 + $0x14] ss:$0 sps:$4 sm:$0xff]   ;;  %3301 = vmatprep.subr.msk.bf16.mxu0 %vm1922_vm5, %v3885_v9 }
  0x5e   : > { %1287 = vrot.lane.b32.xlu0 %v1249_v47, %s3431_s27  ;;  %v1250_v39 = vrot.slane %v3797_v42, 1  ;;  %v584_v40 = vrot.slane %v582_v20, 7  ;;  %v585_v44 = vshll.u32 %v3372_v8, 16  ;;  %v1447_v45 = vshrl.u32 %v3835_v18, 16  ;;  %3300 = vmatprep.subr.msk.bf16.mxu1 %vm1922_vm5, %v3896_v16 }
  0x5f   : > { %v580_v46 = vor.u32 %v578_v24, %v577_v11  ;;  %v1451_v47 = vrot.slane %v1449_v28, 1  ;;  %v1461_v49 = vshll.u32 %v3845_v32, 16  ;;  %v1454_v52 = vshll.u32 %v3849_v34, 16 }
  0x60   : > { %1332 = vrot.lane.b32.xlu1 %v3769_v2, %s3432_s29  ;;  %v1445_v2 = vsel %vm971_vm4, %v1440_v59, %v1444_v60  ;;  %v3860_v48 = vsel %vm3525_vm3, %v861_v3, 0  ;;  %v1099_v53 = vsel %vm971_vm4, %v1094_v29, %v1098_v31  ;;  %v1253_v54 = vrot.slane %v3806_v56, 1  ;;  %v3917_v31 = vld [vmem:[%s3515_s12 + $0x68] sm:$0xff]  }
  0x61   : > { %v1254_v55 = vrot.slane %v3819_v63, 1  ;;  %v866_v57 = vshrl.u32 %v3373_v35, 16  ;;  %v1252_v59 = vsel %vm1223_vm2, %v1250_v39, %v1251_v27  ;;  %v587_v60 = vor.u32 %v585_v44, %v584_v40 }
  0x62   : > { %1334 = vrot.lane.b32.xlu0 %v3777_v14, %s3432_s29  ;;  %v1082_v14 = vor.u32 %v1081_v6, %v1077_v5  ;;  %v1466_v51 = vshll.u32 %v3860_v48, 16  ;;  %v3871_v61 = vsel %vm3525_vm3, 0, %v580_v46  ;;  %v1459_v62 = vshrl.u32 %v3845_v32, 16 }
  0x63   : > { %v1463_v0 = vrot.slane %v1461_v49, 1  ;;  %v1452_v63 = vor.u32 %v1451_v47, %v1447_v45  ;;  %v1456_v1 = vrot.slane %v1454_v52, 1  ;;  %v1255_v3 = vsel %vm1223_vm2, %v1253_v54, %v1254_v55  ;;  %v3380_v55 = vld [vmem:[%s3508_s9 + $0x60] sm:$0xff]  }
  0x64   : > { %1544 = vrot.lane.b32.xlu1 %v1433_v4, %s3433_s30  ;;  %v1087_v37 = vsel %vm971_vm4, %v1082_v14, %v1086_v23  ;;  %v3877_v4 = vrot.slane %v866_v57, 7  ;;  %v869_v5 = vshll.u32 %v3373_v35, 16  ;;  %v873_v6 = vshrl.u32 %v3374_v58, 16 }
  0x65   : > { %v1103_v7 = vshll.u32 %v3871_v61, 16  ;;  %v3882_v8 = vsel %vm3525_vm3, 0, %v587_v60  ;;  %v1601_v10 = vrot.slane %v3835_v18, 1  ;;  %v3890_v13 = vsel %vm3525_vm3, %v577_v11, 0 }
  0x66   : > { %1546 = vrot.lane.b32.xlu0 %v1445_v2, %s3433_s30  ;;  %v1468_v2 = vrot.slane %v1466_v51, 1  ;;  %v1457_v17 = vsel %vm971_vm4, %v1452_v63, %v1456_v1  ;;  %v1464_v21 = vor.u32 %v1463_v0, %v1459_v62  ;;  %v876_v14 = vshll.u32 %v3374_v58, 16 }
  0x67   : > { %v3905_v23 = vsel %vm3525_vm3, %v584_v40, 0  ;;  %v1115_v20 = vshll.u32 %v3882_v8, 16  ;;  %v871_v11 = vor.u32 %v869_v5, %v3877_v4  ;;  %v3909_v24 = vrot.slane %v873_v6, 7 }
  0x68   : > { %1636 = vrot.lane.b32.xlu1 %v1597_v22, %s3434_s13  ;;  %v1602_v22 = vrot.slane %v3849_v34, 1  ;;  %v1101_v27 = vshrl.u32 %v3871_v61, 16  ;;  %v1105_v28 = vrot.slane %v1103_v7, 1  ;;  %v1108_v29 = vshll.u32 %v3890_v13, 16 }
  0x69   : > { %v3924_v34 = vsel %vm1922_vm5, %v3885_v9, 0  ;;  %v1469_v35 = vsel %vm971_vm4, %v1464_v21, %v1468_v2  ;;  %v1605_v39 = vrot.slane %v3860_v48, 1  ;;  %v1120_v40 = vshll.u32 %v3905_v23, 16 }
  0x6a   : > { %1638 = vrot.lane.b32.xlu0 %v1600_v26, %s3434_s13  ;;  %v3912_v26 = vld [vmem:[%s3683_s17 + $0x18] sm:$0xff]   ;;  %3163 = vmatpush3.bf16.msra.mxu0 %v3924_v34  ;;  %v1113_v44 = vshrl.u32 %v3882_v8, 16  ;;  %v1117_v45 = vrot.slane %v1115_v20, 1  ;;  %v3939_v46 = vsel %vm3525_vm3, 0, %v871_v11  ;;  %v878_v47 = vor.u32 %v876_v14, %v3909_v24 }
  0x6b   : > { %3196 = vmatprep.subr.bf16.mxu0 %v3912_v26  ;;  %v1106_v49 = vor.u32 %v1105_v28, %v1101_v27  ;;  %v1110_v52 = vrot.slane %v1108_v29, 1  ;;  %v596_v48 = vshrl.u32 %v3917_v31, 16  ;;  %v592_v54 = vshll.u32 %v3893_v15, 16  ;;  %v3381_v29 = vld [vmem:[%s3508_s9 + $0x68] sm:$0xff]  }
  0x6c   : > { %1178 = vrot.lane.b32.xlu1 %v1087_v37, %s3430_s26  ;;  %v1604_v37 = vrot.slane %v3845_v32, 1  ;;  %v1122_v58 = vrot.slane %v1120_v40, 1  ;;  %v1473_v60 = vshll.u32 %v3939_v46, 16  ;;  %v1118_v62 = vor.u32 %v1117_v45, %v1113_v44 }
  0x6d   : > { %v1256_v63 = vrot.slane %v3871_v61, 1  ;;  %v3955_v1 = vsel %vm3525_vm3, 0, %v878_v47  ;;  %v1111_v6 = vsel %vm971_vm4, %v1106_v49, %v1110_v52  ;;  %v598_v7 = vrot.slane %v596_v48, 7 }
  0x6e   : > { %1180 = vrot.lane.b32.xlu0 %v1099_v53, %s3430_s26  ;;  %v1606_v57 = vsel %vm1223_vm2, %v1604_v37, %v1605_v39  ;;  %v599_v2 = vshll.u32 %v3917_v31, 16  ;;  %v1259_v21 = vrot.slane %v3882_v8, 1  ;;  %v1485_v14 = vshll.u32 %v3955_v1, 16 }
  0x6f   : > { %v1123_v20 = vsel %vm971_vm4, %v1118_v62, %v1122_v58  ;;  %v1924_v31 = vsel %vm1922_vm5, %v3896_v16, 0  ;;  %v1483_v16 = vshrl.u32 %v3955_v1, 16 }
  0x70   : > { %1289 = vrot.lane.b32.xlu1 %v1252_v59, %s3431_s27  ;;  %v1257_v59 = vrot.slane %v3890_v13, 1  ;;  %v1260_v13 = vrot.slane %v3905_v23, 1  ;;  %v3977_v23 = vsel %vm3525_vm3, %v3909_v24, 0  ;;  %v601_v37 = vor.u32 %v599_v2, %v598_v7  ;;  %3127 = vmatpush3.bf16.msra.mxu1 %v1924_v31 }
  0x71   : > { %v883_v24 = vshll.u32 %v3380_v55, 16  ;;  %3232 = vmatprep.subr.bf16.mxu1 %v3687_v50  ;;  %v1487_v45 = vrot.slane %v1485_v14, 1  ;;  %v1490_v47 = vshll.u32 %v3977_v23, 16  ;;  %v1610_v14 = vrot.slane %v3955_v1, 1 }
  0x72   : > { %1291 = vrot.lane.b32.xlu0 %v1255_v3, %s3431_s27  ;;  %v3960_v3 = vsel %vm3525_vm3, %v3877_v4, 0  ;;  %v1471_v4 = vshrl.u32 %v3939_v46, 16  ;;  %v4001_v58 = vsel %vm3525_vm3, 0, %v601_v37 }
  0x73   : > { %v1478_v28 = vshll.u32 %v3960_v3, 16  ;;  %v1488_v62 = vor.u32 %v1487_v45, %v1483_v16  ;;  %v1139_v2 = vshll.u32 %v4001_v58, 16 }
  0x74   : > { %1336 = vrot.lane.b32.xlu1 %v3835_v18, %s3432_s29  ;;  %v589_v18 = vshrl.u32 %v3893_v15, 16 }
  0x75   : > { %v1480_v48 = vrot.slane %v1478_v28, 1 }
  0x76   : > { %1338 = vrot.lane.b32.xlu0 %v3845_v32, %s3432_s29  ;;  %v1603_v32 = vsel %vm1223_vm2, %v1601_v10, %v1602_v22  ;;  %v591_v53 = vrot.slane %v589_v18, 7  ;;  %v1475_v22 = vrot.slane %v1473_v60, 1 }
  0x78   : > { %1548 = vrot.lane.b32.xlu1 %v1457_v17, %s3433_s30  ;;  %v594_v15 = vor.u32 %v592_v54, %v591_v53  ;;  %v880_v17 = vshrl.u32 %v3380_v55, 16  ;;  %v1476_v52 = vor.u32 %v1475_v22, %v1471_v4  ;;  %v887_v54 = vshrl.u32 %v3381_v29, 16 }
  0x7a   : > { %1550 = vrot.lane.b32.xlu0 %v1469_v35, %s3433_s30  ;;  %v1258_v35 = vsel %vm1223_vm2, %v1256_v63, %v1257_v59  ;;  %v3987_v40 = vsel %vm3525_vm3, 0, %v594_v15  ;;  %v882_v44 = vrot.slane %v880_v17, 7  ;;  %v4007_v59 = vsel %vm3525_vm3, %v591_v53, 0 }
  0x7b   : > { %v1607_v63 = vrot.slane %v3939_v46, 1  ;;  %v889_v53 = vrot.slane %v887_v54, 7  ;;  %v1132_v17 = vshll.u32 %v4007_v59, 16  ;;  %v1263_v45 = vrot.slane %v4007_v59, 1  ;;  %v3385_v54 = vld [vmem:[%s3508_s9 + $0x70] sm:$0xff]  }
  0x7c   : > { %1640 = vrot.lane.b32.xlu1 %v1603_v32, %s3434_s13  ;;  %v1261_v32 = vsel %vm1223_vm2, %v1259_v21, %v1260_v13  ;;  %v885_v60 = vor.u32 %v883_v24, %v882_v44  ;;  %v1125_v13 = vshrl.u32 %v3987_v40, 16  ;;  %v680_v21 = vsel %vm3525_vm3, %v598_v7, 0 }
  0x7d   : > { %v1141_v7 = vrot.slane %v1139_v2, 1  ;;  %v1134_v37 = vrot.slane %v1132_v17, 1  ;;  %v1265_v2 = vrot.slane %v4001_v58, 1 }
  0x7e   : > { %v1161_v51 = vpop.permute.xlu0 %1160  ;;  %v1272_v0 = vpop.permute.xlu1 %1271  ;;  %1642 = vrot.lane.b32.xlu0 %v1606_v57, %s3434_s13  ;;  %v1127_v57 = vshll.u32 %v3987_v40, 16 }
  0x7f   : > { %v1656_v5 = vsel %vm1654_vm6, 0, %v1161_v51  ;;  %v3383_v51 = vld [vmem:[%s3515_s12 + $0x70] sm:$0xff]  }
  0x80   : > { %v1689_v10 = vsel %vm1687_vm7, %v1656_v5, %v1272_v0  ;;  %1182 = vrot.lane.b32.xlu1 %v1111_v6, %s3430_s26  ;;  %v1492_v0 = vrot.slane %v1490_v47, 1  ;;  %v1608_v5 = vrot.slane %v3960_v3, 1  ;;  %v1481_v6 = vsel %vm971_vm4, %v1476_v52, %v1480_v48 }
  0x81   : > { %v1129_v15 = vrot.slane %v1127_v57, 1  ;;  %v4023_v3 = vsel %vm3525_vm3, 0, %v885_v60  ;;  %v603_v4 = vshrl.u32 %v3383_v51, 16  ;;  %v606_v24 = vshll.u32 %v3383_v51, 16 }
  0x82   : > { %v1319_v11 = vpop.permute.xlu0 %1318  ;;  %v1531_v27 = vpop.permute.xlu1 %1530  ;;  %1184 = vrot.lane.b32.xlu0 %v1123_v20, %s3430_s26  ;;  %v1493_v22 = vsel %vm971_vm4, %v1488_v62, %v1492_v0  ;;  %v1611_v20 = vrot.slane %v3977_v23, 1  ;;  %v4042_v47 = vsel %vm3525_vm3, %v882_v44, 0  ;;  %v1262_v52 = vrot.slane %v3987_v40, 1 }
  0x83   : > { %v1722_v18 = vsel %vm1720_vm8, %v1689_v10, %v1319_v11  ;;  %v890_v10 = vshll.u32 %v3381_v29, 16  ;;  %v1137_v11 = vshrl.u32 %v4001_v58, 16  ;;  %v1495_v60 = vshrl.u32 %v4023_v3, 16 }
  0x84   : > { %v1755_v39 = vsel %vm1753_vm9, %v1722_v18, %v1531_v27  ;;  %1293 = vrot.lane.b32.xlu1 %v1258_v35, %s3431_s27  ;;  %v1144_v27 = vshll.u32 %v680_v21, 16  ;;  %v1609_v18 = vsel %vm1223_vm2, %v1607_v63, %v1608_v5  ;;  %v1130_v35 = vor.u32 %v1129_v15, %v1125_v13 }
  0x85   : > { %v892_v28 = vor.u32 %v890_v10, %v889_v53  ;;  %v1612_v16 = vsel %vm1223_vm2, %v1610_v14, %v1611_v20  ;;  %v4055_v44 = vsel %vm3525_vm3, %v889_v53, 0  ;;  %v1502_v62 = vshll.u32 %v4042_v47, 16 }
  0x86   : > { %v1623_v49 = vpop.permute.xlu0 %1622  ;;  %1295 = vrot.lane.b32.xlu0 %v1261_v32, %s3431_s27  ;;  %v1142_v32 = vor.u32 %v1141_v7, %v1137_v11  ;;  %v1135_v57 = vsel %vm971_vm4, %v1130_v35, %v1134_v37  ;;  %v1266_v10 = vrot.slane %v680_v21, 1  ;;  %v894_v15 = vshrl.u32 %v3385_v54, 16  ;;  %v4070_v21 = vld [vmem:[%s3508_s9 + $0x78] sm:$0xff]  }
  0x87   : > { %v3996_v55 = vsel %vm1786_vm10, %v1755_v39, %v1623_v49  ;;  %v1497_v39 = vshll.u32 %v4023_v3, 16  ;;  %v1146_v49 = vrot.slane %v1144_v27, 1  ;;  %v4048_v48 = vsel %vm3525_vm3, 0, %v892_v28 }
  0x88   : > { %3164 = vmatprep.mubr.msk.bf16.mxu0 %vm1889_vm11, %v3996_v55  ;;  %1340 = vrot.lane.b32.xlu1 %v3939_v46, %s3432_s29  ;;  %v3384_v46 = vld [vmem:[%s3515_s12 + $0x78] sm:$0xff]   ;;  %v1509_v13 = vshll.u32 %v4048_v48, 16  ;;  %v1264_v17 = vsel %vm1223_vm2, %v1262_v52, %v1263_v45  ;;  %v1504_v14 = vrot.slane %v1502_v62, 1  ;;  %v1267_v27 = vsel %vm1223_vm2, %v1265_v2, %v1266_v10 }
  0x89   : > { %v610_v23 = vshrl.u32 %v3384_v46, 16  ;;  %v1499_v59 = vrot.slane %v1497_v39, 1  ;;  %v613_v5 = vshll.u32 %v3384_v46, 16  ;;  %v1147_v53 = vsel %vm971_vm4, %v1142_v32, %v1146_v49 }
  0x8a   : > { %1342 = vrot.lane.b32.xlu0 %v3955_v1, %s3432_s29  ;;  %v605_v1 = vrot.slane %v603_v4, 7  ;;  %v1514_v4 = vshll.u32 %v4055_v44, 16  ;;  %v1507_v28 = vshrl.u32 %v4048_v48, 16  ;;  %v1613_v35 = vrot.slane %v4023_v3, 1 }
  0x8b   : > { %v612_v63 = vrot.slane %v610_v23, 7  ;;  %v1500_v46 = vor.u32 %v1499_v59, %v1495_v60  ;;  %v897_v23 = vshll.u32 %v3385_v54, 16  ;;  %v1614_v32 = vrot.slane %v4042_v47, 1 }
  0x8c   : > { %1552 = vrot.lane.b32.xlu1 %v1481_v6, %s3433_s30  ;;  %v608_v0 = vor.u32 %v606_v24, %v605_v1  ;;  %v4081_v39 = vsel %vm3525_vm3, %v605_v1, 0  ;;  %v4083_v24 = vrot.slane %v894_v15, 7  ;;  %v1516_v45 = vrot.slane %v1514_v4, 1 }
  0x8d   : > { %v4033_v29 = vpop.permute.xlu0 %1322  ;;  %v1321_v31 = vpop.permute.xlu1 %1320  ;;  %v615_v11 = vor.u32 %v613_v5, %v612_v63  ;;  %v901_v60 = vshrl.u32 %v4070_v21, 16  ;;  %v1156_v62 = vshll.u32 %v4081_v39, 16 }
  0x8e   : > { %1554 = vrot.lane.b32.xlu0 %v1493_v22, %s3433_s30  ;;  %v4067_v20 = vsel %vm3525_vm3, 0, %v608_v0  ;;  %v899_v2 = vor.u32 %v897_v23, %v4083_v24 }
  0x8f   : > { %v1151_v49 = vshll.u32 %v4067_v20, 16  ;;  %v4092_v1 = vsel %vm3525_vm3, 0, %v615_v11  ;;  %v903_v15 = vrot.slane %v901_v60, 7  ;;  %v1268_v23 = vrot.slane %v4067_v20, 1 }
  0x90   : > { %1644 = vrot.lane.b32.xlu1 %v1609_v18, %s3434_s13  ;;  %v1511_v18 = vrot.slane %v1509_v13, 1 }
  0x92   : > { %v1276_v51 = vpop.permute.xlu1 %1275  ;;  %1646 = vrot.lane.b32.xlu0 %v1612_v16, %s3434_s13  ;;  %v1512_v59 = vor.u32 %v1511_v18, %v1507_v28  ;;  %v4139_v28 = vsel %vm3525_vm3, 0, %v899_v2 }
  0x93   : > { %v1274_v6 = vpop.permute.xlu0 %1273 }
  0x94   : > { %1186 = vrot.lane.b32.xlu1 %v1135_v57, %s3430_s26  ;;  %v1505_v57 = vsel %vm971_vm4, %v1500_v46, %v1504_v14  ;;  %v1615_v46 = vsel %vm1223_vm2, %v1613_v35, %v1614_v32  ;;  %v1617_v14 = vrot.slane %v4055_v44, 1 }
  0x96   : > { %v1625_v22 = vpop.permute.xlu1 %1624  ;;  %1188 = vrot.lane.b32.xlu0 %v1147_v53, %s3430_s26  ;;  %v1153_v53 = vrot.slane %v1151_v49, 1 }
  0x97   : > { %v1163_v7 = vpop.permute.xlu0 %1162 }
  0x98   : > { %v1658_v37 = vsel %vm1654_vm6, %v3559_v43, %v1163_v7  ;;  %1297 = vrot.lane.b32.xlu1 %v1264_v17, %s3431_s27  ;;  %v904_v17 = vshll.u32 %v4070_v21, 16  ;;  %v1158_v21 = vrot.slane %v1156_v62, 1 }
  0x99   : > { %v1691_v16 = vsel %vm1687_vm7, %v1658_v37, %v1274_v6  ;;  %v1149_v6 = vshrl.u32 %v4067_v20, 16 }
  0x9a   : > { %v1165_v52 = vpop.permute.xlu1 %1164  ;;  %v1724_v43 = vsel %vm1720_vm8, %v1691_v16, %v1321_v31  ;;  %1299 = vrot.lane.b32.xlu0 %v1267_v27, %s3431_s27  ;;  %v4101_v31 = vsel %vm3525_vm3, %v612_v63, 0  ;;  %v1825_v63 = vshll.u32 %v4092_v1, 16  ;;  %v906_v35 = vor.u32 %v904_v17, %v903_v15 }
  0x9b   : > { %v1660_v54 = vsel %vm1654_vm6, %v3552_v38, %v1165_v52  ;;  %v1533_v47 = vpop.permute.xlu0 %1532  ;;  %v3388_v38 = vld [vmem:[%s3683_s17 + $0x20] ss:$0 sps:$4 sm:$0xff]   ;;  %v1830_v7 = vshll.u32 %v4101_v31, 16  ;;  %v1154_v44 = vor.u32 %v1153_v53, %v1149_v6  ;;  %v1269_v16 = vrot.slane %v4081_v39, 1 }
  0x9c   : > { %v1693_v0 = vsel %vm1687_vm7, %v1660_v54, %v1276_v51  ;;  %v1757_v5 = vsel %vm1753_vm9, %v1724_v43, %v1533_v47  ;;  %1344 = vrot.lane.b32.xlu1 %v4023_v3, %s3432_s29  ;;  %v1616_v3 = vrot.slane %v4048_v48, 1  ;;  %v1827_v27 = vrot.slane %v1825_v63, 1 }
  0x9d   : > { %v1790_v10 = vsel %vm1786_vm10, %v1757_v5, %v1625_v22  ;;  %v1726_v13 = vsel %vm1720_vm8, %v1693_v0, %v4033_v29  ;;  %v1517_v29 = vsel %vm971_vm4, %v1512_v59, %v1516_v45  ;;  %v1521_v45 = vshll.u32 %v4139_v28, 16 }
  0x9e   : > { %3128 = vmatprep.mubr.msk.bf16.mxu1 %vm1889_vm11, %v1790_v10  ;;  %3165 = vmatmul.mubr.msk.bf16.vlgmr.msra.gmra.mrb[0].mxu0 %vm1889_vm11, %v1790_v10  ;;  %v1535_v51 = vpop.permute.xlu1 %1534  ;;  %v1618_v37 = vsel %vm1223_vm2, %v1616_v3, %v1617_v14  ;;  %v1159_v49 = vsel %vm971_vm4, %v1154_v44, %v1158_v21  ;;  %v1832_v52 = vrot.slane %v1830_v7, 1  ;;  %v969_v43 = vsel %vm3525_vm3, %v4083_v24, 0 }
  0x9f   : > { %1346 = vrot.lane.b32.xlu0 %v4048_v48, %s3432_s29  ;;  %v1759_v4 = vsel %vm1753_vm9, %v1726_v13, %v1535_v51  ;;  %v1627_v22 = vpop.permute.xlu0 %1626  ;;  %3197 = vmatpush3.bf16.msra.mxu0 %v3912_v26  ;;  %v2276_v48 = vsel %vm1922_vm5, %v3388_v38, 0  ;;  %v1823_v26 = vshrl.u32 %v4092_v1, 16  ;;  %v954_v60 = vsel %vm3525_vm3, 0, %v906_v35 }
  0xa0   : > { %v4126_v11 = vsel %vm1786_vm10, %v1759_v4, %v1627_v22  ;;  %1556 = vrot.lane.b32.xlu1 %v1505_v57, %s3433_s30  ;;  %3303 = vmatprep.subr.msk.bf16.mxu0 %vm1922_vm5, %v3388_v38  ;;  %v1519_v39 = vshrl.u32 %v4139_v28, 16  ;;  %v1523_v54 = vrot.slane %v1521_v45, 1  ;;  %v1526_v47 = vshll.u32 %v969_v43, 16 }
  0xa1   : > { %3129 = vmatmul.mubr.msk.bf16.vlgmr.msra.gmra.mrb[0].mxu1 %vm1889_vm11, %v4126_v11  ;;  %3168 = vmatprep.mubr.msk.bf16.mxu0 %vm1889_vm11, %v4126_v11  ;;  %v1838_v24 = vrot.slane %v4092_v1, 1  ;;  %v1839_v0 = vrot.slane %v4101_v31, 1  ;;  %v1849_v5 = vshll.u32 %v954_v60, 16  ;;  %v1847_v53 = vshrl.u32 %v954_v60, 16 }
  0xa2   : > { %v1167_v18 = vpop.permute.xlu1 %1166  ;;  %3234 = vmatpush3.bf16.msra.mxu1 %v3687_v50  ;;  %v1828_v50 = vor.u32 %v1827_v27, %v1823_v26  ;;  %v1524_v2 = vor.u32 %v1523_v54, %v1519_v39  ;;  %v1528_v38 = vrot.slane %v1526_v47, 1  ;;  %v1619_v17 = vrot.slane %v4139_v28, 1 }
  0xa3   : > { %1558 = vrot.lane.b32.xlu0 %v1517_v29, %s3433_s30  ;;  %3199 = vmatpush3.bf16.msra.mxu0 %v2276_v48  ;;  %v1840_v13 = vsel %vm1223_vm2, %v1838_v24, %v1839_v0  ;;  %v1851_v63 = vrot.slane %v1849_v5, 1  ;;  %v1662_v31 = vsel %vm1654_vm6, %v3588_v19, %v1167_v18  ;;  %v1620_v4 = vrot.slane %v969_v43, 1 }
  0xa4   : > { %1648 = vrot.lane.b32.xlu1 %v1615_v46, %s3434_s13  ;;  %3302 = vmatprep.subr.msk.bf16.mxu1 %vm1922_vm5, %v3885_v9  ;;  %v1169_v32 = vpop.permute.xlu0 %1168  ;;  %v1270_v9 = vsel %vm1223_vm2, %v1268_v23, %v1269_v16  ;;  %v1833_v62 = vsel %vm971_vm4, %v1828_v50, %v1832_v52 }
  0xa5   : > { %v1852_v46 = vor.u32 %v1851_v63, %v1847_v53  ;;  %v1664_v19 = vsel %vm1654_vm6, %v3600_v36, %v1169_v32  ;;  %v1621_v27 = vsel %vm1223_vm2, %v1619_v17, %v1620_v4  ;;  %v1861_v36 = vrot.slane %v954_v60, 1 }
  0xa6   : > { %v1278_v57 = vpop.permute.xlu1 %1277  ;;  %3235 = vmatpush3.bf16.msra.mxu1 %v3924_v34  ;;  %v970_v34 = vsel %vm3525_vm3, %v903_v15, 0  ;;  %v1529_v15 = vsel %vm971_vm4, %v1524_v2, %v1528_v38 }
  0xa7   : > { %1650 = vrot.lane.b32.xlu0 %v1618_v37, %s3434_s13  ;;  %v1854_v51 = vshll.u32 %v970_v34, 16  ;;  %v1695_v12 = vsel %vm1687_vm7, %v1662_v31, %v1278_v57 }
  0xa8   : > { %1190 = vrot.lane.b32.xlu1 %v1159_v49, %s3430_s26  ;;  %v1280_v59 = vpop.permute.xlu0 %1279 }
  0xa9   : > { %v1856_v14 = vrot.slane %v1854_v51, 1  ;;  %v1697_v48 = vsel %vm1687_vm7, %v1664_v19, %v1280_v59 }
  0xaa   : > { %v1325_v6 = vpop.permute.xlu1 %1324 }
  0xab   : > { %1301 = vrot.lane.b32.xlu0 %v1270_v9, %s3431_s27  ;;  %v1728_v22 = vsel %vm1720_vm8, %v1695_v12, %v1325_v6  ;;  %v1857_v37 = vsel %vm971_vm4, %v1852_v46, %v1856_v14 }
  0xac   : > { %1834 = vrot.lane.b32.xlu1 %v1833_v62, %s3430_s26  ;;  %v1327_v10 = vpop.permute.xlu0 %1326  ;;  %s372_s26 = scalar_lea.vmem %s4537_s3, %s4555_s19 }
  0xad   : > { %v1730_v26 = vsel %vm1720_vm8, %v1697_v48, %v1327_v10 }
  0xae   : > { %v1537_v3 = vpop.permute.xlu1 %1536 }
  0xaf   : > { %1348 = vrot.lane.b32.xlu0 %v4139_v28, %s3432_s29  ;;  %v1761_v21 = vsel %vm1753_vm9, %v1728_v22, %v1537_v3  ;;  %v1862_v28 = vrot.slane %v970_v34, 1 }
  0xb0   : > { %1841 = vrot.lane.b32.xlu1 %v1840_v13, %s3431_s27  ;;  %v1539_v29 = vpop.permute.xlu0 %1538 }
  0xb1   : > { %v1763_v18 = vsel %vm1753_vm9, %v1730_v26, %v1539_v29  ;;  %v1863_v45 = vsel %vm1223_vm2, %v1861_v36, %v1862_v28 }
  0xb2   : > { %v1629_v7 = vpop.permute.xlu1 %1628 }
  0xb3   : > { %1560 = vrot.lane.b32.xlu0 %v1529_v15, %s3433_s30  ;;  %v4184_v44 = vsel %vm1786_vm10, %v1761_v21, %v1629_v7 }
  0xb4   : > { %1844 = vrot.lane.b32.xlu1 %v954_v60, %s3432_s29  ;;  %3132 = vmatprep.mubr.msk.bf16.mxu1 %vm1889_vm11, %v4184_v44  ;;  %v1631_v35 = vpop.permute.xlu0 %1630  ;;  %s378_s29 = scalar_lea.vmem %s4538_s4, %s4555_s19 }
  0xb5   : > { %3169 = vmatmul.mubr.msk.bf16.gmra.mrb[4].mxu0 %vm1889_vm11, %v4184_v44  ;;  %v1796_v23 = vsel %vm1786_vm10, %v1763_v18, %v1631_v35 }
  0xb6   : > { %v1171_v16 = vpop.permute.xlu1 %1170  ;;  %3133 = vmatmul.mubr.msk.bf16.gmra.mrb[4].mxu1 %vm1889_vm11, %v1796_v23  ;;  %3172 = vmatprep.mubr.msk.bf16.mxu0 %vm1889_vm11, %v1796_v23 }
  0xb7   : > { %1652 = vrot.lane.b32.xlu0 %v1621_v27, %s3434_s13  ;;  %v1666_v60 = vsel %vm1654_vm6, %v3656_v25, %v1171_v16 }
  0xb8   : > { %1858 = vrot.lane.b32.xlu1 %v1857_v37, %s3433_s30  ;;  %v1173_v32 = vpop.permute.xlu0 %1172 }
  0xb9   : > { %v1668_v47 = vsel %vm1654_vm6, %v3668_v33, %v1173_v32 }
  0xba   : > { %v1282_v49 = vpop.permute.xlu1 %1281 }
  0xbb   : > { %1864 = vrot.lane.b32.xlu0 %v1863_v45, %s3434_s13  ;;  %v1699_v9 = vsel %vm1687_vm7, %v1666_v60, %v1282_v49 }
  0xbc   : > { %v1284_v50 = vpop.permute.xlu0 %1283 }
  0xbd   : > { %v1701_v24 = vsel %vm1687_vm7, %v1668_v47, %v1284_v50 }
  0xbe   : > { %v1329_v52 = vpop.permute.xlu1 %1328 }
  0xbf   : > { %v1732_v39 = vsel %vm1720_vm8, %v1699_v9, %v1329_v52 }
  0xc0   : > { %v1331_v43 = vpop.permute.xlu0 %1330 }
  0xc1   : > { %v1734_v5 = vsel %vm1720_vm8, %v1701_v24, %v1331_v43 }
  0xc2   : > { %v1541_v57 = vpop.permute.xlu1 %1540 }
  0xc3   : > { %v1765_v59 = vsel %vm1753_vm9, %v1732_v39, %v1541_v57 }
  0xc4   : > { %v1543_v54 = vpop.permute.xlu0 %1542 }
  0xc5   : > { %v1767_v25 = vsel %vm1753_vm9, %v1734_v5, %v1543_v54 }
  0xc6   : > { %v1633_v62 = vpop.permute.xlu1 %1632 }
  0xc7   : > { %v1798_v0 = vsel %vm1786_vm10, %v1765_v59, %v1633_v62 }
  0xc8   : > { %3136 = vmatprep.mubr.msk.bf16.mxu1 %vm1889_vm11, %v1798_v0  ;;  %3173 = vmatmul.mubr.msk.bf16.gmra.mrb[8].mxu0 %vm1889_vm11, %v1798_v0  ;;  %v1635_v6 = vpop.permute.xlu0 %1634 }
  0xc9   : > { %v1800_v34 = vsel %vm1786_vm10, %v1767_v25, %v1635_v6 }
  0xca   : > { %v1175_v2 = vpop.permute.xlu1 %1174  ;;  %3137 = vmatmul.mubr.msk.bf16.gmra.mrb[8].mxu1 %vm1889_vm11, %v1800_v34  ;;  %3176 = vmatprep.mubr.msk.bf16.mxu0 %vm1889_vm11, %v1800_v34 }
  0xcb   : > { %v1670_v51 = vsel %vm1654_vm6, %v3733_v30, %v1175_v2 }
  0xcc   : > { %v1177_v33 = vpop.permute.xlu0 %1176 }
  0xcd   : > { %v1672_v15 = vsel %vm1654_vm6, %v3743_v41, %v1177_v33 }
  0xce   : > { %v1286_v38 = vpop.permute.xlu1 %1285 }
  0xcf   : > { %v1703_v3 = vsel %vm1687_vm7, %v1670_v51, %v1286_v38 }
  0xd0   : > { %v1288_v10 = vpop.permute.xlu0 %1287 }
  0xd1   : > { %v1705_v22 = vsel %vm1687_vm7, %v1672_v15, %v1288_v10 }
  0xd2   : > { %v1333_v13 = vpop.permute.xlu1 %1332 }
  0xd3   : > { %v1736_v31 = vsel %vm1720_vm8, %v1703_v3, %v1333_v13 }
  0xd4   : > { %v1335_v53 = vpop.permute.xlu0 %1334 }
  0xd5   : > { %v1738_v46 = vsel %vm1720_vm8, %v1705_v22, %v1335_v53 }
  0xd6   : > { %v1545_v63 = vpop.permute.xlu1 %1544 }
  0xd7   : > { %v1769_v17 = vsel %vm1753_vm9, %v1736_v31, %v1545_v63 }
  0xd8   : > { %v1547_v12 = vpop.permute.xlu0 %1546 }
  0xd9   : > { %v1771_v30 = vsel %vm1753_vm9, %v1738_v46, %v1547_v12 }
  0xda   : > { %v1637_v4 = vpop.permute.xlu1 %1636 }
  0xdb   : > { %v1802_v29 = vsel %vm1786_vm10, %v1769_v17, %v1637_v4 }
  0xdc   : > { %3140 = vmatprep.mubr.msk.bf16.mxu1 %vm1889_vm11, %v1802_v29  ;;  %3177 = vmatmul.mubr.msk.bf16.gmra.mrb[12].mxu0 %vm1889_vm11, %v1802_v29  ;;  %v1639_v14 = vpop.permute.xlu0 %1638 }
  0xdd   : > { %3200 = vmatprep.mubr.msk.bf16.mxu0 %vm1889_vm11, %v4126_v11  ;;  %v4234_v41 = vsel %vm1786_vm10, %v1771_v30, %v1639_v14 }
  0xde   : > { %v1179_v19 = vpop.permute.xlu1 %1178  ;;  %3141 = vmatmul.mubr.msk.bf16.gmra.mrb[12].mxu1 %vm1889_vm11, %v4234_v41 }
  0xdf   : > { %v1674_v11 = vsel %vm1654_vm6, %v3797_v42, %v1179_v19 }
  0xe0   : > { %v1181_v21 = vpop.permute.xlu0 %1180 }
  0xe2   : > { %v1290_v7 = vpop.permute.xlu1 %1289 }
  0xe3   : > { %v1707_v28 = vsel %vm1687_vm7, %v1674_v11, %v1290_v7 }
  0xe4   : > { %3201 = vmatmul.mubr.msk.bf16.vlgmr.msra.gmra.mrb[0].mxu0 %vm1889_vm11, %v4184_v44  ;;  %v1292_v48 = vpop.permute.xlu0 %1291  ;;  %v1676_v44 = vsel %vm1654_vm6, %v3806_v56, %v1181_v21 }
  0xe5   : > { %3204 = vmatprep.mubr.msk.bf16.mxu0 %vm1889_vm11, %v1796_v23  ;;  %v1709_v16 = vsel %vm1687_vm7, %v1676_v44, %v1292_v48 }
  0xe6   : > { %v1337_v26 = vpop.permute.xlu1 %1336 }
  0xe7   : > { %v1740_v18 = vsel %vm1720_vm8, %v1707_v28, %v1337_v26 }
  0xe8   : > { %v1339_v27 = vpop.permute.xlu0 %1338 }
  0xe9   : > { %v1742_v42 = vsel %vm1720_vm8, %v1709_v16, %v1339_v27 }
  0xea   : > { %v1549_v36 = vpop.permute.xlu1 %1548 }
  0xeb   : > { %v1773_v37 = vsel %vm1753_vm9, %v1740_v18, %v1549_v36 }
  0xec   : > { %3205 = vmatmul.mubr.msk.bf16.gmra.mrb[4].mxu0 %vm1889_vm11, %v1798_v0  ;;  %v1551_v35 = vpop.permute.xlu0 %1550 }
  0xed   : > { %3208 = vmatprep.mubr.msk.bf16.mxu0 %vm1889_vm11, %v1800_v34  ;;  %v1775_v32 = vsel %vm1753_vm9, %v1742_v42, %v1551_v35 }
  0xee   : > { %v1641_v23 = vpop.permute.xlu1 %1640 }
  0xef   : > { %v4252_v45 = vsel %vm1786_vm10, %v1773_v37, %v1641_v23 }
  0xf0   : > { %3144 = vmatprep.mubr.msk.bf16.mxu1 %vm1889_vm11, %v4252_v45  ;;  %v1643_v49 = vpop.permute.xlu0 %1642 }
  0xf1   : > { %v4259_v50 = vsel %vm1786_vm10, %v1775_v32, %v1643_v49 }
  0xf2   : > { %v1183_v56 = vpop.permute.xlu1 %1182  ;;  %3145 = vmatmul.mubr.msk.bf16.gmra.mrb[16].mxu1 %vm1889_vm11, %v4259_v50 }
  0xf3   : > { %v1678_v54 = vsel %vm1654_vm6, %v3871_v61, %v1183_v56 }
  0xf4   : > { %3209 = vmatmul.mubr.msk.bf16.gmra.mrb[8].mxu0 %vm1889_vm11, %v1802_v29  ;;  %v1185_v52 = vpop.permute.xlu0 %1184 }
  0xf5   : > { %3212 = vmatprep.mubr.msk.bf16.mxu0 %vm1889_vm11, %v4234_v41  ;;  %v1680_v24 = vsel %vm1654_vm6, %v3882_v8, %v1185_v52 }
  0xf6   : > { %v1294_v43 = vpop.permute.xlu1 %1293 }
  0xf7   : > { %v1711_v47 = vsel %vm1687_vm7, %v1678_v54, %v1294_v43 }
  0xf8   : > { %v1296_v57 = vpop.permute.xlu0 %1295 }
  0xf9   : > { %v1713_v25 = vsel %vm1687_vm7, %v1680_v24, %v1296_v57 }
  0xfa   : > { %v1341_v60 = vpop.permute.xlu1 %1340 }
  0xfb   : > { %v1744_v59 = vsel %vm1720_vm8, %v1711_v47, %v1341_v60 }
  0xfc   : > { %3213 = vmatmul.mubr.msk.bf16.gmra.mrb[12].mxu0 %vm1889_vm11, %v4252_v45  ;;  %v1343_v9 = vpop.permute.xlu0 %1342 }
  0xfd   : > { %3216 = vmatprep.mubr.msk.bf16.mxu0 %vm1889_vm11, %v4259_v50  ;;  %v1746_v34 = vsel %vm1720_vm8, %v1713_v25, %v1343_v9 }
  0xfe   : > { %v1553_v39 = vpop.permute.xlu1 %1552 }
  0xff   : > { %v1777_v0 = vsel %vm1753_vm9, %v1744_v59, %v1553_v39 }
 0x100   : > { %v1555_v62 = vpop.permute.xlu0 %1554 }
 0x101   : > { %v1779_v61 = vsel %vm1753_vm9, %v1746_v34, %v1555_v62  ;;  %v4357_v34 = vld [vmem:[%s378_s29] ss:$0 sm:$0xff] }
 0x102   : > { %v1645_v5 = vpop.permute.xlu1 %1644 }
 0x103   : > { %v1810_v6 = vsel %vm1786_vm10, %v1777_v0, %v1645_v5  ;;  %v4355_v5 = vld [vmem:[%s372_s26] ss:$0 sm:$0xff] }
 0x104   : > { %3148 = vmatprep.mubr.msk.bf16.mxu1 %vm1889_vm11, %v1810_v6  ;;  %3217 = vmatmul.mubr.msk.bf16.gmra.mrb[16].mxu0 %vm1889_vm11, %v1810_v6  ;;  %v1647_v2 = vpop.permute.xlu0 %1646 }
 0x105   : > { %v1812_v33 = vsel %vm1786_vm10, %v1779_v61, %v1647_v2 }
 0x106   : > { %v1187_v38 = vpop.permute.xlu1 %1186  ;;  %3149 = vmatmul.mubr.msk.bf16.gmra.mrb[20].mxu1 %vm1889_vm11, %v1812_v33  ;;  %3220 = vmatprep.mubr.msk.bf16.mxu0 %vm1889_vm11, %v1812_v33 }
 0x107   : > { %v1682_v3 = vsel %vm1654_vm6, %v3987_v40, %v1187_v38 }
 0x108   : > { %v1189_v8 = vpop.permute.xlu0 %1188 }
 0x109   : > { %v1684_v17 = vsel %vm1654_vm6, %v4001_v58, %v1189_v8 }
 0x10a   : > { %v1298_v10 = vpop.permute.xlu1 %1297 }
 0x10b   : > { %v1715_v31 = vsel %vm1687_vm7, %v1682_v3, %v1298_v10 }
 0x10c   : > { %v1300_v13 = vpop.permute.xlu0 %1299 }
 0x10d   : > { %v1717_v29 = vsel %vm1687_vm7, %v1684_v17, %v1300_v13 }
 0x10e   : > { %v1345_v53 = vpop.permute.xlu1 %1344 }
 0x10f   : > { %v1748_v12 = vsel %vm1720_vm8, %v1715_v31, %v1345_v53 }
 0x111   : > { %v1347_v63 = vpop.permute.xlu0 %1346 }
 0x112   : > { %v1557_v51 = vpop.permute.xlu1 %1556  ;;  %v1750_v30 = vsel %vm1720_vm8, %v1717_v29, %v1347_v63 }
 0x113   : > { %v1781_v4 = vsel %vm1753_vm9, %v1748_v12, %v1557_v51 }
 0x115   : > { %v1559_v15 = vpop.permute.xlu0 %1558 }
 0x116   : > { %v1649_v22 = vpop.permute.xlu1 %1648  ;;  %v1783_v40 = vsel %vm1753_vm9, %v1750_v30, %v1559_v15 }
 0x117   : > { %v1814_v46 = vsel %vm1786_vm10, %v1781_v4, %v1649_v22 }
 0x118   : > { %3152 = vmatprep.mubr.msk.bf16.mxu1 %vm1889_vm11, %v1814_v46  ;;  %3221 = vmatmul.mubr.msk.bf16.gmra.mrb[20].mxu0 %vm1889_vm11, %v1814_v46 }
 0x119   : > { %v1651_v14 = vpop.permute.xlu0 %1650 }
 0x11a   : > { %v1816_v19 = vsel %vm1786_vm10, %v1783_v40, %v1651_v14  ;;  %v1191_v21 = vpop.permute.xlu1 %1190 }
 0x11b   : > { %3153 = vmatmul.mubr.msk.bf16.gmra.mrb[24].mxu1 %vm1889_vm11, %v1816_v19  ;;  %3224 = vmatprep.mubr.msk.bf16.mxu0 %vm1889_vm11, %v1816_v19  ;;  %v1686_v27 = vsel %vm1654_vm6, %v4067_v20, %v1191_v21 }
 0x11d   : > { %v1302_v58 = vpop.permute.xlu0 %1301 }
 0x11e   : > { %v1835_v7 = vpop.permute.xlu1 %1834  ;;  %v1719_v28 = vsel %vm1687_vm7, %v1686_v27, %v1302_v58 }
 0x11f   : > { %v1867_v18 = vsel %vm1654_vm6, %v4092_v1, %v1835_v7 }
 0x121   : > { %v1349_v48 = vpop.permute.xlu0 %1348 }
 0x122   : > { %v1842_v26 = vpop.permute.xlu1 %1841  ;;  %v1752_v35 = vsel %vm1720_vm8, %v1719_v28, %v1349_v48 }
 0x123   : > { %v1869_v44 = vsel %vm1687_vm7, %v1867_v18, %v1842_v26 }
 0x125   : > { %v1561_v36 = vpop.permute.xlu0 %1560 }
 0x126   : > { %v1845_v11 = vpop.permute.xlu1 %1844  ;;  %v1785_v37 = vsel %vm1753_vm9, %v1752_v35, %v1561_v36 }
 0x127   : > { %v1871_v16 = vsel %vm1720_vm8, %v1869_v44, %v1845_v11 }
 0x129   : > { %v1653_v23 = vpop.permute.xlu0 %1652 }
 0x12a   : > { %v1818_v42 = vsel %vm1786_vm10, %v1785_v37, %v1653_v23  ;;  %v1859_v32 = vpop.permute.xlu1 %1858 }
 0x12b   : > { %3156 = vmatprep.mubr.msk.bf16.mxu1 %vm1889_vm11, %v1818_v42  ;;  %3225 = vmatmul.mubr.msk.bf16.gmra.mrb[24].mxu0 %vm1889_vm11, %v1818_v42  ;;  %v1873_v20 = vsel %vm1753_vm9, %v1871_v16, %v1859_v32 }
 0x12d   : > { %v1865_v49 = vpop.permute.xlu0 %1864 }
 0x12e   : > { %v1875_v1 = vsel %vm1786_vm10, %v1873_v20, %v1865_v49 }
 0x12f   : > { %3157 = vmatmul.mubr.msk.bf16.gmra.mrb[28].mxu1 %vm1889_vm11, %v1875_v1  ;;  %3228 = vmatprep.mubr.msk.bf16.mxu0 %vm1889_vm11, %v1875_v1 }
 0x130   : > { %3180 = vmatprep.mubr.msk.bf16.mxu1 %vm1889_vm11, %v4234_v41 }
 0x133   : > { %3229 = vmatmul.mubr.msk.bf16.gmra.mrb[28].mxu0 %vm1889_vm11, %v3996_v55 }
 0x137   : > { %3181 = vmatmul.mubr.msk.bf16.vlgmr.msra.gmra.mrb[16].mxu1 %vm1889_vm11, %v4252_v45 }
 0x138   : > { %3184 = vmatprep.mubr.msk.bf16.mxu1 %vm1889_vm11, %v4259_v50 }
 0x13f   : > { %3185 = vmatmul.mubr.msk.bf16.gmra.mrb[20].mxu1 %vm1889_vm11, %v1810_v6 }
 0x140   : > { %3188 = vmatprep.mubr.msk.bf16.mxu1 %vm1889_vm11, %v1812_v33 }
 0x147   : > { %3189 = vmatmul.mubr.msk.bf16.gmra.mrb[24].mxu1 %vm1889_vm11, %v1814_v46 }
 0x148   : > { %3192 = vmatprep.mubr.msk.bf16.mxu1 %vm1889_vm11, %v1816_v19 }
 0x14f   : > { %3193 = vmatmul.mubr.msk.bf16.gmra.mrb[28].mxu1 %vm1889_vm11, %v1818_v42 }
 0x174   : > { %v3130_v41 = vpop.f32.mrb[0].mxu1 }
 0x175   : > { %v1960_v56 = vpop.f32.mrb[1].mxu1 }
 0x176   : > { %v3131_v55 = vpop.f32.mrb[2].mxu1 }
 0x177   : > { %v1963_v52 = vpop.f32.mrb[3].mxu1 }
 0x189   : > { %v3134_v45 = vpop.f32.mrb[4].mxu1 }
 0x18a   : > { %v1976_v43 = vpop.f32.mrb[5].mxu1 }
 0x18b   : > { %v3135_v57 = vpop.f32.mrb[6].mxu1 }
 0x18c   : > { %v1979_v50 = vpop.f32.mrb[7].mxu1 }
 0x19d   : > { %v4331_v60 = vpop.f32.mrb[8].mxu1 }
 0x19e   : > { %v4333_v9 = vpop.f32.mrb[9].mxu1 }
 0x19f   : > { %v4335_v39 = vpop.f32.mrb[10].mxu1 }
 0x1a0   : > { %v4337_v54 = vpop.f32.mrb[11].mxu1 }
 0x1b1   : > { %v4339_v47 = vpop.f32.mrb[12].mxu1 }
 0x1b2   : > { %v4341_v59 = vpop.f32.mrb[13].mxu1 }
 0x1b3   : > { %v4343_v62 = vpop.f32.mrb[14].mxu1 }
 0x1b4   : > { %v4349_v24 = vpop.f32.mrb[15].mxu1 }
 0x1b7   : > { %v3202_v0 = vpop.f32.mrb[0].mxu0 }
 0x1b8   : > { %v3236_v25 = vadd.f32 %v3202_v0, %v3130_v41  ;;  %v2312_v6 = vpop.f32.mrb[1].mxu0 }
 0x1b9   : > { %v3237_v61 = vadd.f32 %v2312_v6, %v1960_v56  ;;  %v3203_v2 = vpop.f32.mrb[2].mxu0 }
 0x1ba   : > { %v2480_v33 = vmul.f32 %v3236_v25, %v4355_v5  ;;  %v3238_v38 = vadd.f32 %v3203_v2, %v3131_v55  ;;  %v2315_v8 = vpop.f32.mrb[3].mxu0 }
 0x1bb   : > { %v2478_v10 = vmul.f32 %v3237_v61, %v4355_v5  ;;  %v3239_v13 = vadd.f32 %v2315_v8, %v1963_v52 }
 0x1bc   : > { %v2519_v53 = vadd.f32 %v4357_v34, %v2480_v33  ;;  %v2481_v63 = vmul.f32 %v3238_v38, %v4355_v5 }
 0x1bd   : > { %v2517_v51 = vadd.f32 %v4357_v34, %v2478_v10  ;;  %v2479_v3 = vmul.f32 %v3239_v13, %v4355_v5 }
 0x1be   : > { %v2551_v31 = vmax.f32 %v2519_v53, 0.0  ;;  %v2520_v12 = vadd.f32 %v4357_v34, %v2481_v63 }
 0x1bf   : > { %v2549_v15 = vmax.f32 %v2517_v51, 0.0  ;;  %v2518_v17 = vadd.f32 %v4357_v34, %v2479_v3  ;;  %v3206_v4 = vpop.f32.mrb[4].mxu0 }
 0x1c0   : > { %v3040_v22 = vpack.c.bf16 %v2551_v31, %v2551_v31  ;;  %v2552_v29 = vmax.f32 %v2520_v12, 0.0  ;;  %v3240_v46 = vadd.f32 %v3206_v4, %v3134_v45  ;;  %v2328_v30 = vpop.f32.mrb[5].mxu0 }
 0x1c1   : > { %v3038_v40 = vpack.c.bf16 %v2549_v15, %v2549_v15  ;;  %v2550_v14 = vmax.f32 %v2518_v17, 0.0  ;;  %v3241_v19 = vadd.f32 %v2328_v30, %v1976_v43  ;;  %v3207_v21 = vpop.f32.mrb[6].mxu0 }
 0x1c2   : > { %2712 = vst.msk [vmem:[%s4370_s7 + $0x8] sm:$0xf] %vm2709_vm12, %v3040_v22  ;;  %v3041_v58 = vpack.c.bf16 %v2552_v29, %v2552_v29  ;;  %v2484_v7 = vmul.f32 %v3240_v46, %v4355_v5  ;;  %v3242_v48 = vadd.f32 %v3207_v21, %v3135_v57  ;;  %v2331_v26 = vpop.f32.mrb[7].mxu0 }
 0x1c3   : > { %2710 = vst.msk [vmem:[%s4370_s7] sm:$0xf] %vm2709_vm12, %v3038_v40  ;;  %v3039_v27 = vpack.c.bf16 %v2550_v14, %v2550_v14  ;;  %v2482_v36 = vmul.f32 %v3241_v19, %v4355_v5  ;;  %v3243_v11 = vadd.f32 %v2331_v26, %v1979_v50 }
 0x1c4   : > { %2713 = vst.msk [vmem:[%s4370_s7 + $0xc] sm:$0xf] %vm2709_vm12, %v3041_v58  ;;  %v2523_v28 = vadd.f32 %v4357_v34, %v2484_v7  ;;  %v2485_v18 = vmul.f32 %v3242_v48, %v4355_v5 }
 0x1c5   : > { %2711 = vst.msk [vmem:[%s4370_s7 + $0x4] sm:$0xf] %vm2709_vm12, %v3039_v27  ;;  %v2521_v35 = vadd.f32 %v4357_v34, %v2482_v36  ;;  %v2483_v44 = vmul.f32 %v3243_v11, %v4355_v5 }
 0x1c6   : > { %v2555_v37 = vmax.f32 %v2523_v28, 0.0  ;;  %v2524_v23 = vadd.f32 %v4357_v34, %v2485_v18 }
 0x1c7   : > { %v2553_v16 = vmax.f32 %v2521_v35, 0.0  ;;  %v2522_v42 = vadd.f32 %v4357_v34, %v2483_v44  ;;  %v3210_v32 = vpop.f32.mrb[8].mxu0 }
 0x1c8   : > { %v3044_v20 = vpack.c.bf16 %v2555_v37, %v2555_v37  ;;  %v2556_v49 = vmax.f32 %v2524_v23, 0.0  ;;  %v3244_v1 = vadd.f32 %v3210_v32, %v4331_v60  ;;  %v2344_v41 = vpop.f32.mrb[9].mxu0 }
 0x1c9   : > { %v3042_v56 = vpack.c.bf16 %v2553_v16, %v2553_v16  ;;  %v2554_v55 = vmax.f32 %v2522_v42, 0.0  ;;  %v3245_v52 = vadd.f32 %v2344_v41, %v4333_v9  ;;  %v3211_v45 = vpop.f32.mrb[10].mxu0 }
 0x1ca   : > { %2716 = vst.msk [vmem:[%s4370_s7 + $0x18] sm:$0xf] %vm2709_vm12, %v3044_v20  ;;  %v3045_v43 = vpack.c.bf16 %v2556_v49, %v2556_v49  ;;  %v2488_v57 = vmul.f32 %v3244_v1, %v4355_v5  ;;  %v3246_v50 = vadd.f32 %v3211_v45, %v4335_v39  ;;  %v2347_v0 = vpop.f32.mrb[11].mxu0 }
 0x1cb   : > { %2714 = vst.msk [vmem:[%s4370_s7 + $0x10] sm:$0xf] %vm2709_vm12, %v3042_v56  ;;  %v3043_v25 = vpack.c.bf16 %v2554_v55, %v2554_v55  ;;  %v2486_v60 = vmul.f32 %v3245_v52, %v4355_v5  ;;  %v3247_v6 = vadd.f32 %v2347_v0, %v4337_v54 }
 0x1cc   : > { %2717 = vst.msk [vmem:[%s4370_s7 + $0x1c] sm:$0xf] %vm2709_vm12, %v3045_v43  ;;  %v2527_v9 = vadd.f32 %v4357_v34, %v2488_v57  ;;  %v2489_v61 = vmul.f32 %v3246_v50, %v4355_v5 }
 0x1cd   : > { %2715 = vst.msk [vmem:[%s4370_s7 + $0x14] sm:$0xf] %vm2709_vm12, %v3043_v25  ;;  %v2525_v2 = vadd.f32 %v4357_v34, %v2486_v60  ;;  %v2487_v39 = vmul.f32 %v3247_v6, %v4355_v5 }
 0x1ce   : > { %v2559_v33 = vmax.f32 %v2527_v9, 0.0  ;;  %v2528_v38 = vadd.f32 %v4357_v34, %v2489_v61 }
 0x1cf   : > { %v2557_v8 = vmax.f32 %v2525_v2, 0.0  ;;  %v2526_v54 = vadd.f32 %v4357_v34, %v2487_v39  ;;  %v3214_v10 = vpop.f32.mrb[12].mxu0 }
 0x1d0   : > { %v3048_v13 = vpack.c.bf16 %v2559_v33, %v2559_v33  ;;  %v2560_v53 = vmax.f32 %v2528_v38, 0.0  ;;  %v3248_v63 = vadd.f32 %v3214_v10, %v4339_v47  ;;  %v2360_v51 = vpop.f32.mrb[13].mxu0 }
 0x1d1   : > { %v3046_v3 = vpack.c.bf16 %v2557_v8, %v2557_v8  ;;  %v2558_v31 = vmax.f32 %v2526_v54, 0.0  ;;  %v3249_v12 = vadd.f32 %v2360_v51, %v4341_v59  ;;  %v3215_v15 = vpop.f32.mrb[14].mxu0 }
 0x1d2   : > { %2720 = vst.msk [vmem:[%s4370_s7 + $0x28] sm:$0xf] %vm2709_vm12, %v3048_v13  ;;  %v3049_v17 = vpack.c.bf16 %v2560_v53, %v2560_v53  ;;  %v2492_v4 = vmul.f32 %v3248_v63, %v4355_v5  ;;  %v3250_v22 = vadd.f32 %v3215_v15, %v4343_v62  ;;  %v2363_v29 = vpop.f32.mrb[15].mxu0 }
 0x1d3   : > { %2718 = vst.msk [vmem:[%s4370_s7 + $0x20] sm:$0xf] %vm2709_vm12, %v3046_v3  ;;  %v3047_v46 = vpack.c.bf16 %v2558_v31, %v2558_v31  ;;  %v2490_v47 = vmul.f32 %v3249_v12, %v4355_v5  ;;  %v3251_v30 = vadd.f32 %v2363_v29, %v4349_v24 }
 0x1d4   : > { %2721 = vst.msk [vmem:[%s4370_s7 + $0x2c] sm:$0xf] %vm2709_vm12, %v3049_v17  ;;  %v2531_v59 = vadd.f32 %v4357_v34, %v2492_v4  ;;  %v2493_v40 = vmul.f32 %v3250_v22, %v4355_v5 }
 0x1d5   : > { %2719 = vst.msk [vmem:[%s4370_s7 + $0x24] sm:$0xf] %vm2709_vm12, %v3047_v46  ;;  %v2529_v14 = vadd.f32 %v4357_v34, %v2490_v47  ;;  %v2491_v62 = vmul.f32 %v3251_v30, %v4355_v5 }
 0x1d6   : > { %v2563_v19 = vmax.f32 %v2531_v59, 0.0  ;;  %v2532_v21 = vadd.f32 %v4357_v34, %v2493_v40 }
 0x1d7   : > { %v2561_v24 = vmax.f32 %v2529_v14, 0.0  ;;  %v2530_v58 = vadd.f32 %v4357_v34, %v2491_v62  ;;  %v3218_v7 = vpop.f32.mrb[16].mxu0 }
 0x1d8   : > { %v3052_v48 = vpack.c.bf16 %v2563_v19, %v2563_v19  ;;  %v2564_v26 = vmax.f32 %v2532_v21, 0.0  ;;  %v2376_v27 = vpop.f32.mrb[17].mxu0 }
 0x1d9   : > { %v3050_v36 = vpack.c.bf16 %v2561_v24, %v2561_v24  ;;  %v2562_v11 = vmax.f32 %v2530_v58, 0.0  ;;  %v3219_v28 = vpop.f32.mrb[18].mxu0 }
 0x1da   : > { %2724 = vst.msk [vmem:[%s4370_s7 + $0x38] sm:$0xf] %vm2709_vm12, %v3052_v48  ;;  %v3053_v18 = vpack.c.bf16 %v2564_v26, %v2564_v26  ;;  %v2379_v35 = vpop.f32.mrb[19].mxu0 }
 0x1db   : > { %2722 = vst.msk [vmem:[%s4370_s7 + $0x30] sm:$0xf] %vm2709_vm12, %v3050_v36  ;;  %v3051_v44 = vpack.c.bf16 %v2562_v11, %v2562_v11 }
 0x1dc   : > { %2725 = vst.msk [vmem:[%s4370_s7 + $0x3c] sm:$0xf] %vm2709_vm12, %v3053_v18 }
 0x1dd   : > { %2723 = vst.msk [vmem:[%s4370_s7 + $0x34] sm:$0xf] %vm2709_vm12, %v3051_v44 }
 0x1eb   : > { %v3222_v37 = vpop.f32.mrb[20].mxu0 }
 0x1ec   : > { %v2392_v23 = vpop.f32.mrb[21].mxu0 }
 0x1ed   : > { %v3223_v16 = vpop.f32.mrb[22].mxu0 }
 0x1ee   : > { %v2395_v42 = vpop.f32.mrb[23].mxu0 }
 0x1fe   : > { %v3226_v32 = vpop.f32.mrb[24].mxu0 }
 0x1ff   : > { %v2408_v20 = vpop.f32.mrb[25].mxu0 }
 0x200   : > { %v4437_v49 = vpop.f32.mrb[26].mxu0 }
 0x201   : > { %v4439_v1 = vpop.f32.mrb[27].mxu0 }
 0x206   : > { %v4441_v41 = vpop.f32.mrb[28].mxu0 }
 0x207   : > { %v4443_v56 = vpop.f32.mrb[29].mxu0 }
 0x208   : > { %v4445_v55 = vpop.f32.mrb[30].mxu0 }
 0x209   : > { %v4447_v52 = vpop.f32.mrb[31].mxu0 }
 0x20a   : > { %v3182_v45 = vpop.f32.mrb[16].mxu1 }
 0x20b   : > { %v3252_v43 = vadd.f32 %v3218_v7, %v3182_v45  ;;  %v2199_v57 = vpop.f32.mrb[17].mxu1 }
 0x20c   : > { %v3253_v50 = vadd.f32 %v2376_v27, %v2199_v57  ;;  %v3183_v0 = vpop.f32.mrb[18].mxu1 }
 0x20d   : > { %v2496_v25 = vmul.f32 %v3252_v43, %v4355_v5  ;;  %v3254_v60 = vadd.f32 %v3219_v28, %v3183_v0  ;;  %v2202_v6 = vpop.f32.mrb[19].mxu1 }
 0x20e   : > { %v2494_v9 = vmul.f32 %v3253_v50, %v4355_v5  ;;  %v3255_v61 = vadd.f32 %v2379_v35, %v2202_v6 }
 0x20f   : > { %v2535_v2 = vadd.f32 %v4357_v34, %v2496_v25  ;;  %v2497_v39 = vmul.f32 %v3254_v60, %v4355_v5 }
 0x210   : > { %v2533_v33 = vadd.f32 %v4357_v34, %v2494_v9  ;;  %v2495_v38 = vmul.f32 %v3255_v61, %v4355_v5 }
 0x211   : > { %v2567_v8 = vmax.f32 %v2535_v2, 0.0  ;;  %v2536_v54 = vadd.f32 %v4357_v34, %v2497_v39 }
 0x212   : > { %v2565_v10 = vmax.f32 %v2533_v33, 0.0  ;;  %v2534_v13 = vadd.f32 %v4357_v34, %v2495_v38  ;;  %v3186_v53 = vpop.f32.mrb[20].mxu1 }
 0x213   : > { %v3056_v63 = vpack.c.bf16 %v2567_v8, %v2567_v8  ;;  %v2568_v51 = vmax.f32 %v2536_v54, 0.0  ;;  %v3256_v3 = vadd.f32 %v3222_v37, %v3186_v53  ;;  %v2215_v31 = vpop.f32.mrb[21].mxu1 }
 0x214   : > { %v3054_v12 = vpack.c.bf16 %v2565_v10, %v2565_v10  ;;  %v2566_v15 = vmax.f32 %v2534_v13, 0.0  ;;  %v3257_v17 = vadd.f32 %v2392_v23, %v2215_v31  ;;  %v3187_v4 = vpop.f32.mrb[22].mxu1 }
 0x215   : > { %2728 = vst.msk [vmem:[%s4370_s7 + $0x48] sm:$0xf] %vm2709_vm12, %v3056_v63  ;;  %v3057_v22 = vpack.c.bf16 %v2568_v51, %v2568_v51  ;;  %v2500_v29 = vmul.f32 %v3256_v3, %v4355_v5  ;;  %v3258_v46 = vadd.f32 %v3223_v16, %v3187_v4  ;;  %v2218_v47 = vpop.f32.mrb[23].mxu1 }
 0x216   : > { %2726 = vst.msk [vmem:[%s4370_s7 + $0x40] sm:$0xf] %vm2709_vm12, %v3054_v12  ;;  %v3055_v30 = vpack.c.bf16 %v2566_v15, %v2566_v15  ;;  %v2498_v59 = vmul.f32 %v3257_v17, %v4355_v5  ;;  %v3259_v40 = vadd.f32 %v2395_v42, %v2218_v47 }
 0x217   : > { %2729 = vst.msk [vmem:[%s4370_s7 + $0x4c] sm:$0xf] %vm2709_vm12, %v3057_v22  ;;  %v2539_v14 = vadd.f32 %v4357_v34, %v2500_v29  ;;  %v2501_v62 = vmul.f32 %v3258_v46, %v4355_v5 }
 0x218   : > { %2727 = vst.msk [vmem:[%s4370_s7 + $0x44] sm:$0xf] %vm2709_vm12, %v3055_v30  ;;  %v2537_v19 = vadd.f32 %v4357_v34, %v2498_v59  ;;  %v2499_v21 = vmul.f32 %v3259_v40, %v4355_v5 }
 0x219   : > { %v2571_v24 = vmax.f32 %v2539_v14, 0.0  ;;  %v2540_v58 = vadd.f32 %v4357_v34, %v2501_v62 }
 0x21a   : > { %v2569_v7 = vmax.f32 %v2537_v19, 0.0  ;;  %v2538_v48 = vadd.f32 %v4357_v34, %v2499_v21  ;;  %v3190_v26 = vpop.f32.mrb[24].mxu1 }
 0x21b   : > { %v3060_v27 = vpack.c.bf16 %v2571_v24, %v2571_v24  ;;  %v2572_v36 = vmax.f32 %v2540_v58, 0.0  ;;  %v3260_v11 = vadd.f32 %v3226_v32, %v3190_v26  ;;  %v2231_v28 = vpop.f32.mrb[25].mxu1 }
 0x21c   : > { %v3058_v18 = vpack.c.bf16 %v2569_v7, %v2569_v7  ;;  %v2570_v35 = vmax.f32 %v2538_v48, 0.0  ;;  %v3261_v44 = vadd.f32 %v2408_v20, %v2231_v28  ;;  %v3191_v37 = vpop.f32.mrb[26].mxu1 }
 0x21d   : > { %2732 = vst.msk [vmem:[%s4370_s7 + $0x58] sm:$0xf] %vm2709_vm12, %v3060_v27  ;;  %v3061_v23 = vpack.c.bf16 %v2572_v36, %v2572_v36  ;;  %v2504_v16 = vmul.f32 %v3260_v11, %v4355_v5  ;;  %v3262_v42 = vadd.f32 %v4437_v49, %v3191_v37  ;;  %v2234_v45 = vpop.f32.mrb[27].mxu1 }
 0x21e   : > { %2730 = vst.msk [vmem:[%s4370_s7 + $0x50] sm:$0xf] %vm2709_vm12, %v3058_v18  ;;  %v3059_v43 = vpack.c.bf16 %v2570_v35, %v2570_v35  ;;  %v2502_v57 = vmul.f32 %v3261_v44, %v4355_v5  ;;  %v3263_v32 = vadd.f32 %v4439_v1, %v2234_v45 }
 0x21f   : > { %2733 = vst.msk [vmem:[%s4370_s7 + $0x5c] sm:$0xf] %vm2709_vm12, %v3061_v23  ;;  %v2543_v20 = vadd.f32 %v4357_v34, %v2504_v16  ;;  %v2505_v50 = vmul.f32 %v3262_v42, %v4355_v5 }
 0x220   : > { %2731 = vst.msk [vmem:[%s4370_s7 + $0x54] sm:$0xf] %vm2709_vm12, %v3059_v43  ;;  %v2541_v0 = vadd.f32 %v4357_v34, %v2502_v57  ;;  %v2503_v49 = vmul.f32 %v3263_v32, %v4355_v5 }
 0x221   : > { %v2575_v25 = vmax.f32 %v2543_v20, 0.0  ;;  %v2544_v60 = vadd.f32 %v4357_v34, %v2505_v50 }
 0x222   : > { %v2573_v6 = vmax.f32 %v2541_v0, 0.0  ;;  %v2542_v1 = vadd.f32 %v4357_v34, %v2503_v49  ;;  %v3194_v9 = vpop.f32.mrb[28].mxu1 }
 0x223   : > { %v3064_v61 = vpack.c.bf16 %v2575_v25, %v2575_v25  ;;  %v2576_v2 = vmax.f32 %v2544_v60, 0.0  ;;  %v3264_v39 = vadd.f32 %v4441_v41, %v3194_v9  ;;  %v2247_v33 = vpop.f32.mrb[29].mxu1 }
 0x224   : > { %v3062_v38 = vpack.c.bf16 %v2573_v6, %v2573_v6  ;;  %v2574_v8 = vmax.f32 %v2542_v1, 0.0  ;;  %v3265_v54 = vadd.f32 %v4443_v56, %v2247_v33  ;;  %v3195_v10 = vpop.f32.mrb[30].mxu1 }
 0x225   : > { %2736 = vst.msk [vmem:[%s4370_s7 + $0x68] sm:$0xf] %vm2709_vm12, %v3064_v61  ;;  %v3065_v13 = vpack.c.bf16 %v2576_v2, %v2576_v2  ;;  %v2508_v53 = vmul.f32 %v3264_v39, %v4355_v5  ;;  %v3266_v63 = vadd.f32 %v4445_v55, %v3195_v10  ;;  %v2250_v51 = vpop.f32.mrb[31].mxu1 }
 0x226   : > { %2734 = vst.msk [vmem:[%s4370_s7 + $0x60] sm:$0xf] %vm2709_vm12, %v3062_v38  ;;  %v3063_v3 = vpack.c.bf16 %v2574_v8, %v2574_v8  ;;  %v2506_v41 = vmul.f32 %v3265_v54, %v4355_v5  ;;  %v3267_v31 = vadd.f32 %v4447_v52, %v2250_v51 }
 0x227   : > { %2737 = vst.msk [vmem:[%s4370_s7 + $0x6c] sm:$0xf] %vm2709_vm12, %v3065_v13  ;;  %v2547_v56 = vadd.f32 %v4357_v34, %v2508_v53  ;;  %v2509_v12 = vmul.f32 %v3266_v63, %v4355_v5 }
 0x228   : > { %2735 = vst.msk [vmem:[%s4370_s7 + $0x64] sm:$0xf] %vm2709_vm12, %v3063_v3  ;;  %v2545_v55 = vadd.f32 %v4357_v34, %v2506_v41  ;;  %v2507_v15 = vmul.f32 %v3267_v31, %v4355_v5 }
 0x229   : > { %v2579_v17 = vmax.f32 %v2547_v56, 0.0  ;;  %v2548_v4 = vadd.f32 %v4357_v34, %v2509_v12 }
 0x22a   : > { %v2577_v22 = vmax.f32 %v2545_v55, 0.0  ;;  %v2546_v52 = vadd.f32 %v4357_v34, %v2507_v15 }
 0x22b   : > { %v3068_v29 = vpack.c.bf16 %v2579_v17, %v2579_v17  ;;  %v2580_v46 = vmax.f32 %v2548_v4, 0.0 }
 0x22c   : > { %v3066_v47 = vpack.c.bf16 %v2577_v22, %v2577_v22  ;;  %v2578_v30 = vmax.f32 %v2546_v52, 0.0 }
 0x22d   : > { %2740 = vst.msk [vmem:[%s4370_s7 + $0x78] sm:$0xf] %vm2709_vm12, %v3068_v29  ;;  %v3069_v59 = vpack.c.bf16 %v2580_v46, %v2580_v46 }
 0x22e   : > { %2738 = vst.msk [vmem:[%s4370_s7 + $0x70] sm:$0xf] %vm2709_vm12, %v3066_v47  ;;  %v3067_v40 = vpack.c.bf16 %v2578_v30, %v2578_v30 }
 0x22f   : > { %2741 = vst.msk [vmem:[%s4370_s7 + $0x7c] sm:$0xf] %vm2709_vm12, %v3069_v59 }
 0x230   : > { %2739 = vst.msk [vmem:[%s4370_s7 + $0x74] sm:$0xf] %vm2709_vm12, %v3067_v40 }
 0x231 PF: > { %s15_s22 = sadd.s32 1, %s3427_s22   ;;  %s4542_s18 = smov %s3419_s20 }
 0x232   : > { %p12_p7 = scmp.ge.s32.totalorder %s15_s22, 6   ;;  %s4543_s19 = smov %s3423_s21 }
 0x233   : > { %s4544_s20 = smov %s4547_s23  ;;  %s4545_s21 = smov %s4551_s24 }
 0x234   :  { %14 = sbr.rel (!%p12_p7) target bundleno = 3 (0x3), region = 84 }

</bundles_post_ra>
